<compile_context>
chip_gen: v7x
topology: tpu7x:2x2x1
jax: 0.10.0
libtpu: 0.0.40
codegen_flags: <defaults>
</compile_context>

<pallas_src>
import jax
import jax.numpy as jnp
from jax import lax
from jax.experimental import pallas as pl
from jax.experimental.pallas import tpu as pltpu

LANES = 128  # TPU vreg lane width


def _num_tensorcores():
    """Best-effort TensorCore count (v7x: 2/chip, v5e/v6e: 1). Fallback of 1 is
    always correct — it just means no grid split."""
    try:
        info = pltpu.get_tpu_info()
        for attr in ("num_cores", "core_count", "num_tensorcores", "tensorcore_count"):
            v = getattr(info, attr, None)
            if isinstance(v, int) and v > 0:
                return int(v)
    except Exception:
        pass
    try:
        v = getattr(jax.devices()[0], "num_cores", None)
        if isinstance(v, int) and v > 0:
            return int(v)
    except Exception:
        pass
    return 1


def _activation_dtype():
    """bf16 tanh only where the EUP/VPU is bf16-capable (v6e, v7x); keep f32
    tanh on v5e and older (they would just upcast)."""
    try:
        kind = jax.devices()[0].device_kind.lower()
    except Exception:
        return jnp.float32
    for old in ("v2", "v3", "v4", "v5"):
        if old in kind:
            return jnp.float32
    return jnp.bfloat16


def _make_kernel(mxu_dtype, act_dtype):
    def mlp_kernel(x_ref,
                   w1_ref, b1_ref,
                   w2_ref, b2_ref,
                   w3_ref, b3_ref,
                   w4_ref, b4_ref,
                   w5_ref, b5_ref,
                   o_ref):
        # Layer 1: contract the feature dim of the natural [TM, 4] input tile
        # against W1 [20, 4]; result is batch-on-lanes [20, TM] and all later
        # layers are lane-dense W @ h matmuls on the MXU.
        xt = x_ref[...].astype(mxu_dtype)                                        # [TM,  4]
        z = lax.dot_general(w1_ref[...], xt, (((1,), (1,)), ((), ())),
                            preferred_element_type=jnp.float32) + b1_ref[...]    # [20,  TM]
        h = jnp.tanh(z.astype(act_dtype)).astype(mxu_dtype)

        z = jnp.dot(w2_ref[...], h, preferred_element_type=jnp.float32) + b2_ref[...]
        h = jnp.tanh(z.astype(act_dtype)).astype(mxu_dtype)                      # [40,  TM]

        # hidden block (Dropout(0.1) is identity in eval mode).
        z = jnp.dot(w3_ref[...], h, preferred_element_type=jnp.float32) + b3_ref[...]
        h = jnp.tanh(z.astype(act_dtype)).astype(mxu_dtype)                      # [200, TM]

        z = jnp.dot(w4_ref[...], h, preferred_element_type=jnp.float32) + b4_ref[...]
        h = jnp.tanh(z.astype(act_dtype)).astype(mxu_dtype)                      # [100, TM]

        # regression: Linear(100->1)
        out = jnp.dot(w5_ref[...], h, preferred_element_type=jnp.float32) + b5_ref[...]
        o_ref[...] = out.astype(o_ref.dtype)                                     # [1,   TM]

    return mlp_kernel


def myf_forward(x, params, *, tm=2048, use_bf16=True):
    """x: [N, 4] float32. params: PyTorch-layout weights ([out, in]) and biases
    ([out, 1]). Returns [N, 1] float32."""
    N, Din = x.shape
    assert Din == 4

    mxu_dtype = jnp.bfloat16 if use_bf16 else jnp.float32
    act_dtype = _activation_dtype() if use_bf16 else jnp.float32

    # Lane-aligned batch tiling. Single-TC chips (v5e/v6e): one tile as large as
    # tm (serial grid split would be pure overhead). Multi-TC chips (v7x): split
    # so the step count is balanced across cores.
    n_lane = pl.cdiv(N, LANES) * LANES
    tm_eff = max(LANES, min((tm // LANES) * LANES, n_lane))
    ncores = _num_tensorcores()
    if ncores > 1 and n_lane > LANES:
        steps = pl.cdiv(n_lane, tm_eff)
        steps = pl.cdiv(steps, ncores) * ncores
        tm_eff = max(LANES, pl.cdiv(pl.cdiv(n_lane, steps), LANES) * LANES)
    grid_steps = pl.cdiv(n_lane, tm_eff)
    n_pad = grid_steps * tm_eff

    x = x.astype(jnp.float32)   # fed in natural [N, 4] layout, no pad / transpose

    ws = [params[f"w{i}"].astype(mxu_dtype) for i in range(1, 6)]
    bs = [params[f"b{i}"].astype(jnp.float32) for i in range(1, 6)]

    def const_spec(a):
        # Whole (tiny) array resident in VMEM, same block every grid step —
        # Pallas only DMAs it once.
        return pl.BlockSpec(a.shape, lambda i, _z=(0,) * a.ndim: _z)

    # The last input block may read rows past N; those values are unspecified
    # but stay in their own lanes (all ops are per-lane in the batch dim) and
    # are sliced off below.
    in_specs = [pl.BlockSpec((tm_eff, Din), lambda i: (i, 0))]
    for w, b in zip(ws, bs):
        in_specs += [const_spec(w), const_spec(b)]
    out_spec = pl.BlockSpec((1, tm_eff), lambda i: (0, i))

    param_bytes = sum(int(a.size) * a.dtype.itemsize for a in ws + bs)
    flops_per_pt = 2 * (4 * 20 + 20 * 40 + 40 * 200 + 200 * 100 + 100 * 1)
    cost = pl.CostEstimate(
        flops=flops_per_pt * n_pad,
        transcendentals=(20 + 40 + 200 + 100) * n_pad,
        bytes_accessed=Din * 4 * N + 4 * n_pad + param_bytes,
    )

    out_t = pl.pallas_call(
        _make_kernel(mxu_dtype, act_dtype),
        out_shape=jax.ShapeDtypeStruct((1, n_pad), jnp.float32),
        grid_spec=pl.GridSpec(
            grid=(grid_steps,),
            in_specs=in_specs,
            out_specs=out_spec,
        ),
        compiler_params=pltpu.CompilerParams(
            dimension_semantics=("parallel",)),
        cost_estimate=cost,
    )(x, *[a for wb in zip(ws, bs) for a in wb])

    return out_t[0, :N][:, None]


def init_params(key):
    """PyTorch nn.Linear-style init: W ~ U[-1/sqrt(fan_in), +], shape [out, in];
    b ~ same bound, shape [out, 1]."""
    dims = [(4, 20), (20, 40), (40, 200), (200, 100), (100, 1)]
    params = {}
    for idx, (fan_in, fan_out) in enumerate(dims, start=1):
        key, kw, kb = jax.random.split(key, 3)
        bound = 1.0 / (float(fan_in) ** 0.5)
        params[f"w{idx}"] = jax.random.uniform(
            kw, (fan_out, fan_in), jnp.float32, -bound, bound)
        params[f"b{idx}"] = jax.random.uniform(
            kb, (fan_out, 1), jnp.float32, -bound, bound)
    return params


def reference_forward(x, params, mxu_dtype=jnp.float32, act_dtype=jnp.float32):
    """Pure-JAX reference. With mxu/act dtypes it applies the same rounding
    points as the kernel (bf16 matmul operands, f32 accumulation)."""
    def lin(h, w, b):
        return jnp.dot(h.astype(mxu_dtype), w.astype(mxu_dtype).T,
                       preferred_element_type=jnp.float32) + b.T
    h = x.astype(jnp.float32)
    for i in (1, 2, 3, 4):
        h = jnp.tanh(lin(h, params[f"w{i}"], params[f"b{i}"]).astype(act_dtype))
        h = h.astype(jnp.float32)
    return lin(h, params["w5"], params["b5"])


if __name__ == "__main__":
    key = jax.random.PRNGKey(0)
    kp, kx = jax.random.split(key)
    params = init_params(kp)

    # Deliberately NOT a multiple of 128 / the tile: exercises the padded tail.
    N = 1000
    x = jax.random.normal(kx, (N, 4), jnp.float32)

    out = jax.block_until_ready(myf_forward(x, params, tm=2048, use_bf16=True))
    assert out.shape == (N, 1)

    # Check against a reference with matching rounding points (kernel-correctness
    # gate; tolerance covers EUP-vs-XLA tanh ULP differences at bf16) ...
    ref_matched = reference_forward(x, params, mxu_dtype=jnp.bfloat16,
                                    act_dtype=_activation_dtype())
    assert jnp.allclose(out, ref_matched, atol=1e-2, rtol=5e-2), \
        "mismatch vs matched-precision JAX reference"

    # ... and against the full-f32 module semantics (loose: bf16 MXU operands).
    ref_f32 = reference_forward(x, params)
    assert jnp.allclose(out, ref_f32, atol=5e-2, rtol=1e-1), \
        "mismatch vs f32 JAX reference"

    print("KERNEL_OK")
</pallas_src>

<mosaic_0001>
module attributes {stable_mosaic.version = 11 : i64} {
  func.func @mlp_kernel(%arg0: i32, %arg1: memref<1024x4xf32, #tpu.memory_space<vmem>>, %arg2: memref<20x4xbf16, #tpu.memory_space<vmem>>, %arg3: memref<20x1xf32, #tpu.memory_space<vmem>>, %arg4: memref<40x20xbf16, #tpu.memory_space<vmem>>, %arg5: memref<40x1xf32, #tpu.memory_space<vmem>>, %arg6: memref<200x40xbf16, #tpu.memory_space<vmem>>, %arg7: memref<200x1xf32, #tpu.memory_space<vmem>>, %arg8: memref<100x200xbf16, #tpu.memory_space<vmem>>, %arg9: memref<100x1xf32, #tpu.memory_space<vmem>>, %arg10: memref<1x100xbf16, #tpu.memory_space<vmem>>, %arg11: memref<1x1xf32, #tpu.memory_space<vmem>>, %arg12: memref<1x1024xf32, #tpu.memory_space<vmem>>) attributes {dimension_semantics = [#tpu.dimension_semantics<parallel>], iteration_bounds = array<i64: 1>, scalar_prefetch = 0 : i64, scratch_operands = 0 : i64, tpu.core_type = #tpu.core_type<tc>, window_params = [{transform_indices = @transform_0, window_bounds = array<i64: 1024, 4>}, {pipeline_mode = #tpu.pipeline_mode<synchronous>, transform_indices = @transform_1, window_bounds = array<i64: 20, 4>}, {pipeline_mode = #tpu.pipeline_mode<synchronous>, transform_indices = @transform_2, window_bounds = array<i64: 20, 1>}, {pipeline_mode = #tpu.pipeline_mode<synchronous>, transform_indices = @transform_3, window_bounds = array<i64: 40, 20>}, {pipeline_mode = #tpu.pipeline_mode<synchronous>, transform_indices = @transform_4, window_bounds = array<i64: 40, 1>}, {pipeline_mode = #tpu.pipeline_mode<synchronous>, transform_indices = @transform_5, window_bounds = array<i64: 200, 40>}, {pipeline_mode = #tpu.pipeline_mode<synchronous>, transform_indices = @transform_6, window_bounds = array<i64: 200, 1>}, {pipeline_mode = #tpu.pipeline_mode<synchronous>, transform_indices = @transform_7, window_bounds = array<i64: 100, 200>}, {pipeline_mode = #tpu.pipeline_mode<synchronous>, transform_indices = @transform_8, window_bounds = array<i64: 100, 1>}, {pipeline_mode = #tpu.pipeline_mode<synchronous>, transform_indices = @transform_9, window_bounds = array<i64: 1, 100>}, {pipeline_mode = #tpu.pipeline_mode<synchronous>, transform_indices = @transform_10, window_bounds = array<i64: 1, 1>}, {transform_indices = @transform_11, window_bounds = array<i64: 1, 1024>}]} {
    %c0 = arith.constant 0 : index
    %c0_0 = arith.constant 0 : index
    %0 = vector.load %arg1[%c0, %c0_0] : memref<1024x4xf32, #tpu.memory_space<vmem>>, vector<1024x4xf32>
    %1 = arith.truncf %0 : vector<1024x4xf32> to vector<1024x4xbf16>
    %c0_1 = arith.constant 0 : index
    %c0_2 = arith.constant 0 : index
    %2 = vector.load %arg2[%c0_1, %c0_2] : memref<20x4xbf16, #tpu.memory_space<vmem>>, vector<20x4xbf16>
    %cst = arith.constant dense<0.000000e+00> : vector<20x1024xf32>
    %3 = tpu.matmul %2, %1, %cst {dimension_numbers = #tpu.dot_dimension_numbers<[1], [1], [0], [0], [0, 0, 1, 0], [], []>} : vector<20x4xbf16>, vector<1024x4xbf16>, vector<20x1024xf32> -> vector<20x1024xf32>
    %c0_3 = arith.constant 0 : index
    %c0_4 = arith.constant 0 : index
    %4 = vector.load %arg3[%c0_3, %c0_4] : memref<20x1xf32, #tpu.memory_space<vmem>>, vector<20x1xf32>
    %5 = vector.broadcast %4 : vector<20x1xf32> to vector<20x1024xf32>
    %6 = arith.addf %3, %5 : vector<20x1024xf32>
    %7 = arith.truncf %6 : vector<20x1024xf32> to vector<20x1024xbf16>
    %8 = math.tanh %7 : vector<20x1024xbf16>
    %c0_5 = arith.constant 0 : index
    %c0_6 = arith.constant 0 : index
    %9 = vector.load %arg4[%c0_5, %c0_6] : memref<40x20xbf16, #tpu.memory_space<vmem>>, vector<40x20xbf16>
    %cst_7 = arith.constant dense<0.000000e+00> : vector<40x1024xf32>
    %10 = tpu.matmul %9, %8, %cst_7 {dimension_numbers = #tpu.dot_dimension_numbers<[1], [0], [0], [1], [0, 0, 1, 1], [], []>} : vector<40x20xbf16>, vector<20x1024xbf16>, vector<40x1024xf32> -> vector<40x1024xf32>
    %c0_8 = arith.constant 0 : index
    %c0_9 = arith.constant 0 : index
    %11 = vector.load %arg5[%c0_8, %c0_9] : memref<40x1xf32, #tpu.memory_space<vmem>>, vector<40x1xf32>
    %12 = vector.broadcast %11 : vector<40x1xf32> to vector<40x1024xf32>
    %13 = arith.addf %10, %12 : vector<40x1024xf32>
    %14 = arith.truncf %13 : vector<40x1024xf32> to vector<40x1024xbf16>
    %15 = math.tanh %14 : vector<40x1024xbf16>
    %c0_10 = arith.constant 0 : index
    %c0_11 = arith.constant 0 : index
    %16 = vector.load %arg6[%c0_10, %c0_11] : memref<200x40xbf16, #tpu.memory_space<vmem>>, vector<200x40xbf16>
    %cst_12 = arith.constant dense<0.000000e+00> : vector<200x1024xf32>
    %17 = tpu.matmul %16, %15, %cst_12 {dimension_numbers = #tpu.dot_dimension_numbers<[1], [0], [0], [1], [0, 0, 1, 1], [], []>} : vector<200x40xbf16>, vector<40x1024xbf16>, vector<200x1024xf32> -> vector<200x1024xf32>
    %c0_13 = arith.constant 0 : index
    %c0_14 = arith.constant 0 : index
    %18 = vector.load %arg7[%c0_13, %c0_14] : memref<200x1xf32, #tpu.memory_space<vmem>>, vector<200x1xf32>
    %19 = vector.broadcast %18 : vector<200x1xf32> to vector<200x1024xf32>
    %20 = arith.addf %17, %19 : vector<200x1024xf32>
    %21 = arith.truncf %20 : vector<200x1024xf32> to vector<200x1024xbf16>
    %22 = math.tanh %21 : vector<200x1024xbf16>
    %c0_15 = arith.constant 0 : index
    %c0_16 = arith.constant 0 : index
    %23 = vector.load %arg8[%c0_15, %c0_16] : memref<100x200xbf16, #tpu.memory_space<vmem>>, vector<100x200xbf16>
    %cst_17 = arith.constant dense<0.000000e+00> : vector<100x1024xf32>
    %24 = tpu.matmul %23, %22, %cst_17 {dimension_numbers = #tpu.dot_dimension_numbers<[1], [0], [0], [1], [0, 0, 1, 1], [], []>} : vector<100x200xbf16>, vector<200x1024xbf16>, vector<100x1024xf32> -> vector<100x1024xf32>
    %c0_18 = arith.constant 0 : index
    %c0_19 = arith.constant 0 : index
    %25 = vector.load %arg9[%c0_18, %c0_19] : memref<100x1xf32, #tpu.memory_space<vmem>>, vector<100x1xf32>
    %26 = vector.broadcast %25 : vector<100x1xf32> to vector<100x1024xf32>
    %27 = arith.addf %24, %26 : vector<100x1024xf32>
    %28 = arith.truncf %27 : vector<100x1024xf32> to vector<100x1024xbf16>
    %29 = math.tanh %28 : vector<100x1024xbf16>
    %c0_20 = arith.constant 0 : index
    %c0_21 = arith.constant 0 : index
    %30 = vector.load %arg10[%c0_20, %c0_21] : memref<1x100xbf16, #tpu.memory_space<vmem>>, vector<1x100xbf16>
    %cst_22 = arith.constant dense<0.000000e+00> : vector<1x1024xf32>
    %31 = tpu.matmul %30, %29, %cst_22 {dimension_numbers = #tpu.dot_dimension_numbers<[1], [0], [0], [1], [0, 0, 1, 1], [], []>} : vector<1x100xbf16>, vector<100x1024xbf16>, vector<1x1024xf32> -> vector<1x1024xf32>
    %c0_23 = arith.constant 0 : index
    %c0_24 = arith.constant 0 : index
    %32 = vector.load %arg11[%c0_23, %c0_24] : memref<1x1xf32, #tpu.memory_space<vmem>>, vector<1x1xf32>
    %33 = vector.broadcast %32 : vector<1x1xf32> to vector<1x1024xf32>
    %34 = arith.addf %31, %33 : vector<1x1024xf32>
    %c0_25 = arith.constant 0 : index
    %c0_26 = arith.constant 0 : index
    %35 = vector.load %arg12[%c0_25, %c0_26] : memref<1x1024xf32, #tpu.memory_space<vmem>>, vector<1x1024xf32>
    tpu.vector_store %arg12[%c0_25, %c0_26], %34 {strides = array<i32>} : memref<1x1024xf32, #tpu.memory_space<vmem>>, vector<1x1024xf32>,
    return
  }
  func.func @transform_0(%arg0: i32) -> (i32, i32) {
    %c0_i32 = arith.constant 0 : i32
    %c0_i32_0 = arith.constant 0 : i32
    return %arg0, %c0_i32 : i32, i32
  }
  func.func @transform_1(%arg0: i32) -> (i32, i32) {
    %c0_i32 = arith.constant 0 : i32
    %c0_i32_0 = arith.constant 0 : i32
    %c0_i32_1 = arith.constant 0 : i32
    return %c0_i32, %c0_i32_0 : i32, i32
  }
  func.func @transform_2(%arg0: i32) -> (i32, i32) {
    %c0_i32 = arith.constant 0 : i32
    %c0_i32_0 = arith.constant 0 : i32
    %c0_i32_1 = arith.constant 0 : i32
    return %c0_i32, %c0_i32_0 : i32, i32
  }
  func.func @transform_3(%arg0: i32) -> (i32, i32) {
    %c0_i32 = arith.constant 0 : i32
    %c0_i32_0 = arith.constant 0 : i32
    %c0_i32_1 = arith.constant 0 : i32
    return %c0_i32, %c0_i32_0 : i32, i32
  }
  func.func @transform_4(%arg0: i32) -> (i32, i32) {
    %c0_i32 = arith.constant 0 : i32
    %c0_i32_0 = arith.constant 0 : i32
    %c0_i32_1 = arith.constant 0 : i32
    return %c0_i32, %c0_i32_0 : i32, i32
  }
  func.func @transform_5(%arg0: i32) -> (i32, i32) {
    %c0_i32 = arith.constant 0 : i32
    %c0_i32_0 = arith.constant 0 : i32
    %c0_i32_1 = arith.constant 0 : i32
    return %c0_i32, %c0_i32_0 : i32, i32
  }
  func.func @transform_6(%arg0: i32) -> (i32, i32) {
    %c0_i32 = arith.constant 0 : i32
    %c0_i32_0 = arith.constant 0 : i32
    %c0_i32_1 = arith.constant 0 : i32
    return %c0_i32, %c0_i32_0 : i32, i32
  }
  func.func @transform_7(%arg0: i32) -> (i32, i32) {
    %c0_i32 = arith.constant 0 : i32
    %c0_i32_0 = arith.constant 0 : i32
    %c0_i32_1 = arith.constant 0 : i32
    return %c0_i32, %c0_i32_0 : i32, i32
  }
  func.func @transform_8(%arg0: i32) -> (i32, i32) {
    %c0_i32 = arith.constant 0 : i32
    %c0_i32_0 = arith.constant 0 : i32
    %c0_i32_1 = arith.constant 0 : i32
    return %c0_i32, %c0_i32_0 : i32, i32
  }
  func.func @transform_9(%arg0: i32) -> (i32, i32) {
    %c0_i32 = arith.constant 0 : i32
    %c0_i32_0 = arith.constant 0 : i32
    %c0_i32_1 = arith.constant 0 : i32
    return %c0_i32, %c0_i32_0 : i32, i32
  }
  func.func @transform_10(%arg0: i32) -> (i32, i32) {
    %c0_i32 = arith.constant 0 : i32
    %c0_i32_0 = arith.constant 0 : i32
    %c0_i32_1 = arith.constant 0 : i32
    return %c0_i32, %c0_i32_0 : i32, i32
  }
  func.func @transform_11(%arg0: i32) -> (i32, i32) {
    %c0_i32 = arith.constant 0 : i32
    %c0_i32_0 = arith.constant 0 : i32
    return %c0_i32, %arg0 : i32, i32
  }
}

</mosaic_0001>

<bundles_post_ra>
// kernel: tpu_custom_call.1
= control target key start
LH: loop header
LB: loop body
LE: loop exit
PB: predicated region body
PF: predicated region fallthrough
CT: control target
= control target key end

     0   :  { %s5556_s0 = inlined_call_operand.vmem [shape: f32[1000,4], index: 0, kind: input, shape index: {}]   ;;  %s5557_s1 = inlined_call_operand.vmem [shape: bf16[20,4], index: 1, kind: input, shape index: {}]   ;;  %s5558_s2 = inlined_call_operand.vmem [shape: f32[20,1], index: 2, kind: input, shape index: {}]   ;;  %s5559_s3 = inlined_call_operand.vmem [shape: bf16[40,20], index: 3, kind: input, shape index: {}]   ;;  %s5560_s4 = inlined_call_operand.vmem [shape: f32[40,1], index: 4, kind: input, shape index: {}]   ;;  %s5561_s5 = inlined_call_operand.vmem [shape: bf16[200,40], index: 5, kind: input, shape index: {}]   ;;  %s5562_s6 = inlined_call_operand.vmem [shape: f32[200,1], index: 6, kind: input, shape index: {}]   ;;  %s5563_s7 = inlined_call_operand.vmem [shape: bf16[100,200], index: 7, kind: input, shape index: {}]   ;;  %s5564_s8 = inlined_call_operand.vmem [shape: f32[100,1], index: 8, kind: input, shape index: {}]   ;;  %s5565_s9 = inlined_call_operand.vmem [shape: bf16[1,100], index: 9, kind: input, shape index: {}]   ;;  %s5566_s10 = inlined_call_operand.<no memory space> [shape: f32[1,1], index: 10, kind: input, shape index: {}]   ;;  %s5567_s11 = inlined_call_operand.hbm [shape: f32[1,1024], index: 11, kind: output, shape index: {}]  }
   0x1   :  { %v16_v0 = vstv %s5566_s10 }
   0x2   :  { %17 = vst [vmem:[#allocation2] sm:$0x1] %v16_v0 }
   0x3   :  { %v58_v1 = vld [vmem:[%s5556_s0 + $0x80] sm:$0xff]  ;;  %v59_v2 = vld [vmem:[%s5556_s0 + $0x88] sm:$0xff]  ;;  %vm263_vm0 = vcmask 31744   ;;  %v3949_v8 = vmov 0   ;;  %v60_v13 = vld [vmem:[%s5556_s0 + $0x90] sm:$0xff] }
   0x4   :  { %v90_v3 = vld [vmem:[%s5556_s0 + $0x180] sm:$0xff]  ;;  %v178_v4 = vpack.c.bf16 %v59_v2, %v58_v1  ;;  %v91_v5 = vld [vmem:[%s5556_s0 + $0x188] sm:$0xff]  ;;  %3484 = vset.pattern.permute.xlu0 %v3949_v8  ;;  %3485 = vset.pattern.permute.xlu1 %v3949_v8  ;;  %v61_v15 = vld [vmem:[%s5556_s0 + $0x98] sm:$0xff] }
   0x5   :  { %v42_v6 = vld [vmem:[%s5556_s0] sm:$0xff]  ;;  %v43_v7 = vld [vmem:[%s5556_s0 + $0x8] sm:$0xff]  ;;  %v194_v9 = vpack.c.bf16 %v91_v5, %v90_v3  ;;  %v92_v16 = vld [vmem:[%s5556_s0 + $0x190] sm:$0xff]  ;;  %v179_v19 = vpack.c.bf16 %v61_v15, %v60_v13 }
   0x6   :  { %v170_v10 = vpack.c.bf16 %v43_v7, %v42_v6  ;;  %v74_v11 = vld [vmem:[%s5556_s0 + $0x100] sm:$0xff]  ;;  %v75_v12 = vld [vmem:[%s5556_s0 + $0x108] sm:$0xff]  ;;  %3449 = vmatprep.subr.msk.bf16.mxu0 %vm263_vm0, %v178_v4  ;;  %v93_v17 = vld [vmem:[%s5556_s0 + $0x198] sm:$0xff] }
   0x7   :  { %v186_v14 = vpack.c.bf16 %v75_v12, %v74_v11  ;;  %3457 = vmatprep.subr.msk.bf16.mxu1 %vm263_vm0, %v194_v9  ;;  %v195_v20 = vpack.c.bf16 %v93_v17, %v92_v16  ;;  %v44_v21 = vld [vmem:[%s5556_s0 + $0x10] sm:$0xff]  ;;  %v45_v22 = vld [vmem:[%s5556_s0 + $0x18] sm:$0xff]  ;;  %v62_v28 = vld [vmem:[%s5556_s0 + $0xa0] sm:$0xff] }
   0x8   :  { %v271_v18 = vsel %vm263_vm0, %v170_v10, 0  ;;  %v76_v23 = vld [vmem:[%s5556_s0 + $0x110] sm:$0xff]  ;;  %v77_v25 = vld [vmem:[%s5556_s0 + $0x118] sm:$0xff]  ;;  %v171_v26 = vpack.c.bf16 %v45_v22, %v44_v21  ;;  %v63_v29 = vld [vmem:[%s5556_s0 + $0xa8] sm:$0xff] }
   0x9   :  { %3370 = vmatpush3.bf16.xpose.msra.mxu0 %v271_v18  ;;  %v319_v24 = vsel %vm263_vm0, %v186_v14, 0  ;;  %v187_v27 = vpack.c.bf16 %v77_v25, %v76_v23  ;;  %v94_v30 = vld [vmem:[%s5556_s0 + $0x1a0] sm:$0xff]  ;;  %v95_v31 = vld [vmem:[%s5556_s0 + $0x1a8] sm:$0xff]  ;;  %v180_v33 = vpack.c.bf16 %v63_v29, %v62_v28  ;;  %v64_v42 = vld [vmem:[%s5556_s0 + $0xb0] sm:$0xff] }
   0xa   :  { %3390 = vmatpush3.bf16.xpose.msra.mxu1 %v319_v24  ;;  %3450 = vmatprep.subr.msk.bf16.mxu0 %vm263_vm0, %v179_v19  ;;  %v274_v32 = vsel %vm263_vm0, %v171_v26, 0  ;;  %v196_v35 = vpack.c.bf16 %v95_v31, %v94_v30  ;;  %v46_v36 = vld [vmem:[%s5556_s0 + $0x20] sm:$0xff]  ;;  %v47_v37 = vld [vmem:[%s5556_s0 + $0x28] sm:$0xff]  ;;  %v65_v43 = vld [vmem:[%s5556_s0 + $0xb8] sm:$0xff] }
   0xb   :  { %3458 = vmatprep.subr.msk.bf16.mxu1 %vm263_vm0, %v195_v20  ;;  %v322_v34 = vsel %vm263_vm0, %v187_v27, 0  ;;  %v78_v38 = vld [vmem:[%s5556_s0 + $0x120] sm:$0xff]  ;;  %v79_v39 = vld [vmem:[%s5556_s0 + $0x128] sm:$0xff]  ;;  %v172_v40 = vpack.c.bf16 %v47_v37, %v46_v36  ;;  %v96_v44 = vld [vmem:[%s5556_s0 + $0x1b0] sm:$0xff]  ;;  %v181_v47 = vpack.c.bf16 %v65_v43, %v64_v42 }
   0xc   :  { %v188_v41 = vpack.c.bf16 %v79_v39, %v78_v38  ;;  %v97_v45 = vld [vmem:[%s5556_s0 + $0x1b8] sm:$0xff]  ;;  %v48_v50 = vld [vmem:[%s5556_s0 + $0x30] sm:$0xff]  ;;  %v4129_v55 = vld [vmem:[%s5557_s1] sm:$0xff]  }
   0xd   :  { %v277_v46 = vsel %vm263_vm0, %v172_v40, 0  ;;  %v197_v49 = vpack.c.bf16 %v97_v45, %v96_v44  ;;  %v49_v51 = vld [vmem:[%s5556_s0 + $0x38] sm:$0xff]  ;;  %v80_v52 = vld [vmem:[%s5556_s0 + $0x130] sm:$0xff]  ;;  %v66_v57 = vld [vmem:[%s5556_s0 + $0xc0] sm:$0xff]  ;;  %3385 = vmatprep.mubr.msk.bf16.mxu0 %vm263_vm0, %v4129_v55  ;;  %3405 = vmatprep.mubr.msk.bf16.mxu1 %vm263_vm0, %v4129_v55 }
   0xe   :  { %v325_v48 = vsel %vm263_vm0, %v188_v41, 0  ;;  %v81_v53 = vld [vmem:[%s5556_s0 + $0x138] sm:$0xff]  ;;  %v173_v54 = vpack.c.bf16 %v49_v51, %v48_v50  ;;  %v67_v58 = vld [vmem:[%s5556_s0 + $0xc8] sm:$0xff]  ;;  %v98_v59 = vld [vmem:[%s5556_s0 + $0x1c0] sm:$0xff] }
   0xf   :  { %v189_v56 = vpack.c.bf16 %v81_v53, %v80_v52  ;;  %v99_v60 = vld [vmem:[%s5556_s0 + $0x1c8] sm:$0xff]  ;;  %v182_v62 = vpack.c.bf16 %v67_v58, %v66_v57  ;;  %v50_v1 = vld [vmem:[%s5556_s0 + $0x40] sm:$0xff]  ;;  %v68_v7 = vld [vmem:[%s5556_s0 + $0xd0] sm:$0xff] }
  0x10   :  { %v280_v61 = vsel %vm263_vm0, %v173_v54, 0  ;;  %v198_v0 = vpack.c.bf16 %v99_v60, %v98_v59  ;;  %v51_v2 = vld [vmem:[%s5556_s0 + $0x48] sm:$0xff]  ;;  %v82_v3 = vld [vmem:[%s5556_s0 + $0x140] sm:$0xff]  ;;  %v69_v9 = vld [vmem:[%s5556_s0 + $0xd8] sm:$0xff] }
  0x11   :  { %3372 = vmatpush3.bf16.xpose.msra.mxu0 %v274_v32  ;;  %v328_v63 = vsel %vm263_vm0, %v189_v56, 0  ;;  %v83_v4 = vld [vmem:[%s5556_s0 + $0x148] sm:$0xff]  ;;  %v174_v5 = vpack.c.bf16 %v51_v2, %v50_v1  ;;  %v100_v10 = vld [vmem:[%s5556_s0 + $0x1d0] sm:$0xff]  ;;  %v101_v11 = vld [vmem:[%s5556_s0 + $0x1d8] sm:$0xff]  ;;  %v183_v14 = vpack.c.bf16 %v69_v9, %v68_v7 }
  0x12   :  { %3392 = vmatpush3.bf16.xpose.msra.mxu1 %v322_v34  ;;  %3451 = vmatprep.subr.msk.bf16.mxu0 %vm263_vm0, %v180_v33  ;;  %v190_v6 = vpack.c.bf16 %v83_v4, %v82_v3  ;;  %v237_v12 = vld [vmem:[%s5558_s2] sm:$0xff]  ;;  %v199_v16 = vpack.c.bf16 %v101_v11, %v100_v10  ;;  %v52_v17 = vld [vmem:[%s5556_s0 + $0x50] sm:$0xff]  ;;  %v53_v18 = vld [vmem:[%s5556_s0 + $0x58] sm:$0xff] }
  0x13   :  { %3459 = vmatprep.subr.msk.bf16.mxu1 %vm263_vm0, %v196_v35  ;;  %v283_v13 = vsel %vm263_vm0, %v174_v5, 0  ;;  %242 = vperm.xlu0 %3484, %v237_v12   ;;  %v84_v19 = vld [vmem:[%s5556_s0 + $0x150] sm:$0xff]  ;;  %v85_v20 = vld [vmem:[%s5556_s0 + $0x158] sm:$0xff]  ;;  %v238_v21 = vld [vmem:[%s5558_s2 + $0x8] sm:$0xff]  ;;  %v175_v22 = vpack.c.bf16 %v53_v18, %v52_v17 }
  0x14   :  { %v331_v15 = vsel %vm263_vm0, %v190_v6, 0  ;;  %v191_v23 = vpack.c.bf16 %v85_v20, %v84_v19  ;;  %v70_v24 = vld [vmem:[%s5556_s0 + $0xe0] sm:$0xff]  ;;  %v71_v25 = vld [vmem:[%s5556_s0 + $0xe8] sm:$0xff]  ;;  %v239_v29 = vld [vmem:[%s5558_s2 + $0x10] sm:$0xf] }
  0x15   :  { %v102_v26 = vld [vmem:[%s5556_s0 + $0x1e0] sm:$0xff]  ;;  %v103_v27 = vld [vmem:[%s5556_s0 + $0x1e8] sm:$0xff]  ;;  %252 = vperm.xlu1 %3485, %v239_v29   ;;  %v286_v30 = vsel %vm263_vm0, %v175_v22, 0  ;;  %v184_v31 = vpack.c.bf16 %v71_v25, %v70_v24  ;;  %v706_v39 = vld [vmem:[%s5560_s4 + $0x18] sm:$0xff] }
  0x16   :  { %v704_v28 = vld [vmem:[%s5560_s4 + $0x8] sm:$0xff]  ;;  %v703_v32 = vld [vmem:[%s5560_s4] sm:$0xff]  ;;  %v334_v33 = vsel %vm263_vm0, %v191_v23, 0  ;;  %v200_v34 = vpack.c.bf16 %v103_v27, %v102_v26  ;;  %v705_v41 = vld [vmem:[%s5560_s4 + $0x10] sm:$0xff] }
  0x17   :  { %247 = vperm.xlu0 %3484, %v238_v21   ;;  %v54_v35 = vld [vmem:[%s5556_s0 + $0x60] sm:$0xff]  ;;  %v55_v36 = vld [vmem:[%s5556_s0 + $0x68] sm:$0xff]  ;;  %v72_v43 = vld [vmem:[%s5556_s0 + $0xf0] sm:$0xff] }
  0x18   :  { %v86_v37 = vld [vmem:[%s5556_s0 + $0x160] sm:$0xff]  ;;  %v87_v38 = vld [vmem:[%s5556_s0 + $0x168] sm:$0xff]  ;;  %v176_v40 = vpack.c.bf16 %v55_v36, %v54_v35  ;;  %v73_v44 = vld [vmem:[%s5556_s0 + $0xf8] sm:$0xff] }
  0x19   :  { %3374 = vmatpush3.bf16.xpose.msra.mxu0 %v277_v46  ;;  %710 = vperm.xlu1 %3485, %v703_v32   ;;  %v192_v42 = vpack.c.bf16 %v87_v38, %v86_v37  ;;  %v104_v45 = vld [vmem:[%s5556_s0 + $0x1f0] sm:$0xff]  ;;  %v105_v46 = vld [vmem:[%s5556_s0 + $0x1f8] sm:$0xff]  ;;  %v185_v50 = vpack.c.bf16 %v73_v44, %v72_v43  ;;  %v707_v53 = vld [vmem:[%s5560_s4 + $0x20] sm:$0xff] }
  0x1a   :  { %3394 = vmatpush3.bf16.xpose.msra.mxu1 %v325_v48  ;;  %3452 = vmatprep.subr.msk.bf16.mxu0 %vm263_vm0, %v181_v47  ;;  %v1098_v47 = vld [vmem:[%s5562_s6] sm:$0xff]  ;;  %v56_v48 = vld [vmem:[%s5556_s0 + $0x70] sm:$0xff]  ;;  %v57_v51 = vld [vmem:[%s5556_s0 + $0x78] sm:$0xff]  ;;  %v201_v56 = vpack.c.bf16 %v105_v46, %v104_v45 }
  0x1b   :  { %3460 = vmatprep.subr.msk.bf16.mxu1 %vm263_vm0, %v197_v49  ;;  %715 = vperm.xlu0 %3484, %v704_v28   ;;  %v289_v49 = vsel %vm263_vm0, %v176_v40, 0  ;;  %v88_v52 = vld [vmem:[%s5556_s0 + $0x170] sm:$0xff]  ;;  %v337_v54 = vsel %vm263_vm0, %v192_v42, 0  ;;  %v89_v57 = vld [vmem:[%s5556_s0 + $0x178] sm:$0xff]  ;;  %v106_v58 = vld [vmem:[%s5556_s0 + $0x200] sm:$0xff] }
  0x1c   :  { %v107_v59 = vld [vmem:[%s5556_s0 + $0x208] sm:$0xff]  ;;  %v138_v60 = vld [vmem:[%s5556_s0 + $0x300] sm:$0xff]  ;;  %v193_v1 = vpack.c.bf16 %v89_v57, %v88_v52  ;;  %v1101_v12 = vld [vmem:[%s5562_s6 + $0x18] sm:$0xff] }
  0x1d   :  { %720 = vperm.xlu1 %3485, %v705_v41   ;;  %v122_v2 = vld [vmem:[%s5556_s0 + $0x280] sm:$0xff]  ;;  %v123_v3 = vld [vmem:[%s5556_s0 + $0x288] sm:$0xff]  ;;  %v202_v4 = vpack.c.bf16 %v107_v59, %v106_v58  ;;  %v1104_v17 = vld [vmem:[%s5562_s6 + $0x30] sm:$0xff] }
  0x1e   :  { %v154_v6 = vld [vmem:[%s5556_s0 + $0x380] sm:$0xff]  ;;  %v155_v7 = vld [vmem:[%s5556_s0 + $0x388] sm:$0xff]  ;;  %v210_v11 = vpack.c.bf16 %v123_v3, %v122_v2  ;;  %v124_v19 = vld [vmem:[%s5556_s0 + $0x290] sm:$0xff] }
  0x1f   :  { %725 = vperm.xlu0 %3484, %v706_v39   ;;  %v1102_v9 = vld [vmem:[%s5562_s6 + $0x20] sm:$0xff]  ;;  %v1103_v18 = vld [vmem:[%s5562_s6 + $0x28] sm:$0xff]  ;;  %v125_v20 = vld [vmem:[%s5556_s0 + $0x298] sm:$0xff] }
  0x20   :  { %v1106_v21 = vld [vmem:[%s5562_s6 + $0x40] sm:$0xff]  ;;  %v156_v22 = vld [vmem:[%s5556_s0 + $0x390] sm:$0xff]  ;;  %v157_v23 = vld [vmem:[%s5556_s0 + $0x398] sm:$0xff]  ;;  %v211_v29 = vpack.c.bf16 %v125_v20, %v124_v19 }
  0x21   :  { %3376 = vmatpush3.bf16.xpose.msra.mxu0 %v280_v61  ;;  %v139_v61 = vld [vmem:[%s5556_s0 + $0x308] sm:$0xff]  ;;  %730 = vperm.xlu1 %3485, %v707_v53   ;;  %v108_v25 = vld [vmem:[%s5556_s0 + $0x210] sm:$0xff]  ;;  %v109_v26 = vld [vmem:[%s5556_s0 + $0x218] sm:$0xff] }
  0x22   :  { %3396 = vmatpush3.bf16.xpose.msra.mxu1 %v328_v63  ;;  %3453 = vmatprep.subr.msk.bf16.mxu0 %vm263_vm0, %v182_v62  ;;  %v1100_v62 = vld [vmem:[%s5562_s6 + $0x10] sm:$0xff]  ;;  %v177_v63 = vpack.c.bf16 %v57_v51, %v56_v48  ;;  %v218_v5 = vpack.c.bf16 %v139_v61, %v138_v60  ;;  %v4341_v24 = vld [vmem:[%s5557_s1 + $0x8] ss:$0 sps:$4 sm:$0x33]   ;;  %v141_v28 = vld [vmem:[%s5556_s0 + $0x318] sm:$0xff]  ;;  %v203_v35 = vpack.c.bf16 %v109_v26, %v108_v25 }
  0x23   :  { %3461 = vmatprep.subr.msk.bf16.mxu1 %vm263_vm0, %v198_v0  ;;  %1125 = vperm.xlu0 %3484, %v1098_v47   ;;  %v1099_v0 = vld [vmem:[%s5562_s6 + $0x8] sm:$0xff]  ;;  %v140_v27 = vld [vmem:[%s5556_s0 + $0x310] sm:$0xff]  ;;  %v1105_v32 = vld [vmem:[%s5562_s6 + $0x38] sm:$0xff] }
  0x24   :  { %v292_v10 = vsel %vm263_vm0, %v177_v63, 0  ;;  %v158_v36 = vld [vmem:[%s5556_s0 + $0x3a0] sm:$0xff]  ;;  %v159_v37 = vld [vmem:[%s5556_s0 + $0x3a8] sm:$0xff]  ;;  %v219_v38 = vpack.c.bf16 %v141_v28, %v140_v27  ;;  %v370_v40 = vsel %vm263_vm0, %v203_v35, 0 }
  0x25   :  { %1130 = vperm.xlu1 %3485, %v1099_v0   ;;  %v1110_v39 = vld [vmem:[%s5562_s6 + $0x60] sm:$0xff] }
  0x27   :  { %1135 = vperm.xlu0 %3484, %v1100_v62  }
  0x29   :  { %3378 = vmatpush3.bf16.xpose.msra.mxu0 %v283_v13  ;;  %v340_v13 = vsel %vm263_vm0, %v193_v1, 0  ;;  %1140 = vperm.xlu1 %3485, %v1101_v12  }
  0x2a   :  { %3398 = vmatpush3.bf16.xpose.msra.mxu1 %v331_v15  ;;  %3454 = vmatprep.subr.msk.bf16.mxu0 %vm263_vm0, %v183_v14  ;;  %v226_v14 = vpack.c.bf16 %v155_v7, %v154_v6  ;;  %v367_v15 = vsel %vm263_vm0, %v202_v4, 0 }
  0x2b   :  { %3462 = vmatprep.subr.msk.bf16.mxu1 %vm263_vm0, %v199_v16  ;;  %v415_v16 = vsel %vm263_vm0, %v218_v5, 0  ;;  %1145 = vperm.xlu0 %3484, %v1102_v9  }
  0x2d   :  { %1150 = vperm.xlu1 %3485, %v1103_v18  }
  0x2f   :  { %1155 = vperm.xlu0 %3484, %v1104_v17  }
  0x31   :  { %3380 = vmatpush3.bf16.xpose.msra.mxu0 %v286_v30  ;;  %v1108_v30 = vld [vmem:[%s5562_s6 + $0x50] sm:$0xff]  ;;  %1160 = vperm.xlu1 %3485, %v1105_v32  }
  0x32   :  { %3400 = vmatpush3.bf16.xpose.msra.mxu1 %v334_v33  ;;  %3455 = vmatprep.subr.msk.bf16.mxu0 %vm263_vm0, %v184_v31  ;;  %v227_v31 = vpack.c.bf16 %v157_v23, %v156_v22  ;;  %v126_v33 = vld [vmem:[%s5556_s0 + $0x2a0] sm:$0xff] }
  0x33   :  { %3463 = vmatprep.subr.msk.bf16.mxu1 %vm263_vm0, %v200_v34  ;;  %1165 = vperm.xlu0 %3484, %v1106_v21   ;;  %v127_v34 = vld [vmem:[%s5556_s0 + $0x2a8] sm:$0xff] }
  0x34   :  { %v212_v41 = vpack.c.bf16 %v127_v34, %v126_v33 }
  0x37   :  { %1175 = vperm.xlu0 %3484, %v1108_v30  }
  0x39   :  { %3382 = vmatpush3.bf16.xpose.msra.mxu0 %v289_v49 }
  0x3a   :  { %3402 = vmatpush3.bf16.xpose.msra.mxu1 %v337_v54  ;;  %3456 = vmatprep.subr.msk.bf16.mxu0 %vm263_vm0, %v185_v50 }
  0x3b   :  { %3464 = vmatprep.subr.msk.bf16.mxu1 %vm263_vm0, %v201_v56 }
  0x41   :  { %3384 = vmatpush3.bf16.xpose.msra.mxu0 %v292_v10 }
  0x42   :  { %3404 = vmatpush3.bf16.xpose.msra.mxu1 %v340_v13  ;;  %3465 = vmatprep.subr.msk.bf16.mxu0 %vm263_vm0, %v210_v11 }
  0x43   :  { %3473 = vmatprep.subr.msk.bf16.mxu1 %vm263_vm0, %v226_v14 }
  0x48   :  { %3386 = vmatmul.mubr.msk.bf16.vlgmr.msra.gmra.mrb[0].mxu0 %vm263_vm0, %v4129_v55 }
  0x49   :  { %3406 = vmatmul.mubr.msk.bf16.vlgmr.msra.gmra.mrb[0].mxu1 %vm263_vm0, %v4129_v55  ;;  %3410 = vmatpush3.bf16.xpose.msra.mxu0 %v367_v15 }
  0x4a   :  { %3430 = vmatpush3.bf16.xpose.msra.mxu1 %v415_v16  ;;  %3387 = vmatprep.mubr.msk.bf16.mxu0 %vm263_vm0, %v4341_v24 }
  0x4b   :  { %3407 = vmatprep.mubr.msk.bf16.mxu1 %vm263_vm0, %v4341_v24  ;;  %3466 = vmatprep.subr.msk.bf16.mxu0 %vm263_vm0, %v211_v29 }
  0x4c   :  { %3474 = vmatprep.subr.msk.bf16.mxu1 %vm263_vm0, %v227_v31 }
  0x4d   :  { %18 = vsyncpa [#allocation4], 0  ;;  %v418_v42 = vsel %vm263_vm0, %v219_v38, 0  ;;  %v228_v43 = vpack.c.bf16 %v159_v37, %v158_v36  ;;  %v110_v44 = vld [vmem:[%s5556_s0 + $0x220] sm:$0xff]  ;;  %v111_v45 = vld [vmem:[%s5556_s0 + $0x228] sm:$0xff]  ;;  %1185 = vperm.xlu0 %3484, %v1110_v39   ;;  %vm756_vm1 = vcmask 1041408  }
  0x4e   :  { %v142_v46 = vld [vmem:[%s5556_s0 + $0x320] sm:$0xff]  ;;  %v143_v47 = vld [vmem:[%s5556_s0 + $0x328] sm:$0xff]  ;;  %v1112_v48 = vld [vmem:[%s5562_s6 + $0x70] sm:$0xff]  ;;  %v204_v49 = vpack.c.bf16 %v111_v45, %v110_v44  ;;  %vm746_vm2 = vcmask 162816   ;;  %vm1351_vm3 = vcmask 1043456   ;;  %vm1311_vm4 = vcmask 326656  }
  0x4f   :  { %v1107_v50 = vld [vmem:[%s5562_s6 + $0x48] sm:$0xff]  ;;  %v220_v51 = vpack.c.bf16 %v143_v47, %v142_v46  ;;  %v128_v52 = vld [vmem:[%s5556_s0 + $0x2b0] sm:$0xff]  ;;  %v129_v53 = vld [vmem:[%s5556_s0 + $0x2b8] sm:$0xff]  ;;  %vm2379_vm5 = vcmask 588800   ;;  %vm2952_vm6 = vcmask 818176  }
  0x50   :  { %3388 = vmatmul.mubr.msk.bf16.gmra.mrb[4].mxu0 %vm263_vm0, %v4341_v24  ;;  %v160_v54 = vld [vmem:[%s5556_s0 + $0x3b0] sm:$0xff]  ;;  %v161_v56 = vld [vmem:[%s5556_s0 + $0x3b8] sm:$0xff]  ;;  %1170 = vperm.xlu1 %3485, %v1107_v50   ;;  %v1114_v57 = vld [vmem:[%s5562_s6 + $0x80] sm:$0xff]  ;;  %v373_v58 = vsel %vm263_vm0, %v204_v49, 0  ;;  %v213_v59 = vpack.c.bf16 %v129_v53, %v128_v52 }
  0x51   :  { %3408 = vmatmul.mubr.msk.bf16.gmra.mrb[4].mxu1 %vm263_vm0, %v4341_v24  ;;  %3412 = vmatpush3.bf16.xpose.msra.mxu0 %v370_v40  ;;  %v1109_v60 = vld [vmem:[%s5562_s6 + $0x58] sm:$0xff]  ;;  %v421_v61 = vsel %vm263_vm0, %v220_v51, 0  ;;  %v229_v62 = vpack.c.bf16 %v161_v56, %v160_v54  ;;  %v112_v63 = vld [vmem:[%s5556_s0 + $0x230] sm:$0xff]  ;;  %v1111_v5 = vld [vmem:[%s5562_s6 + $0x68] sm:$0xff] }
  0x52   :  { %3432 = vmatpush3.bf16.xpose.msra.mxu1 %v418_v42  ;;  %3467 = vmatprep.subr.msk.bf16.mxu0 %vm263_vm0, %v212_v41  ;;  %v113_v0 = vld [vmem:[%s5556_s0 + $0x238] sm:$0xff]  ;;  %v144_v1 = vld [vmem:[%s5556_s0 + $0x330] sm:$0xff]  ;;  %v130_v7 = vld [vmem:[%s5556_s0 + $0x2c0] sm:$0xff] }
  0x53   :  { %3475 = vmatprep.subr.msk.bf16.mxu1 %vm263_vm0, %v228_v43  ;;  %3425 = vmatprep.mubr.msk.bf16.mxu0 %vm263_vm0, %v4129_v55  ;;  %v145_v2 = vld [vmem:[%s5556_s0 + $0x338] sm:$0xff]  ;;  %v1116_v3 = vld [vmem:[%s5562_s6 + $0x90] sm:$0xff]  ;;  %v205_v4 = vpack.c.bf16 %v113_v0, %v112_v63  ;;  %v131_v9 = vld [vmem:[%s5556_s0 + $0x2c8] sm:$0xff] }
  0x54   :  { %3445 = vmatprep.mubr.msk.bf16.mxu1 %vm263_vm0, %v4129_v55  ;;  %1195 = vperm.xlu0 %3484, %v1112_v48   ;;  %v221_v6 = vpack.c.bf16 %v145_v2, %v144_v1  ;;  %v162_v10 = vld [vmem:[%s5556_s0 + $0x3c0] sm:$0xff]  ;;  %v163_v11 = vld [vmem:[%s5556_s0 + $0x3c8] sm:$0xff]  ;;  %v214_v14 = vpack.c.bf16 %v131_v9, %v130_v7  ;;  %v1113_v15 = vld [vmem:[%s5562_s6 + $0x78] sm:$0xff] }
  0x55   :  { %1180 = vperm.xlu1 %3485, %v1109_v60   ;;  %v1118_v12 = vld [vmem:[%s5562_s6 + $0xa0] sm:$0xff]  ;;  %v376_v13 = vsel %vm263_vm0, %v205_v4, 0  ;;  %v230_v17 = vpack.c.bf16 %v163_v11, %v162_v10  ;;  %v115_v19 = vld [vmem:[%s5556_s0 + $0x248] sm:$0xff]  ;;  %v1120_v22 = vld [vmem:[%s5562_s6 + $0xb0] sm:$0xff] }
  0x56   :  { %v424_v16 = vsel %vm263_vm0, %v221_v6, 0  ;;  %v114_v18 = vld [vmem:[%s5556_s0 + $0x240] sm:$0xff]  ;;  %v147_v21 = vld [vmem:[%s5556_s0 + $0x348] sm:$0xff]  ;;  %v132_v27 = vld [vmem:[%s5556_s0 + $0x2d0] sm:$0xff] }
  0x57   :  { %v146_v20 = vld [vmem:[%s5556_s0 + $0x340] sm:$0xff]  ;;  %v206_v23 = vpack.c.bf16 %v115_v19, %v114_v18  ;;  %v1115_v25 = vld [vmem:[%s5562_s6 + $0x88] sm:$0xff]  ;;  %v133_v28 = vld [vmem:[%s5556_s0 + $0x2d8] sm:$0xff] }
  0x58   :  { %1205 = vperm.xlu0 %3484, %v1114_v57   ;;  %v222_v26 = vpack.c.bf16 %v147_v21, %v146_v20  ;;  %v164_v29 = vld [vmem:[%s5556_s0 + $0x3d0] sm:$0xff]  ;;  %v165_v30 = vld [vmem:[%s5556_s0 + $0x3d8] sm:$0xff]  ;;  %v1122_v31 = vld [vmem:[%s5562_s6 + $0xc0] sm:$0xff]  ;;  %v215_v33 = vpack.c.bf16 %v133_v28, %v132_v27 }
  0x59   :  { %3414 = vmatpush3.bf16.xpose.msra.mxu0 %v373_v58  ;;  %1190 = vperm.xlu1 %3485, %v1111_v5   ;;  %v379_v32 = vsel %vm263_vm0, %v206_v23, 0  ;;  %v1117_v34 = vld [vmem:[%s5562_s6 + $0x98] sm:$0xff]  ;;  %v231_v36 = vpack.c.bf16 %v165_v30, %v164_v29  ;;  %v116_v37 = vld [vmem:[%s5556_s0 + $0x250] sm:$0xff]  ;;  %v2242_v41 = vld [vmem:[%s5564_s8 + $0x8] sm:$0xff] }
  0x5a   :  { %3434 = vmatpush3.bf16.xpose.msra.mxu1 %v421_v61  ;;  %3468 = vmatprep.subr.msk.bf16.mxu0 %vm263_vm0, %v213_v59  ;;  %v427_v35 = vsel %vm263_vm0, %v222_v26, 0  ;;  %v117_v38 = vld [vmem:[%s5556_s0 + $0x258] sm:$0xff]  ;;  %v148_v39 = vld [vmem:[%s5556_s0 + $0x350] sm:$0xff]  ;;  %v1119_v43 = vld [vmem:[%s5562_s6 + $0xa8] sm:$0xff] }
  0x5b   :  { %3476 = vmatprep.subr.msk.bf16.mxu1 %vm263_vm0, %v229_v62  ;;  %v149_v40 = vld [vmem:[%s5556_s0 + $0x358] sm:$0xff]  ;;  %v207_v42 = vpack.c.bf16 %v117_v38, %v116_v37  ;;  %v134_v45 = vld [vmem:[%s5556_s0 + $0x2e0] sm:$0xff]  ;;  %v135_v46 = vld [vmem:[%s5556_s0 + $0x2e8] sm:$0xff] }
  0x5c   :  { %1215 = vperm.xlu0 %3484, %v1116_v3   ;;  %v223_v44 = vpack.c.bf16 %v149_v40, %v148_v39  ;;  %v166_v47 = vld [vmem:[%s5556_s0 + $0x3e0] sm:$0xff]  ;;  %v167_v48 = vld [vmem:[%s5556_s0 + $0x3e8] sm:$0xff]  ;;  %v2244_v49 = vld [vmem:[%s5564_s8 + $0x18] sm:$0xff]  ;;  %v216_v51 = vpack.c.bf16 %v135_v46, %v134_v45 }
  0x5d   :  { %1200 = vperm.xlu1 %3485, %v1113_v15   ;;  %v382_v50 = vsel %vm263_vm0, %v207_v42, 0  ;;  %v1121_v52 = vld [vmem:[%s5562_s6 + $0xb8] sm:$0xff]  ;;  %v232_v54 = vpack.c.bf16 %v167_v48, %v166_v47  ;;  %v118_v56 = vld [vmem:[%s5556_s0 + $0x260] sm:$0xff]  ;;  %v119_v57 = vld [vmem:[%s5556_s0 + $0x268] sm:$0xff] }
  0x5e   :  { %v430_v53 = vsel %vm263_vm0, %v223_v44, 0  ;;  %v150_v58 = vld [vmem:[%s5556_s0 + $0x360] sm:$0xff]  ;;  %v151_v59 = vld [vmem:[%s5556_s0 + $0x368] sm:$0xff]  ;;  %v208_v61 = vpack.c.bf16 %v119_v57, %v118_v56  ;;  %v136_v0 = vld [vmem:[%s5556_s0 + $0x2f0] sm:$0xff] }
  0x5f   :  { %v2246_v60 = vld [vmem:[%s5564_s8 + $0x28] sm:$0xff]  ;;  %v2241_v62 = vld [vmem:[%s5564_s8] sm:$0xff]  ;;  %v224_v63 = vpack.c.bf16 %v151_v59, %v150_v58  ;;  %v137_v1 = vld [vmem:[%s5556_s0 + $0x2f8] sm:$0xff] }
  0x60   :  { %1225 = vperm.xlu0 %3484, %v1118_v12   ;;  %v168_v2 = vld [vmem:[%s5556_s0 + $0x3f0] sm:$0xff]  ;;  %v169_v3 = vld [vmem:[%s5556_s0 + $0x3f8] sm:$0xff]  ;;  %v385_v5 = vsel %vm263_vm0, %v208_v61, 0  ;;  %v217_v6 = vpack.c.bf16 %v137_v1, %v136_v0  ;;  %v2250_v15 = vld [vmem:[%s5564_s8 + $0x48] sm:$0xff] }
  0x61   :  { %3416 = vmatpush3.bf16.xpose.msra.mxu0 %v376_v13  ;;  %1210 = vperm.xlu1 %3485, %v1115_v25   ;;  %v2248_v4 = vld [vmem:[%s5564_s8 + $0x38] sm:$0xff]  ;;  %v2243_v7 = vld [vmem:[%s5564_s8 + $0x10] sm:$0xff]  ;;  %v433_v9 = vsel %vm263_vm0, %v224_v63, 0  ;;  %v233_v10 = vpack.c.bf16 %v169_v3, %v168_v2  ;;  %v2942_v23 = vld [vmem:[#allocation2] sm:$0x1] }
  0x62   :  { %3436 = vmatpush3.bf16.xpose.msra.mxu1 %v424_v16  ;;  %3469 = vmatprep.subr.msk.bf16.mxu0 %vm263_vm0, %v214_v14  ;;  %v120_v11 = vld [vmem:[%s5556_s0 + $0x270] sm:$0xff]  ;;  %v121_v12 = vld [vmem:[%s5556_s0 + $0x278] sm:$0xff]  ;;  %v2249_v25 = vld [vmem:[%s5564_s8 + $0x40] sm:$0xff] }
  0x63   :  { %3477 = vmatprep.subr.msk.bf16.mxu1 %vm263_vm0, %v230_v17  ;;  %v152_v13 = vld [vmem:[%s5556_s0 + $0x370] sm:$0xff]  ;;  %v153_v14 = vld [vmem:[%s5556_s0 + $0x378] sm:$0xff]  ;;  %v209_v16 = vpack.c.bf16 %v121_v12, %v120_v11  ;;  %v2245_v17 = vld [vmem:[%s5564_s8 + $0x20] sm:$0xff] }
  0x64   :  { %1235 = vperm.xlu0 %3484, %v1120_v22   ;;  %v225_v18 = vpack.c.bf16 %v153_v14, %v152_v13  ;;  %v2252_v19 = vld [vmem:[%s5564_s8 + $0x58] sm:$0xff]  ;;  %v2247_v21 = vld [vmem:[%s5564_s8 + $0x30] sm:$0xff]  ;;  %v2253_v27 = vld [vmem:[%s5564_s8 + $0x60] sm:$0xf] }
  0x65   :  { %1220 = vperm.xlu1 %3485, %v1117_v34   ;;  %v388_v20 = vsel %vm263_vm0, %v209_v16, 0  ;;  %v2251_v26 = vld [vmem:[%s5564_s8 + $0x50] sm:$0xff]  ;;  %v4671_v13 = vld [vmem:[%s5559_s3] sm:$0xff]   ;;  %v4683_v14 = vld [vmem:[%s5559_s3 + $0x8] sm:$0xff]  }
  0x66   :  { %v436_v22 = vsel %vm263_vm0, %v225_v18, 0 }
  0x68   :  { %1245 = vperm.xlu0 %3484, %v1122_v31  }
  0x69   :  { %3418 = vmatpush3.bf16.xpose.msra.mxu0 %v379_v32  ;;  %1230 = vperm.xlu1 %3485, %v1119_v43  }
  0x6a   :  { %3438 = vmatpush3.bf16.xpose.msra.mxu1 %v427_v35  ;;  %3470 = vmatprep.subr.msk.bf16.mxu0 %vm263_vm0, %v215_v33 }
  0x6b   :  { %3478 = vmatprep.subr.msk.bf16.mxu1 %vm263_vm0, %v231_v36 }
  0x6c   :  { %2261 = vperm.xlu0 %3484, %v2242_v41  }
  0x6d   :  { %1240 = vperm.xlu1 %3485, %v1121_v52  }
  0x70   :  { %2271 = vperm.xlu0 %3484, %v2244_v49  }
  0x71   :  { %3420 = vmatpush3.bf16.xpose.msra.mxu0 %v382_v50  ;;  %2256 = vperm.xlu1 %3485, %v2241_v62  }
  0x72   :  { %3440 = vmatpush3.bf16.xpose.msra.mxu1 %v430_v53  ;;  %3471 = vmatprep.subr.msk.bf16.mxu0 %vm263_vm0, %v216_v51 }
  0x73   :  { %3479 = vmatprep.subr.msk.bf16.mxu1 %vm263_vm0, %v232_v54 }
  0x74   :  { %2281 = vperm.xlu0 %3484, %v2246_v60  }
  0x75   :  { %2266 = vperm.xlu1 %3485, %v2243_v7  }
  0x78   :  { %2291 = vperm.xlu0 %3484, %v2248_v4  }
  0x79   :  { %3422 = vmatpush3.bf16.xpose.msra.mxu0 %v385_v5  ;;  %2276 = vperm.xlu1 %3485, %v2245_v17  }
  0x7a   :  { %3442 = vmatpush3.bf16.xpose.msra.mxu1 %v433_v9  ;;  %3472 = vmatprep.subr.msk.bf16.mxu0 %vm263_vm0, %v217_v6 }
  0x7b   :  { %3480 = vmatprep.subr.msk.bf16.mxu1 %vm263_vm0, %v233_v10 }
  0x7c   :  { %2301 = vperm.xlu0 %3484, %v2250_v15   ;;  %v4694_v15 = vld [vmem:[%s5559_s3 + $0x10] ss:$0 sps:$4 sm:$0xff]  }
  0x7d   :  { %2286 = vperm.xlu1 %3485, %v2247_v21  }
  0x80   :  { %2311 = vperm.xlu0 %3484, %v2252_v19  }
  0x81   :  { %3424 = vmatpush3.bf16.xpose.msra.mxu0 %v388_v20  ;;  %2296 = vperm.xlu1 %3485, %v2249_v25  }
  0x82   :  { %3444 = vmatpush3.bf16.xpose.msra.mxu1 %v436_v22 }
  0x84   :  { %2945 = vperm.xlu0 %3484, %v2942_v23  }
  0x85   :  { %2306 = vperm.xlu1 %3485, %v2251_v26  }
  0x88   :  { %3426 = vmatmul.mubr.msk.bf16.vlgmr.msra.gmra.mrb[8].mxu0 %vm263_vm0, %v4129_v55 }
  0x89   :  { %3446 = vmatmul.mubr.msk.bf16.vlgmr.msra.gmra.mrb[8].mxu1 %vm263_vm0, %v4129_v55  ;;  %3427 = vmatprep.mubr.msk.bf16.mxu0 %vm263_vm0, %v4341_v24 }
  0x8a   :  { %3447 = vmatprep.mubr.msk.bf16.mxu1 %vm263_vm0, %v4341_v24  ;;  %2316 = vperm.xlu1 %3485, %v2253_v27  }
  0x90   :  { %3428 = vmatmul.mubr.msk.bf16.gmra.mrb[12].mxu0 %vm263_vm0, %v4341_v24 }
  0x91   :  { %3448 = vmatmul.mubr.msk.bf16.gmra.mrb[12].mxu1 %vm263_vm0, %v4341_v24  ;;  %813 = vmatprep.mubr.bf16.mxu0 %v3949_v8 }
  0x92   :  { %874 = vmatprep.mubr.bf16.mxu1 %v3949_v8  ;;  %v4647_v55 = vpop.permute.xlu0 %242 }
  0x94   :  { %v4659_v48 = vpop.permute.xlu1 %252 }
  0x96   :  { %v4649_v28 = vpop.permute.xlu0 %247 }
 0x11b   :  { %v496_v29 = vpop.f32.mrb[0].mxu0 }
 0x11c   :  { %v547_v30 = vpop.f32.mrb[0].mxu1  ;;  %v498_v31 = vpop.f32.mrb[1].mxu0  ;;  %v497_v34 = vadd.f32 %v496_v29, %v4647_v55 }
 0x11d   :  { %v549_v32 = vpop.f32.mrb[1].mxu1  ;;  %v500_v33 = vpop.f32.mrb[2].mxu0  ;;  %v548_v24 = vadd.f32 %v547_v30, %v4647_v55  ;;  %v499_v38 = vadd.f32 %v498_v31, %v4647_v55 }
 0x11e   :  { %v501_v35 = vadd.f32 %v500_v33, %v4649_v28  ;;  %v551_v36 = vpop.f32.mrb[2].mxu1  ;;  %v502_v37 = vpop.f32.mrb[3].mxu0  ;;  %v550_v42 = vadd.f32 %v549_v32, %v4647_v55 }
 0x11f   :  { %v552_v39 = vadd.f32 %v551_v36, %v4649_v28  ;;  %v503_v40 = vadd.f32 %v502_v37, %v4649_v28  ;;  %v553_v41 = vpop.f32.mrb[3].mxu1 }
 0x120   :  { %v666_v43 = vpack.c.bf16 %v501_v35, %v497_v34  ;;  %v554_v44 = vadd.f32 %v553_v41, %v4649_v28 }
 0x121   :  { %v668_v45 = vpack.c.bf16 %v552_v39, %v548_v24  ;;  %v667_v46 = vpack.c.bf16 %v503_v40, %v499_v38 }
 0x122   :  { %v669_v47 = vpack.c.bf16 %v554_v44, %v550_v42  ;;  %3524 = vtanh.bf16 %v666_v43 }
 0x123   :  { %v506_v49 = vpop.f32.mrb[4].mxu0  ;;  %3526 = vtanh.bf16 %v667_v46 }
 0x124   :  { %v507_v50 = vadd.f32 %v506_v49, %v4659_v48  ;;  %v557_v51 = vpop.f32.mrb[4].mxu1  ;;  %v508_v52 = vpop.f32.mrb[5].mxu0  ;;  %3528 = vtanh.bf16 %v669_v47 }
 0x125   :  { %v558_v53 = vadd.f32 %v557_v51, %v4659_v48  ;;  %v509_v54 = vadd.f32 %v508_v52, %v4659_v48  ;;  %v559_v56 = vpop.f32.mrb[5].mxu1  ;;  %v510_v57 = vpop.f32.mrb[6].mxu0  ;;  %3530 = vtanh.bf16 %v668_v45 }
 0x126   :  { %v674_v58 = vpack.c.bf16 %v507_v50, %v507_v50  ;;  %v560_v59 = vadd.f32 %v559_v56, %v4659_v48  ;;  %v561_v60 = vpop.f32.mrb[6].mxu1  ;;  %v511_v61 = vpop.f32.mrb[7].mxu0 }
 0x127   :  { %v676_v62 = vpack.c.bf16 %v558_v53, %v558_v53  ;;  %v675_v63 = vpack.c.bf16 %v509_v54, %v509_v54  ;;  %v562_v0 = vpop.f32.mrb[7].mxu1 }
 0x128   :  { %3532 = vtanh.bf16 %v674_v58  ;;  %v677_v1 = vpack.c.bf16 %v560_v59, %v560_v59 }
 0x129   :  { %3534 = vtanh.bf16 %v676_v62  ;;  %v4736_v62 = vpop.permute.xlu0 %715 }
 0x12a   :  { %3536 = vtanh.bf16 %v675_v63  ;;  %v4738_v63 = vpop.permute.xlu1 %710 }
 0x12b   :  { %3538 = vtanh.bf16 %v677_v1 }
 0x12d   :  { %v3525_v2 = vpop.eup %3524 }
 0x12e   :  { %v3527_v3 = vpop.eup %3526 }
 0x12f   :  { %v3529_v4 = vpop.eup %3528  ;;  %781 = vmatprep.subr.bf16.mxu0 %v3527_v3 }
 0x130   :  { %v3531_v5 = vpop.eup %3530  ;;  %842 = vmatprep.subr.bf16.mxu1 %v3529_v4  ;;  %782 = vmatpush1.bf16.msra.mxu0 %v3525_v2 }
 0x131   :  { %843 = vmatpush1.bf16.msra.mxu1 %v3531_v5 }
 0x133   :  { %v3533_v6 = vpop.eup %3532 }
 0x134   :  { %v3535_v7 = vpop.eup %3534  ;;  %v758_v9 = vsel %vm756_vm1, %v3533_v6, 0 }
 0x135   :  { %v3537_v10 = vpop.eup %3536  ;;  %v764_v11 = vsel %vm756_vm1, %v3535_v7, 0 }
 0x136   :  { %v3539_v12 = vpop.eup %3538  ;;  %3230 = vmatprep.subr.msk.bf16.mxu0 %vm756_vm1, %v3537_v10 }
 0x137   :  { %3234 = vmatprep.subr.msk.bf16.mxu1 %vm756_vm1, %v3539_v12  ;;  %784 = vmatpush1.bf16.msra.mxu0 %v758_v9 }
 0x138   :  { %845 = vmatpush1.bf16.msra.mxu1 %v764_v11 }
 0x13a   :  { %3231 = vmatmul.mubr.msk.bf16.vlgmr.msra.gmra.mrb[16].mxu0 %vm746_vm2, %v4671_v13 }
 0x13b   :  { %3235 = vmatmul.mubr.msk.bf16.vlgmr.msra.gmra.mrb[16].mxu1 %vm746_vm2, %v4671_v13  ;;  %823 = vmatprep.mubr.bf16.mxu0 %v3949_v8 }
 0x13c   :  { %884 = vmatprep.mubr.bf16.mxu1 %v3949_v8 }
 0x142   :  { %3232 = vmatmul.mubr.msk.bf16.gmra.mrb[20].mxu0 %vm746_vm2, %v4683_v14 }
 0x143   :  { %3236 = vmatmul.mubr.msk.bf16.gmra.mrb[20].mxu1 %vm746_vm2, %v4683_v14  ;;  %833 = vmatprep.mubr.bf16.mxu0 %v3949_v8 }
 0x144   :  { %894 = vmatprep.mubr.bf16.mxu1 %v3949_v8 }
 0x14a   :  { %3233 = vmatmul.mubr.msk.bf16.gmra.mrb[24].mxu0 %vm746_vm2, %v4694_v15 }
 0x14b   :  { %3237 = vmatmul.mubr.msk.bf16.gmra.mrb[24].mxu1 %vm746_vm2, %v4694_v15  ;;  %935 = vmatprep.mubr.bf16.mxu0 %v3949_v8 }
 0x14c   :  { %996 = vmatprep.mubr.bf16.mxu1 %v3949_v8 }
 0x15b   :  { %v598_v16 = vpop.f32.mrb[8].mxu0 }
 0x15c   :  { %v649_v17 = vpop.f32.mrb[8].mxu1  ;;  %v600_v18 = vpop.f32.mrb[9].mxu0  ;;  %v599_v21 = vadd.f32 %v598_v16, %v4647_v55 }
 0x15d   :  { %v651_v19 = vpop.f32.mrb[9].mxu1  ;;  %v602_v20 = vpop.f32.mrb[10].mxu0  ;;  %v650_v26 = vadd.f32 %v649_v17, %v4647_v55  ;;  %v601_v27 = vadd.f32 %v600_v18, %v4647_v55 }
 0x15e   :  { %v603_v22 = vadd.f32 %v602_v20, %v4649_v28  ;;  %v653_v23 = vpop.f32.mrb[10].mxu1  ;;  %v604_v25 = vpop.f32.mrb[11].mxu0  ;;  %v652_v32 = vadd.f32 %v651_v19, %v4647_v55 }
 0x15f   :  { %v654_v29 = vadd.f32 %v653_v23, %v4649_v28  ;;  %v605_v30 = vadd.f32 %v604_v25, %v4649_v28  ;;  %v655_v31 = vpop.f32.mrb[11].mxu1  ;;  %v4748_v20 = vpop.permute.xlu0 %725 }
 0x160   :  { %v670_v33 = vpack.c.bf16 %v603_v22, %v599_v21  ;;  %v656_v34 = vadd.f32 %v655_v31, %v4649_v28  ;;  %v4750_v22 = vpop.permute.xlu1 %720 }
 0x161   :  { %v672_v35 = vpack.c.bf16 %v654_v29, %v650_v26  ;;  %v671_v36 = vpack.c.bf16 %v605_v30, %v601_v27 }
 0x162   :  { %v673_v37 = vpack.c.bf16 %v656_v34, %v652_v32  ;;  %3540 = vtanh.bf16 %v670_v33 }
 0x163   :  { %v608_v24 = vpop.f32.mrb[12].mxu0  ;;  %3542 = vtanh.bf16 %v671_v36 }
 0x164   :  { %v609_v38 = vadd.f32 %v608_v24, %v4659_v48  ;;  %v659_v39 = vpop.f32.mrb[12].mxu1  ;;  %v610_v40 = vpop.f32.mrb[13].mxu0  ;;  %3544 = vtanh.bf16 %v673_v37 }
 0x165   :  { %v660_v41 = vadd.f32 %v659_v39, %v4659_v48  ;;  %v611_v42 = vadd.f32 %v610_v40, %v4659_v48  ;;  %v661_v43 = vpop.f32.mrb[13].mxu1  ;;  %v612_v55 = vpop.f32.mrb[14].mxu0  ;;  %3546 = vtanh.bf16 %v672_v35 }
 0x166   :  { %v678_v44 = vpack.c.bf16 %v609_v38, %v609_v38  ;;  %v662_v28 = vadd.f32 %v661_v43, %v4659_v48  ;;  %v663_v45 = vpop.f32.mrb[14].mxu1  ;;  %v613_v46 = vpop.f32.mrb[15].mxu0 }
 0x167   :  { %v680_v47 = vpack.c.bf16 %v660_v41, %v660_v41  ;;  %v679_v49 = vpack.c.bf16 %v611_v42, %v611_v42  ;;  %v664_v50 = vpop.f32.mrb[15].mxu1  ;;  %v4760_v55 = vpop.permute.xlu1 %730 }
 0x168   :  { %3548 = vtanh.bf16 %v678_v44  ;;  %v681_v51 = vpack.c.bf16 %v662_v28, %v662_v28 }
 0x169   :  { %3550 = vtanh.bf16 %v680_v47 }
 0x16a   :  { %3552 = vtanh.bf16 %v679_v49 }
 0x16b   :  { %3554 = vtanh.bf16 %v681_v51 }
 0x16d   :  { %v3541_v52 = vpop.eup %3540 }
 0x16e   :  { %v3543_v53 = vpop.eup %3542 }
 0x16f   :  { %v3545_v54 = vpop.eup %3544  ;;  %903 = vmatprep.subr.bf16.mxu0 %v3543_v53 }
 0x170   :  { %v3547_v56 = vpop.eup %3546  ;;  %964 = vmatprep.subr.bf16.mxu1 %v3545_v54  ;;  %904 = vmatpush1.bf16.msra.mxu0 %v3541_v52 }
 0x171   :  { %965 = vmatpush1.bf16.msra.mxu1 %v3547_v56 }
 0x173   :  { %v3549_v57 = vpop.eup %3548 }
 0x174   :  { %v3551_v48 = vpop.eup %3550  ;;  %v770_v58 = vsel %vm756_vm1, %v3549_v57, 0 }
 0x175   :  { %v3553_v59 = vpop.eup %3552  ;;  %v776_v60 = vsel %vm756_vm1, %v3551_v48, 0 }
 0x176   :  { %v3555_v61 = vpop.eup %3554  ;;  %3238 = vmatprep.subr.msk.bf16.mxu0 %vm756_vm1, %v3553_v59 }
 0x177   :  { %3242 = vmatprep.subr.msk.bf16.mxu1 %vm756_vm1, %v3555_v61  ;;  %906 = vmatpush1.bf16.msra.mxu0 %v770_v58 }
 0x178   :  { %967 = vmatpush1.bf16.msra.mxu1 %v776_v60 }
 0x17a   :  { %3239 = vmatmul.mubr.msk.bf16.vlgmr.msra.gmra.mrb[28].mxu0 %vm746_vm2, %v4671_v13 }
 0x17b   :  { %3243 = vmatmul.mubr.msk.bf16.vlgmr.msra.gmra.mrb[28].mxu1 %vm746_vm2, %v4671_v13  ;;  %945 = vmatprep.mubr.bf16.mxu0 %v3949_v8 }
 0x17c   :  { %1006 = vmatprep.mubr.bf16.mxu1 %v3949_v8 }
 0x182   :  { %3240 = vmatmul.mubr.msk.bf16.gmra.mrb[32].mxu0 %vm746_vm2, %v4683_v14 }
 0x183   :  { %3244 = vmatmul.mubr.msk.bf16.gmra.mrb[32].mxu1 %vm746_vm2, %v4683_v14  ;;  %955 = vmatprep.mubr.bf16.mxu0 %v3949_v8 }
 0x184   :  { %1016 = vmatprep.mubr.bf16.mxu1 %v3949_v8 }
 0x18a   :  { %3241 = vmatmul.mubr.msk.bf16.gmra.mrb[36].mxu0 %vm746_vm2, %v4694_v15 }
 0x18b   :  { %3245 = vmatmul.mubr.msk.bf16.gmra.mrb[36].mxu1 %vm746_vm2, %v4694_v15  ;;  %1408 = vmatprep.mubr.bf16.mxu0 %v3949_v8 }
 0x18c   :  { %1569 = vmatprep.mubr.bf16.mxu1 %v3949_v8 }
 0x20d   :  { %v815_v0 = vpop.f32.mrb[16].mxu0 }
 0x20e   :  { %v876_v1 = vpop.f32.mrb[16].mxu1  ;;  %v817_v2 = vpop.f32.mrb[17].mxu0  ;;  %v816_v5 = vadd.f32 %v815_v0, %v4738_v63 }
 0x20f   :  { %v878_v3 = vpop.f32.mrb[17].mxu1  ;;  %v819_v4 = vpop.f32.mrb[18].mxu0  ;;  %v877_v10 = vadd.f32 %v876_v1, %v4738_v63  ;;  %v818_v11 = vadd.f32 %v817_v2, %v4738_v63 }
 0x210   :  { %v820_v6 = vadd.f32 %v819_v4, %v4736_v62  ;;  %v880_v7 = vpop.f32.mrb[18].mxu1  ;;  %v821_v9 = vpop.f32.mrb[19].mxu0  ;;  %v879_v15 = vadd.f32 %v878_v3, %v4738_v63 }
 0x211   :  { %v881_v12 = vadd.f32 %v880_v7, %v4736_v62  ;;  %v822_v13 = vadd.f32 %v821_v9, %v4736_v62  ;;  %v882_v14 = vpop.f32.mrb[19].mxu1 }
 0x212   :  { %v1025_v16 = vpack.c.bf16 %v820_v6, %v816_v5  ;;  %v883_v17 = vadd.f32 %v882_v14, %v4736_v62  ;;  %v4784_v14 = vld [vmem:[%s5561_s5 + $0x8] sm:$0xff]  }
 0x213   :  { %v1027_v18 = vpack.c.bf16 %v881_v12, %v877_v10  ;;  %v1026_v19 = vpack.c.bf16 %v822_v13, %v818_v11  ;;  %v4772_v13 = vld [vmem:[%s5561_s5] sm:$0xff]  }
 0x214   :  { %v1028_v21 = vpack.c.bf16 %v883_v17, %v879_v15  ;;  %3556 = vtanh.bf16 %v1025_v16  ;;  %v4795_v15 = vld [vmem:[%s5561_s5 + $0x10] sm:$0xff]   ;;  %v4806_v16 = vld [vmem:[%s5561_s5 + $0x18] sm:$0xff]  }
 0x215   :  { %v825_v23 = vpop.f32.mrb[20].mxu0  ;;  %3558 = vtanh.bf16 %v1026_v19 }
 0x216   :  { %v886_v25 = vpop.f32.mrb[20].mxu1  ;;  %v827_v26 = vpop.f32.mrb[21].mxu0  ;;  %3560 = vtanh.bf16 %v1028_v21  ;;  %v826_v30 = vadd.f32 %v825_v23, %v4750_v22 }
 0x217   :  { %v888_v27 = vpop.f32.mrb[21].mxu1  ;;  %v829_v29 = vpop.f32.mrb[22].mxu0  ;;  %3562 = vtanh.bf16 %v1027_v18  ;;  %v887_v34 = vadd.f32 %v886_v25, %v4750_v22  ;;  %v828_v35 = vadd.f32 %v827_v26, %v4750_v22 }
 0x218   :  { %v830_v31 = vadd.f32 %v829_v29, %v4748_v20  ;;  %v890_v32 = vpop.f32.mrb[22].mxu1  ;;  %v831_v33 = vpop.f32.mrb[23].mxu0  ;;  %v889_v38 = vadd.f32 %v888_v27, %v4750_v22 }
 0x219   :  { %v891_v36 = vadd.f32 %v890_v32, %v4748_v20  ;;  %v832_v37 = vadd.f32 %v831_v33, %v4748_v20  ;;  %v892_v24 = vpop.f32.mrb[23].mxu1 }
 0x21a   :  { %v1033_v39 = vpack.c.bf16 %v830_v31, %v826_v30  ;;  %v893_v40 = vadd.f32 %v892_v24, %v4748_v20  ;;  %v4819_v30 = vld [vmem:[%s5561_s5 + $0x20] sm:$0xff]  }
 0x21b   :  { %v1035_v41 = vpack.c.bf16 %v891_v36, %v887_v34  ;;  %v1034_v42 = vpack.c.bf16 %v832_v37, %v828_v35 }
 0x21c   :  { %v1036_v43 = vpack.c.bf16 %v893_v40, %v889_v38  ;;  %3564 = vtanh.bf16 %v1033_v39 }
 0x21d   :  { %v835_v44 = vpop.f32.mrb[24].mxu0  ;;  %3566 = vtanh.bf16 %v1034_v42 }
 0x21e   :  { %v836_v28 = vadd.f32 %v835_v44, %v4760_v55  ;;  %v896_v45 = vpop.f32.mrb[24].mxu1  ;;  %v837_v46 = vpop.f32.mrb[25].mxu0  ;;  %3568 = vtanh.bf16 %v1036_v43 }
 0x21f   :  { %v897_v47 = vadd.f32 %v896_v45, %v4760_v55  ;;  %v838_v49 = vadd.f32 %v837_v46, %v4760_v55  ;;  %v898_v50 = vpop.f32.mrb[25].mxu1  ;;  %v839_v51 = vpop.f32.mrb[26].mxu0  ;;  %3570 = vtanh.bf16 %v1035_v41 }
 0x220   :  { %v3557_v52 = vpop.eup %3556  ;;  %v1041_v53 = vpack.c.bf16 %v836_v28, %v836_v28  ;;  %v899_v54 = vadd.f32 %v898_v50, %v4760_v55  ;;  %v900_v56 = vpop.f32.mrb[26].mxu1 }
 0x221   :  { %v840_v57 = vpop.f32.mrb[27].mxu0  ;;  %v3559_v48 = vpop.eup %3558  ;;  %v1043_v58 = vpack.c.bf16 %v897_v47, %v897_v47  ;;  %v1042_v59 = vpack.c.bf16 %v838_v49, %v838_v49  ;;  %v4838_v47 = vld [vmem:[%s5561_s5 + $0x28] sm:$0xff]  }
 0x222   :  { %v901_v60 = vpop.f32.mrb[27].mxu1  ;;  %v3561_v61 = vpop.eup %3560  ;;  %3572 = vtanh.bf16 %v1041_v53  ;;  %v1044_v0 = vpack.c.bf16 %v899_v54, %v899_v54  ;;  %1376 = vmatprep.subr.bf16.mxu0 %v3559_v48 }
 0x223   :  { %v3563_v1 = vpop.eup %3562  ;;  %3574 = vtanh.bf16 %v1043_v58  ;;  %1537 = vmatprep.subr.bf16.mxu1 %v3561_v61  ;;  %1377 = vmatpush1.bf16.msra.mxu0 %v3557_v52 }
 0x224   :  { %3576 = vtanh.bf16 %v1042_v59  ;;  %1538 = vmatpush1.bf16.msra.mxu1 %v3563_v1 }
 0x225   :  { %3578 = vtanh.bf16 %v1044_v0 }
 0x227   :  { %v3565_v2 = vpop.eup %3564 }
 0x228   :  { %v3567_v3 = vpop.eup %3566 }
 0x229   :  { %v3569_v4 = vpop.eup %3568  ;;  %1378 = vmatprep.subr.bf16.mxu0 %v3567_v3 }
 0x22a   :  { %v3571_v5 = vpop.eup %3570  ;;  %1539 = vmatprep.subr.bf16.mxu1 %v3569_v4  ;;  %1379 = vmatpush1.bf16.msra.mxu0 %v3565_v2 }
 0x22b   :  { %1540 = vmatpush1.bf16.msra.mxu1 %v3571_v5 }
 0x22d   :  { %v3573_v6 = vpop.eup %3572 }
 0x22e   :  { %v3575_v7 = vpop.eup %3574  ;;  %v1353_v9 = vsel %vm1351_vm3, %v3573_v6, 0 }
 0x22f   :  { %v3577_v10 = vpop.eup %3576  ;;  %v1359_v11 = vsel %vm1351_vm3, %v3575_v7, 0  ;;  %v4859_v7 = vld [vmem:[%s5561_s5 + $0x30] sm:$0xff]  }
 0x230   :  { %v3579_v12 = vpop.eup %3578  ;;  %3259 = vmatprep.subr.msk.bf16.mxu0 %vm1351_vm3, %v3577_v10 }
 0x231   :  { %3273 = vmatprep.subr.msk.bf16.mxu1 %vm1351_vm3, %v3579_v12  ;;  %1381 = vmatpush1.bf16.msra.mxu0 %v1353_v9 }
 0x232   :  { %1542 = vmatpush1.bf16.msra.mxu1 %v1359_v11 }
 0x234   :  { %3260 = vmatmul.mubr.msk.bf16.vlgmr.msra.gmra.mrb[40].mxu0 %vm1311_vm4, %v4772_v13 }
 0x235   :  { %3274 = vmatmul.mubr.msk.bf16.vlgmr.msra.gmra.mrb[40].mxu1 %vm1311_vm4, %v4772_v13  ;;  %1418 = vmatprep.mubr.bf16.mxu0 %v3949_v8 }
 0x236   :  { %1579 = vmatprep.mubr.bf16.mxu1 %v3949_v8 }
 0x23c   :  { %3261 = vmatmul.mubr.msk.bf16.gmra.mrb[44].mxu0 %vm1311_vm4, %v4784_v14 }
 0x23d   :  { %3275 = vmatmul.mubr.msk.bf16.gmra.mrb[44].mxu1 %vm1311_vm4, %v4784_v14  ;;  %1428 = vmatprep.mubr.bf16.mxu0 %v3949_v8 }
 0x23e   :  { %1589 = vmatprep.mubr.bf16.mxu1 %v3949_v8 }
 0x244   :  { %3262 = vmatmul.mubr.msk.bf16.gmra.mrb[48].mxu0 %vm1311_vm4, %v4795_v15 }
 0x245   :  { %3276 = vmatmul.mubr.msk.bf16.gmra.mrb[48].mxu1 %vm1311_vm4, %v4795_v15  ;;  %1438 = vmatprep.mubr.bf16.mxu0 %v3949_v8 }
 0x246   :  { %1599 = vmatprep.mubr.bf16.mxu1 %v3949_v8 }
 0x24c   :  { %3263 = vmatmul.mubr.msk.bf16.gmra.mrb[52].mxu0 %vm1311_vm4, %v4806_v16 }
 0x24d   :  { %3277 = vmatmul.mubr.msk.bf16.gmra.mrb[52].mxu1 %vm1311_vm4, %v4806_v16  ;;  %v937_v17 = vpop.f32.mrb[28].mxu0  ;;  %1448 = vmatprep.mubr.bf16.mxu0 %v3949_v8 }
 0x24e   :  { %v998_v18 = vpop.f32.mrb[28].mxu1  ;;  %v939_v19 = vpop.f32.mrb[29].mxu0  ;;  %1609 = vmatprep.mubr.bf16.mxu1 %v3949_v8  ;;  %v938_v25 = vadd.f32 %v937_v17, %v4738_v63 }
 0x24f   :  { %v1000_v21 = vpop.f32.mrb[29].mxu1  ;;  %v941_v23 = vpop.f32.mrb[30].mxu0  ;;  %v999_v31 = vadd.f32 %v998_v18, %v4738_v63  ;;  %v940_v32 = vadd.f32 %v939_v19, %v4738_v63 }
 0x250   :  { %v942_v26 = vadd.f32 %v941_v23, %v4736_v62  ;;  %v1002_v27 = vpop.f32.mrb[30].mxu1  ;;  %v943_v29 = vpop.f32.mrb[31].mxu0  ;;  %v1001_v36 = vadd.f32 %v1000_v21, %v4738_v63 }
 0x251   :  { %v1003_v33 = vadd.f32 %v1002_v27, %v4736_v62  ;;  %v944_v34 = vadd.f32 %v943_v29, %v4736_v62  ;;  %v1004_v35 = vpop.f32.mrb[31].mxu1 }
 0x252   :  { %v1029_v37 = vpack.c.bf16 %v942_v26, %v938_v25  ;;  %v1005_v24 = vadd.f32 %v1004_v35, %v4736_v62  ;;  %v4870_v25 = vld [vmem:[%s5561_s5 + $0x38] sm:$0xff]  }
 0x253   :  { %v1031_v38 = vpack.c.bf16 %v1003_v33, %v999_v31  ;;  %v1030_v39 = vpack.c.bf16 %v944_v34, %v940_v32 }
 0x254   :  { %v1032_v40 = vpack.c.bf16 %v1005_v24, %v1001_v36  ;;  %3264 = vmatmul.mubr.msk.bf16.gmra.mrb[56].mxu0 %vm1311_vm4, %v4819_v30  ;;  %3580 = vtanh.bf16 %v1029_v37  ;;  %v3499_v37 = vld [vmem:[%s5561_s5 + $0x40] sm:$0xff]   ;;  %v3500_v24 = vld [vmem:[%s5561_s5 + $0x48] sm:$0xff]  }
 0x255   :  { %3278 = vmatmul.mubr.msk.bf16.gmra.mrb[56].mxu1 %vm1311_vm4, %v4819_v30  ;;  %v947_v41 = vpop.f32.mrb[32].mxu0  ;;  %1458 = vmatprep.mubr.bf16.mxu0 %v3949_v8  ;;  %3582 = vtanh.bf16 %v1030_v39  ;;  %v3502_v39 = vld [vmem:[%s5561_s5 + $0x58] sm:$0xff]  }
 0x256   :  { %v1008_v42 = vpop.f32.mrb[32].mxu1  ;;  %v949_v43 = vpop.f32.mrb[33].mxu0  ;;  %1619 = vmatprep.mubr.bf16.mxu1 %v3949_v8  ;;  %3584 = vtanh.bf16 %v1032_v40  ;;  %v948_v44 = vadd.f32 %v947_v41, %v4750_v22  ;;  %v3503_v40 = vld [vmem:[%s5561_s5 + $0x60] ss:$0 sps:$4 sm:$0xff]  }
 0x257   :  { %v1010_v62 = vpop.f32.mrb[33].mxu1  ;;  %v951_v63 = vpop.f32.mrb[34].mxu0  ;;  %3586 = vtanh.bf16 %v1031_v38  ;;  %v1009_v49 = vadd.f32 %v1008_v42, %v4750_v22  ;;  %v950_v50 = vadd.f32 %v949_v43, %v4750_v22  ;;  %v3501_v38 = vld [vmem:[%s5561_s5 + $0x50] sm:$0xff]  }
 0x258   :  { %v952_v28 = vadd.f32 %v951_v63, %v4748_v20  ;;  %v1012_v45 = vpop.f32.mrb[34].mxu1  ;;  %v953_v46 = vpop.f32.mrb[35].mxu0  ;;  %v1011_v54 = vadd.f32 %v1010_v62, %v4750_v22 }
 0x259   :  { %v1013_v51 = vadd.f32 %v1012_v45, %v4748_v20  ;;  %v954_v52 = vadd.f32 %v953_v46, %v4748_v20  ;;  %v1014_v53 = vpop.f32.mrb[35].mxu1 }
 0x25a   :  { %v1037_v56 = vpack.c.bf16 %v952_v28, %v948_v44  ;;  %v1015_v57 = vadd.f32 %v1014_v53, %v4748_v20 }
 0x25b   :  { %v1039_v48 = vpack.c.bf16 %v1013_v51, %v1009_v49  ;;  %v1038_v58 = vpack.c.bf16 %v954_v52, %v950_v50 }
 0x25c   :  { %v1040_v59 = vpack.c.bf16 %v1015_v57, %v1011_v54  ;;  %3265 = vmatmul.mubr.msk.bf16.gmra.mrb[60].mxu0 %vm1311_vm4, %v4838_v47  ;;  %3588 = vtanh.bf16 %v1037_v56 }
 0x25d   :  { %3279 = vmatmul.mubr.msk.bf16.gmra.mrb[60].mxu1 %vm1311_vm4, %v4838_v47  ;;  %v957_v60 = vpop.f32.mrb[36].mxu0  ;;  %1468 = vmatprep.mubr.bf16.mxu0 %v3949_v8  ;;  %3590 = vtanh.bf16 %v1038_v58 }
 0x25e   :  { %v958_v61 = vadd.f32 %v957_v60, %v4760_v55  ;;  %v1018_v22 = vpop.f32.mrb[36].mxu1  ;;  %v959_v0 = vpop.f32.mrb[37].mxu0  ;;  %1629 = vmatprep.mubr.bf16.mxu1 %v3949_v8  ;;  %3592 = vtanh.bf16 %v1040_v59 }
 0x25f   :  { %v1019_v20 = vadd.f32 %v1018_v22, %v4760_v55  ;;  %v960_v1 = vadd.f32 %v959_v0, %v4760_v55  ;;  %v1020_v2 = vpop.f32.mrb[37].mxu1  ;;  %v961_v3 = vpop.f32.mrb[38].mxu0  ;;  %3594 = vtanh.bf16 %v1039_v48 }
 0x260   :  { %v3581_v4 = vpop.eup %3580  ;;  %v1045_v5 = vpack.c.bf16 %v958_v61, %v958_v61  ;;  %v1021_v6 = vadd.f32 %v1020_v2, %v4760_v55  ;;  %v1022_v9 = vpop.f32.mrb[38].mxu1 }
 0x261   :  { %v962_v10 = vpop.f32.mrb[39].mxu0  ;;  %v3583_v11 = vpop.eup %3582  ;;  %v1047_v12 = vpack.c.bf16 %v1019_v20, %v1019_v20  ;;  %v1046_v17 = vpack.c.bf16 %v960_v1, %v960_v1 }
 0x262   :  { %v1023_v18 = vpop.f32.mrb[39].mxu1  ;;  %v3585_v19 = vpop.eup %3584  ;;  %3596 = vtanh.bf16 %v1045_v5  ;;  %v1048_v21 = vpack.c.bf16 %v1021_v6, %v1021_v6  ;;  %1698 = vmatprep.subr.bf16.mxu0 %v3583_v11 }
 0x263   :  { %v3587_v23 = vpop.eup %3586  ;;  %3598 = vtanh.bf16 %v1047_v12  ;;  %1859 = vmatprep.subr.bf16.mxu1 %v3585_v19  ;;  %1699 = vmatpush1.bf16.msra.mxu0 %v3581_v4 }
 0x264   :  { %3600 = vtanh.bf16 %v1046_v17  ;;  %1860 = vmatpush1.bf16.msra.mxu1 %v3587_v23  ;;  %3266 = vmatmul.mubr.msk.bf16.gmra.mrb[64].mxu0 %vm1311_vm4, %v4859_v7 }
 0x265   :  { %3602 = vtanh.bf16 %v1048_v21  ;;  %3280 = vmatmul.mubr.msk.bf16.gmra.mrb[64].mxu1 %vm1311_vm4, %v4859_v7  ;;  %1478 = vmatprep.mubr.bf16.mxu0 %v3949_v8 }
 0x266   :  { %1639 = vmatprep.mubr.bf16.mxu1 %v3949_v8 }
 0x267   :  { %v3589_v55 = vpop.eup %3588 }
 0x268   :  { %v3591_v26 = vpop.eup %3590 }
 0x269   :  { %v3593_v27 = vpop.eup %3592  ;;  %1700 = vmatprep.subr.bf16.mxu0 %v3591_v26 }
 0x26a   :  { %v3595_v29 = vpop.eup %3594  ;;  %1861 = vmatprep.subr.bf16.mxu1 %v3593_v27  ;;  %1701 = vmatpush1.bf16.msra.mxu0 %v3589_v55 }
 0x26b   :  { %1862 = vmatpush1.bf16.msra.mxu1 %v3595_v29 }
 0x26c   :  { %3267 = vmatmul.mubr.msk.bf16.gmra.mrb[68].mxu0 %vm1311_vm4, %v4870_v25 }
 0x26d   :  { %v3597_v31 = vpop.eup %3596  ;;  %3281 = vmatmul.mubr.msk.bf16.gmra.mrb[68].mxu1 %vm1311_vm4, %v4870_v25  ;;  %1488 = vmatprep.mubr.bf16.mxu0 %v3949_v8 }
 0x26e   :  { %v3599_v32 = vpop.eup %3598  ;;  %v1365_v33 = vsel %vm1351_vm3, %v3597_v31, 0  ;;  %1649 = vmatprep.mubr.bf16.mxu1 %v3949_v8 }
 0x26f   :  { %v3601_v34 = vpop.eup %3600  ;;  %v1371_v35 = vsel %vm1351_vm3, %v3599_v32, 0 }
 0x270   :  { %v3603_v36 = vpop.eup %3602  ;;  %3287 = vmatprep.subr.msk.bf16.mxu0 %vm1351_vm3, %v3601_v34 }
 0x271   :  { %3301 = vmatprep.subr.msk.bf16.mxu1 %vm1351_vm3, %v3603_v36  ;;  %1703 = vmatpush1.bf16.msra.mxu0 %v1365_v33 }
 0x272   :  { %1864 = vmatpush1.bf16.msra.mxu1 %v1371_v35 }
 0x274   :  { %3268 = vmatmul.mubr.msk.bf16.gmra.mrb[72].mxu0 %vm1311_vm4, %v3499_v37 }
 0x275   :  { %3282 = vmatmul.mubr.msk.bf16.gmra.mrb[72].mxu1 %vm1311_vm4, %v3499_v37  ;;  %1498 = vmatprep.mubr.bf16.mxu0 %v3949_v8 }
 0x276   :  { %1659 = vmatprep.mubr.bf16.mxu1 %v3949_v8 }
 0x27c   :  { %3269 = vmatmul.mubr.msk.bf16.gmra.mrb[76].mxu0 %vm1311_vm4, %v3500_v24 }
 0x27d   :  { %3283 = vmatmul.mubr.msk.bf16.gmra.mrb[76].mxu1 %vm1311_vm4, %v3500_v24  ;;  %1508 = vmatprep.mubr.bf16.mxu0 %v3949_v8 }
 0x27e   :  { %1669 = vmatprep.mubr.bf16.mxu1 %v3949_v8 }
 0x284   :  { %3270 = vmatmul.mubr.msk.bf16.gmra.mrb[80].mxu0 %vm1311_vm4, %v3501_v38 }
 0x285   :  { %3284 = vmatmul.mubr.msk.bf16.gmra.mrb[80].mxu1 %vm1311_vm4, %v3501_v38  ;;  %1518 = vmatprep.mubr.bf16.mxu0 %v3949_v8 }
 0x286   :  { %1679 = vmatprep.mubr.bf16.mxu1 %v3949_v8 }
 0x28c   :  { %3271 = vmatmul.mubr.msk.bf16.gmra.mrb[84].mxu0 %vm1311_vm4, %v3502_v39 }
 0x28d   :  { %3285 = vmatmul.mubr.msk.bf16.gmra.mrb[84].mxu1 %vm1311_vm4, %v3502_v39  ;;  %1528 = vmatprep.mubr.bf16.mxu0 %v3949_v8 }
 0x28e   :  { %1689 = vmatprep.mubr.bf16.mxu1 %v3949_v8 }
 0x294   :  { %3272 = vmatmul.mubr.msk.bf16.gmra.mrb[88].mxu0 %vm1311_vm4, %v3503_v40 }
 0x295   :  { %3286 = vmatmul.mubr.msk.bf16.gmra.mrb[88].mxu1 %vm1311_vm4, %v3503_v40  ;;  %1730 = vmatprep.mubr.bf16.mxu0 %v3949_v8 }
 0x296   :  { %1891 = vmatprep.mubr.bf16.mxu1 %v3949_v8 }
 0x29c   :  { %3288 = vmatmul.mubr.msk.bf16.vlgmr.msra.gmra.mrb[92].mxu0 %vm1311_vm4, %v4772_v13 }
 0x29d   :  { %3302 = vmatmul.mubr.msk.bf16.vlgmr.msra.gmra.mrb[92].mxu1 %vm1311_vm4, %v4772_v13  ;;  %1740 = vmatprep.mubr.bf16.mxu0 %v3949_v8  ;;  %v3506_v13 = vld [vmem:[%s5563_s7 + $0x4] ss:$8 sps:$4 sm:$0xff]  }
 0x29e   :  { %1901 = vmatprep.mubr.bf16.mxu1 %v3949_v8 }
 0x2a4   :  { %3289 = vmatmul.mubr.msk.bf16.gmra.mrb[96].mxu0 %vm1311_vm4, %v4784_v14 }
 0x2a5   :  { %3303 = vmatmul.mubr.msk.bf16.gmra.mrb[96].mxu1 %vm1311_vm4, %v4784_v14  ;;  %1750 = vmatprep.mubr.bf16.mxu0 %v3949_v8  ;;  %v4988_v14 = vpop.permute.xlu0 %1125 }
 0x2a6   :  { %1911 = vmatprep.mubr.bf16.mxu1 %v3949_v8 }
 0x2a9   :  { %v5000_v57 = vpop.permute.xlu0 %1135 }
 0x2ac   :  { %3290 = vmatmul.mubr.msk.bf16.gmra.mrb[100].mxu0 %vm1311_vm4, %v4795_v15 }
 0x2ad   :  { %3304 = vmatmul.mubr.msk.bf16.gmra.mrb[100].mxu1 %vm1311_vm4, %v4795_v15  ;;  %1760 = vmatprep.mubr.bf16.mxu0 %v3949_v8  ;;  %v4990_v15 = vpop.permute.xlu1 %1130  ;;  %v5012_v19 = vpop.permute.xlu0 %1145 }
 0x2ae   :  { %1921 = vmatprep.mubr.bf16.mxu1 %v3949_v8 }
 0x2b1   :  { %v5002_v58 = vpop.permute.xlu1 %1140 }
 0x2b4   :  { %3291 = vmatmul.mubr.msk.bf16.gmra.mrb[104].mxu0 %vm1311_vm4, %v4806_v16 }
 0x2b5   :  { %3305 = vmatmul.mubr.msk.bf16.gmra.mrb[104].mxu1 %vm1311_vm4, %v4806_v16  ;;  %1770 = vmatprep.mubr.bf16.mxu0 %v3949_v8  ;;  %v5014_v23 = vpop.permute.xlu1 %1150 }
 0x2b6   :  { %1931 = vmatprep.mubr.bf16.mxu1 %v3949_v8 }
 0x2bc   :  { %3292 = vmatmul.mubr.msk.bf16.gmra.mrb[108].mxu0 %vm1311_vm4, %v4819_v30 }
 0x2bd   :  { %3306 = vmatmul.mubr.msk.bf16.gmra.mrb[108].mxu1 %vm1311_vm4, %v4819_v30  ;;  %1780 = vmatprep.mubr.bf16.mxu0 %v3949_v8 }
 0x2be   :  { %1941 = vmatprep.mubr.bf16.mxu1 %v3949_v8 }
 0x2c4   :  { %3293 = vmatmul.mubr.msk.bf16.gmra.mrb[112].mxu0 %vm1311_vm4, %v4838_v47 }
 0x2c5   :  { %3307 = vmatmul.mubr.msk.bf16.gmra.mrb[112].mxu1 %vm1311_vm4, %v4838_v47  ;;  %1790 = vmatprep.mubr.bf16.mxu0 %v3949_v8 }
 0x2c6   :  { %1951 = vmatprep.mubr.bf16.mxu1 %v3949_v8 }
 0x2cc   :  { %3294 = vmatmul.mubr.msk.bf16.gmra.mrb[116].mxu0 %vm1311_vm4, %v4859_v7 }
 0x2cd   :  { %3308 = vmatmul.mubr.msk.bf16.gmra.mrb[116].mxu1 %vm1311_vm4, %v4859_v7  ;;  %1800 = vmatprep.mubr.bf16.mxu0 %v3949_v8 }
 0x2ce   :  { %1961 = vmatprep.mubr.bf16.mxu1 %v3949_v8 }
 0x2d4   :  { %3295 = vmatmul.mubr.msk.bf16.gmra.mrb[120].mxu0 %vm1311_vm4, %v4870_v25 }
 0x2d5   :  { %3309 = vmatmul.mubr.msk.bf16.gmra.mrb[120].mxu1 %vm1311_vm4, %v4870_v25  ;;  %1810 = vmatprep.mubr.bf16.mxu0 %v3949_v8 }
 0x2d6   :  { %1971 = vmatprep.mubr.bf16.mxu1 %v3949_v8 }
 0x2dc   :  { %3296 = vmatmul.mubr.msk.bf16.gmra.mrb[124].mxu0 %vm1311_vm4, %v3499_v37 }
 0x2dd   :  { %3310 = vmatmul.mubr.msk.bf16.gmra.mrb[124].mxu1 %vm1311_vm4, %v3499_v37  ;;  %1820 = vmatprep.mubr.bf16.mxu0 %v3949_v8 }
 0x2de   :  { %1981 = vmatprep.mubr.bf16.mxu1 %v3949_v8 }
 0x2e4   :  { %3297 = vmatmul.mubr.msk.bf16.gmra.mrb[128].mxu0 %vm1311_vm4, %v3500_v24 }
 0x2e5   :  { %3311 = vmatmul.mubr.msk.bf16.gmra.mrb[128].mxu1 %vm1311_vm4, %v3500_v24  ;;  %1830 = vmatprep.mubr.bf16.mxu0 %v3949_v8 }
 0x2e6   :  { %1991 = vmatprep.mubr.bf16.mxu1 %v3949_v8 }
 0x2ec   :  { %3298 = vmatmul.mubr.msk.bf16.gmra.mrb[132].mxu0 %vm1311_vm4, %v3501_v38 }
 0x2ed   :  { %3312 = vmatmul.mubr.msk.bf16.gmra.mrb[132].mxu1 %vm1311_vm4, %v3501_v38  ;;  %1840 = vmatprep.mubr.bf16.mxu0 %v3949_v8 }
 0x2ee   :  { %2001 = vmatprep.mubr.bf16.mxu1 %v3949_v8 }
 0x2f4   :  { %3299 = vmatmul.mubr.msk.bf16.gmra.mrb[136].mxu0 %vm1311_vm4, %v3502_v39 }
 0x2f5   :  { %3313 = vmatmul.mubr.msk.bf16.gmra.mrb[136].mxu1 %vm1311_vm4, %v3502_v39  ;;  %1850 = vmatprep.mubr.bf16.mxu0 %v3949_v8 }
 0x2f6   :  { %2011 = vmatprep.mubr.bf16.mxu1 %v3949_v8 }
 0x2fc   :  { %3300 = vmatmul.mubr.msk.bf16.gmra.mrb[140].mxu0 %vm1311_vm4, %v3503_v40 }
 0x2fd   :  { %3314 = vmatmul.mubr.msk.bf16.gmra.mrb[140].mxu1 %vm1311_vm4, %v3503_v40  ;;  %3330 = vmatprep.mubr.msk.bf16.mxu0 %vm2379_vm5, %v3506_v13 }
 0x2fe   :  { %3338 = vmatprep.mubr.msk.bf16.mxu1 %vm2379_vm5, %v3506_v13 }
 0x307   :  { %v1410_v16 = vpop.f32.mrb[40].mxu0 }
 0x308   :  { %v1571_v30 = vpop.f32.mrb[40].mxu1  ;;  %v1412_v41 = vpop.f32.mrb[41].mxu0  ;;  %v1411_v62 = vadd.f32 %v1410_v16, %v4988_v14 }
 0x309   :  { %v1573_v42 = vpop.f32.mrb[41].mxu1  ;;  %v1414_v43 = vpop.f32.mrb[42].mxu0  ;;  %v1572_v45 = vadd.f32 %v1571_v30, %v4988_v14  ;;  %v1413_v46 = vadd.f32 %v1412_v41, %v4988_v14 }
 0x30a   :  { %v1415_v63 = vadd.f32 %v1414_v43, %v4990_v15  ;;  %v1575_v44 = vpop.f32.mrb[42].mxu1  ;;  %v1416_v28 = vpop.f32.mrb[43].mxu0  ;;  %v1574_v51 = vadd.f32 %v1573_v42, %v4988_v14 }
 0x30b   :  { %v1576_v47 = vadd.f32 %v1575_v44, %v4990_v15  ;;  %v1417_v49 = vadd.f32 %v1416_v28, %v4990_v15  ;;  %v1577_v50 = vpop.f32.mrb[43].mxu1  ;;  %v5026_v28 = vpop.permute.xlu1 %1160 }
 0x30c   :  { %v2020_v52 = vpack.c.bf16 %v1415_v63, %v1411_v62  ;;  %v1578_v53 = vadd.f32 %v1577_v50, %v4990_v15  ;;  %v5024_v63 = vpop.permute.xlu0 %1155 }
 0x30d   :  { %v2022_v54 = vpack.c.bf16 %v1576_v47, %v1572_v45  ;;  %v2021_v56 = vpack.c.bf16 %v1417_v49, %v1413_v46 }
 0x30e   :  { %v2023_v48 = vpack.c.bf16 %v1578_v53, %v1574_v51  ;;  %3604 = vtanh.bf16 %v2020_v52 }
 0x30f   :  { %v1420_v59 = vpop.f32.mrb[44].mxu0  ;;  %3606 = vtanh.bf16 %v2021_v56 }
 0x310   :  { %v1581_v60 = vpop.f32.mrb[44].mxu1  ;;  %v1422_v61 = vpop.f32.mrb[45].mxu0  ;;  %3608 = vtanh.bf16 %v2023_v48  ;;  %v1421_v20 = vadd.f32 %v1420_v59, %v5000_v57 }
 0x311   :  { %v1583_v22 = vpop.f32.mrb[45].mxu1  ;;  %v1424_v0 = vpop.f32.mrb[46].mxu0  ;;  %3610 = vtanh.bf16 %v2022_v54  ;;  %v1582_v4 = vadd.f32 %v1581_v60, %v5000_v57  ;;  %v1423_v5 = vadd.f32 %v1422_v61, %v5000_v57 }
 0x312   :  { %v1425_v1 = vadd.f32 %v1424_v0, %v5002_v58  ;;  %v1585_v2 = vpop.f32.mrb[46].mxu1  ;;  %v1426_v3 = vpop.f32.mrb[47].mxu0  ;;  %v1584_v10 = vadd.f32 %v1583_v22, %v5000_v57 }
 0x313   :  { %v1586_v6 = vadd.f32 %v1585_v2, %v5002_v58  ;;  %v1427_v7 = vadd.f32 %v1426_v3, %v5002_v58  ;;  %v1587_v9 = vpop.f32.mrb[47].mxu1 }
 0x314   :  { %v2028_v11 = vpack.c.bf16 %v1425_v1, %v1421_v20  ;;  %v1588_v12 = vadd.f32 %v1587_v9, %v5002_v58 }
 0x315   :  { %v2030_v17 = vpack.c.bf16 %v1586_v6, %v1582_v4  ;;  %v2029_v18 = vpack.c.bf16 %v1427_v7, %v1423_v5  ;;  %v5036_v7 = vpop.permute.xlu0 %1165 }
 0x316   :  { %v2031_v21 = vpack.c.bf16 %v1588_v12, %v1584_v10  ;;  %3612 = vtanh.bf16 %v2028_v11  ;;  %v5038_v10 = vpop.permute.xlu1 %1170 }
 0x317   :  { %v1430_v55 = vpop.f32.mrb[48].mxu0  ;;  %3614 = vtanh.bf16 %v2029_v18 }
 0x318   :  { %v1591_v25 = vpop.f32.mrb[48].mxu1  ;;  %v1432_v26 = vpop.f32.mrb[49].mxu0  ;;  %3616 = vtanh.bf16 %v2031_v21  ;;  %v1431_v32 = vadd.f32 %v1430_v55, %v5012_v19 }
 0x319   :  { %v1593_v27 = vpop.f32.mrb[49].mxu1  ;;  %v1434_v29 = vpop.f32.mrb[50].mxu0  ;;  %3618 = vtanh.bf16 %v2030_v17  ;;  %v1592_v37 = vadd.f32 %v1591_v25, %v5012_v19  ;;  %v1433_v24 = vadd.f32 %v1432_v26, %v5012_v19 }
 0x31a   :  { %v3605_v31 = vpop.eup %3604  ;;  %v1435_v33 = vadd.f32 %v1434_v29, %v5014_v23  ;;  %v1595_v34 = vpop.f32.mrb[50].mxu1  ;;  %v1594_v16 = vadd.f32 %v1593_v27, %v5012_v19 }
 0x31b   :  { %v1436_v35 = vpop.f32.mrb[51].mxu0  ;;  %v3607_v36 = vpop.eup %3606  ;;  %v1596_v38 = vadd.f32 %v1595_v34, %v5014_v23 }
 0x31c   :  { %v1437_v39 = vadd.f32 %v1436_v35, %v5014_v23  ;;  %v1597_v40 = vpop.f32.mrb[51].mxu1  ;;  %v3609_v13 = vpop.eup %3608  ;;  %v2036_v30 = vpack.c.bf16 %v1435_v33, %v1431_v32  ;;  %2425 = vmatprep.subr.bf16.mxu0 %v3607_v36 }
 0x31d   :  { %v1598_v41 = vadd.f32 %v1597_v40, %v5014_v23  ;;  %v3611_v42 = vpop.eup %3610  ;;  %v2038_v43 = vpack.c.bf16 %v1596_v38, %v1592_v37  ;;  %2526 = vmatprep.subr.bf16.mxu1 %v3609_v13  ;;  %2426 = vmatpush1.bf16.msra.mxu0 %v3605_v31 }
 0x31e   :  { %v2037_v62 = vpack.c.bf16 %v1437_v39, %v1433_v24  ;;  %2527 = vmatpush1.bf16.msra.mxu1 %v3611_v42  ;;  %3620 = vtanh.bf16 %v2036_v30  ;;  %v5048_v30 = vpop.permute.xlu0 %1175  ;;  %v5050_v42 = vpop.permute.xlu1 %1180 }
 0x31f   :  { %v2039_v44 = vpack.c.bf16 %v1598_v41, %v1594_v16  ;;  %v1440_v45 = vpop.f32.mrb[52].mxu0 }
 0x320   :  { %3622 = vtanh.bf16 %v2037_v62  ;;  %v1601_v46 = vpop.f32.mrb[52].mxu1  ;;  %v1442_v47 = vpop.f32.mrb[53].mxu0  ;;  %v1441_v52 = vadd.f32 %v1440_v45, %v5024_v63 }
 0x321   :  { %3624 = vtanh.bf16 %v2039_v44  ;;  %v1603_v49 = vpop.f32.mrb[53].mxu1  ;;  %v1444_v50 = vpop.f32.mrb[54].mxu0  ;;  %v1602_v59 = vadd.f32 %v1601_v46, %v5024_v63  ;;  %v1443_v60 = vadd.f32 %v1442_v47, %v5024_v63 }
 0x322   :  { %v3613_v51 = vpop.eup %3612  ;;  %3626 = vtanh.bf16 %v2038_v43  ;;  %v1445_v53 = vadd.f32 %v1444_v50, %v5026_v28  ;;  %v1605_v54 = vpop.f32.mrb[54].mxu1  ;;  %v1604_v1 = vadd.f32 %v1603_v49, %v5024_v63 }
 0x323   :  { %v1446_v56 = vpop.f32.mrb[55].mxu0  ;;  %v3615_v48 = vpop.eup %3614  ;;  %v1606_v61 = vadd.f32 %v1605_v54, %v5026_v28 }
 0x324   :  { %v1447_v22 = vadd.f32 %v1446_v56, %v5026_v28  ;;  %v1607_v0 = vpop.f32.mrb[55].mxu1  ;;  %v3617_v20 = vpop.eup %3616  ;;  %v2044_v2 = vpack.c.bf16 %v1445_v53, %v1441_v52  ;;  %2427 = vmatprep.subr.bf16.mxu0 %v3615_v48 }
 0x325   :  { %v1608_v3 = vadd.f32 %v1607_v0, %v5026_v28  ;;  %v3619_v4 = vpop.eup %3618  ;;  %v2046_v5 = vpack.c.bf16 %v1606_v61, %v1602_v59  ;;  %2528 = vmatprep.subr.bf16.mxu1 %v3617_v20  ;;  %2428 = vmatpush1.bf16.msra.mxu0 %v3613_v51 }
 0x326   :  { %v2045_v6 = vpack.c.bf16 %v1447_v22, %v1443_v60  ;;  %2529 = vmatpush1.bf16.msra.mxu1 %v3619_v4  ;;  %3628 = vtanh.bf16 %v2044_v2  ;;  %v5060_v4 = vpop.permute.xlu0 %1185 }
 0x327   :  { %v2047_v9 = vpack.c.bf16 %v1608_v3, %v1604_v1  ;;  %v1450_v11 = vpop.f32.mrb[56].mxu0 }
 0x328   :  { %3630 = vtanh.bf16 %v2045_v6  ;;  %v1611_v12 = vpop.f32.mrb[56].mxu1  ;;  %v1452_v17 = vpop.f32.mrb[57].mxu0  ;;  %v1451_v25 = vadd.f32 %v1450_v11, %v5036_v7 }
 0x329   :  { %3632 = vtanh.bf16 %v2047_v9  ;;  %v1613_v18 = vpop.f32.mrb[57].mxu1  ;;  %v1454_v21 = vpop.f32.mrb[58].mxu0  ;;  %v1612_v32 = vadd.f32 %v1611_v12, %v5036_v7  ;;  %v1453_v33 = vadd.f32 %v1452_v17, %v5036_v7 }
 0x32a   :  { %v3621_v55 = vpop.eup %3620  ;;  %3634 = vtanh.bf16 %v2046_v5  ;;  %v1455_v26 = vadd.f32 %v1454_v21, %v5038_v10  ;;  %v1615_v27 = vpop.f32.mrb[58].mxu1  ;;  %v1614_v24 = vadd.f32 %v1613_v18, %v5036_v7 }
 0x32b   :  { %v1456_v29 = vpop.f32.mrb[59].mxu0  ;;  %v3623_v31 = vpop.eup %3622  ;;  %v1616_v34 = vadd.f32 %v1615_v27, %v5038_v10 }
 0x32c   :  { %v1457_v35 = vadd.f32 %v1456_v29, %v5038_v10  ;;  %v1617_v36 = vpop.f32.mrb[59].mxu1  ;;  %v3625_v37 = vpop.eup %3624  ;;  %v2052_v38 = vpack.c.bf16 %v1455_v26, %v1451_v25  ;;  %2429 = vmatprep.subr.bf16.mxu0 %v3623_v31 }
 0x32d   :  { %v1618_v39 = vadd.f32 %v1617_v36, %v5038_v10  ;;  %v3627_v40 = vpop.eup %3626  ;;  %v2054_v13 = vpack.c.bf16 %v1616_v34, %v1612_v32  ;;  %2530 = vmatprep.subr.bf16.mxu1 %v3625_v37  ;;  %2430 = vmatpush1.bf16.msra.mxu0 %v3621_v55  ;;  %v5062_v6 = vpop.permute.xlu1 %1190 }
 0x32e   :  { %v2053_v16 = vpack.c.bf16 %v1457_v35, %v1453_v33  ;;  %2531 = vmatpush1.bf16.msra.mxu1 %v3627_v40  ;;  %3636 = vtanh.bf16 %v2052_v38 }
 0x32f   :  { %v2055_v41 = vpack.c.bf16 %v1618_v39, %v1614_v24  ;;  %v1460_v43 = vpop.f32.mrb[60].mxu0 }
 0x330   :  { %3638 = vtanh.bf16 %v2053_v16  ;;  %v1621_v62 = vpop.f32.mrb[60].mxu1  ;;  %v1462_v44 = vpop.f32.mrb[61].mxu0  ;;  %v1461_v49 = vadd.f32 %v1460_v43, %v5048_v30 }
 0x331   :  { %3640 = vtanh.bf16 %v2055_v41  ;;  %v1623_v45 = vpop.f32.mrb[61].mxu1  ;;  %v1464_v46 = vpop.f32.mrb[62].mxu0  ;;  %v1622_v54 = vadd.f32 %v1621_v62, %v5048_v30  ;;  %v1463_v56 = vadd.f32 %v1462_v44, %v5048_v30 }
 0x332   :  { %v3629_v47 = vpop.eup %3628  ;;  %3642 = vtanh.bf16 %v2054_v13  ;;  %v1465_v50 = vadd.f32 %v1464_v46, %v5050_v42  ;;  %v1625_v51 = vpop.f32.mrb[62].mxu1  ;;  %v1624_v22 = vadd.f32 %v1623_v45, %v5048_v30 }
 0x333   :  { %v1466_v52 = vpop.f32.mrb[63].mxu0  ;;  %v3631_v53 = vpop.eup %3630  ;;  %v1626_v48 = vadd.f32 %v1625_v51, %v5050_v42 }
 0x334   :  { %v1467_v59 = vadd.f32 %v1466_v52, %v5050_v42  ;;  %v1627_v60 = vpop.f32.mrb[63].mxu1  ;;  %v3633_v61 = vpop.eup %3632  ;;  %v2060_v0 = vpack.c.bf16 %v1465_v50, %v1461_v49  ;;  %2431 = vmatprep.subr.bf16.mxu0 %v3631_v53 }
 0x335   :  { %v1628_v20 = vadd.f32 %v1627_v60, %v5050_v42  ;;  %v3635_v1 = vpop.eup %3634  ;;  %v2062_v2 = vpack.c.bf16 %v1626_v48, %v1622_v54  ;;  %2532 = vmatprep.subr.bf16.mxu1 %v3633_v61  ;;  %2432 = vmatpush1.bf16.msra.mxu0 %v3629_v47  ;;  %v5072_v16 = vpop.permute.xlu0 %1195 }
 0x336   :  { %v2061_v3 = vpack.c.bf16 %v1467_v59, %v1463_v56  ;;  %2533 = vmatpush1.bf16.msra.mxu1 %v3635_v1  ;;  %3644 = vtanh.bf16 %v2060_v0  ;;  %v5074_v43 = vpop.permute.xlu1 %1200 }
 0x337   :  { %v2063_v5 = vpack.c.bf16 %v1628_v20, %v1624_v22  ;;  %v1470_v9 = vpop.f32.mrb[64].mxu0 }
 0x338   :  { %3646 = vtanh.bf16 %v2061_v3  ;;  %v1631_v11 = vpop.f32.mrb[64].mxu1  ;;  %v1472_v12 = vpop.f32.mrb[65].mxu0  ;;  %v1471_v55 = vadd.f32 %v1470_v9, %v5060_v4 }
 0x339   :  { %3648 = vtanh.bf16 %v2063_v5  ;;  %v1633_v17 = vpop.f32.mrb[65].mxu1  ;;  %v1474_v18 = vpop.f32.mrb[66].mxu0  ;;  %v1632_v31 = vadd.f32 %v1631_v11, %v5060_v4  ;;  %v1473_v32 = vadd.f32 %v1472_v12, %v5060_v4 }
 0x33a   :  { %v3637_v21 = vpop.eup %3636  ;;  %3650 = vtanh.bf16 %v2062_v2  ;;  %v1475_v25 = vadd.f32 %v1474_v18, %v5062_v6  ;;  %v1635_v26 = vpop.f32.mrb[66].mxu1  ;;  %v1634_v37 = vadd.f32 %v1633_v17, %v5060_v4 }
 0x33b   :  { %v1476_v27 = vpop.f32.mrb[67].mxu0  ;;  %v3639_v29 = vpop.eup %3638  ;;  %v1636_v33 = vadd.f32 %v1635_v26, %v5062_v6 }
 0x33c   :  { %v1477_v34 = vadd.f32 %v1476_v27, %v5062_v6  ;;  %v1637_v35 = vpop.f32.mrb[67].mxu1  ;;  %v3641_v36 = vpop.eup %3640  ;;  %v2068_v24 = vpack.c.bf16 %v1475_v25, %v1471_v55  ;;  %2433 = vmatprep.subr.bf16.mxu0 %v3639_v29 }
 0x33d   :  { %v1638_v38 = vadd.f32 %v1637_v35, %v5062_v6  ;;  %v3643_v39 = vpop.eup %3642  ;;  %v2070_v40 = vpack.c.bf16 %v1636_v33, %v1632_v31  ;;  %2534 = vmatprep.subr.bf16.mxu1 %v3641_v36  ;;  %2434 = vmatpush1.bf16.msra.mxu0 %v3637_v21  ;;  %v5084_v9 = vpop.permute.xlu0 %1205 }
 0x33e   :  { %v2069_v13 = vpack.c.bf16 %v1477_v34, %v1473_v32  ;;  %2535 = vmatpush1.bf16.msra.mxu1 %v3643_v39  ;;  %3652 = vtanh.bf16 %v2068_v24  ;;  %v5086_v12 = vpop.permute.xlu1 %1210 }
 0x33f   :  { %v2071_v41 = vpack.c.bf16 %v1638_v38, %v1634_v37  ;;  %v1480_v62 = vpop.f32.mrb[68].mxu0 }
 0x340   :  { %3654 = vtanh.bf16 %v2069_v13  ;;  %v1641_v44 = vpop.f32.mrb[68].mxu1  ;;  %v1482_v45 = vpop.f32.mrb[69].mxu0  ;;  %v1481_v50 = vadd.f32 %v1480_v62, %v5072_v16 }
 0x341   :  { %3656 = vtanh.bf16 %v2071_v41  ;;  %v1643_v46 = vpop.f32.mrb[69].mxu1  ;;  %v1484_v47 = vpop.f32.mrb[70].mxu0  ;;  %v1642_v56 = vadd.f32 %v1641_v44, %v5072_v16  ;;  %v1483_v48 = vadd.f32 %v1482_v45, %v5072_v16 }
 0x342   :  { %v3645_v49 = vpop.eup %3644  ;;  %3658 = vtanh.bf16 %v2070_v40  ;;  %v1485_v51 = vadd.f32 %v1484_v47, %v5074_v43  ;;  %v1645_v52 = vpop.f32.mrb[70].mxu1  ;;  %v1644_v0 = vadd.f32 %v1643_v46, %v5072_v16 }
 0x343   :  { %v1486_v53 = vpop.f32.mrb[71].mxu0  ;;  %v3647_v54 = vpop.eup %3646  ;;  %v1646_v59 = vadd.f32 %v1645_v52, %v5074_v43 }
 0x344   :  { %v1487_v60 = vadd.f32 %v1486_v53, %v5074_v43  ;;  %v1647_v61 = vpop.f32.mrb[71].mxu1  ;;  %v3649_v22 = vpop.eup %3648  ;;  %v2076_v20 = vpack.c.bf16 %v1485_v51, %v1481_v50  ;;  %2435 = vmatprep.subr.bf16.mxu0 %v3647_v54 }
 0x345   :  { %v1648_v1 = vadd.f32 %v1647_v61, %v5074_v43  ;;  %v3651_v2 = vpop.eup %3650  ;;  %v2078_v3 = vpack.c.bf16 %v1646_v59, %v1642_v56  ;;  %2536 = vmatprep.subr.bf16.mxu1 %v3649_v22  ;;  %2436 = vmatpush1.bf16.msra.mxu0 %v3645_v49  ;;  %v5096_v45 = vpop.permute.xlu0 %1215 }
 0x346   :  { %v2077_v5 = vpack.c.bf16 %v1487_v60, %v1483_v48  ;;  %2537 = vmatpush1.bf16.msra.mxu1 %v3651_v2  ;;  %3660 = vtanh.bf16 %v2076_v20  ;;  %v5098_v47 = vpop.permute.xlu1 %1220 }
 0x347   :  { %v2079_v11 = vpack.c.bf16 %v1648_v1, %v1644_v0  ;;  %v1490_v17 = vpop.f32.mrb[72].mxu0 }
 0x348   :  { %3662 = vtanh.bf16 %v2077_v5  ;;  %v1651_v18 = vpop.f32.mrb[72].mxu1  ;;  %v1492_v21 = vpop.f32.mrb[73].mxu0  ;;  %v1491_v27 = vadd.f32 %v1490_v17, %v5084_v9 }
 0x349   :  { %3664 = vtanh.bf16 %v2079_v11  ;;  %v1653_v55 = vpop.f32.mrb[73].mxu1  ;;  %v1494_v25 = vpop.f32.mrb[74].mxu0  ;;  %v1652_v34 = vadd.f32 %v1651_v18, %v5084_v9  ;;  %v1493_v35 = vadd.f32 %v1492_v21, %v5084_v9 }
 0x34a   :  { %v3653_v26 = vpop.eup %3652  ;;  %3666 = vtanh.bf16 %v2078_v3  ;;  %v1495_v29 = vadd.f32 %v1494_v25, %v5086_v12  ;;  %v1655_v31 = vpop.f32.mrb[74].mxu1  ;;  %v1654_v39 = vadd.f32 %v1653_v55, %v5084_v9 }
 0x34b   :  { %v1496_v32 = vpop.f32.mrb[75].mxu0  ;;  %v3655_v33 = vpop.eup %3654  ;;  %v1656_v36 = vadd.f32 %v1655_v31, %v5086_v12 }
 0x34c   :  { %v1497_v37 = vadd.f32 %v1496_v32, %v5086_v12  ;;  %v1657_v24 = vpop.f32.mrb[75].mxu1  ;;  %v3657_v38 = vpop.eup %3656  ;;  %v2084_v40 = vpack.c.bf16 %v1495_v29, %v1491_v27  ;;  %2437 = vmatprep.subr.bf16.mxu0 %v3655_v33 }
 0x34d   :  { %v1658_v13 = vadd.f32 %v1657_v24, %v5086_v12  ;;  %v3659_v41 = vpop.eup %3658  ;;  %v2086_v62 = vpack.c.bf16 %v1656_v36, %v1652_v34  ;;  %2538 = vmatprep.subr.bf16.mxu1 %v3657_v38  ;;  %2438 = vmatpush1.bf16.msra.mxu0 %v3653_v26  ;;  %v5108_v25 = vpop.permute.xlu0 %1225 }
 0x34e   :  { %v2085_v44 = vpack.c.bf16 %v1497_v37, %v1493_v35  ;;  %2539 = vmatpush1.bf16.msra.mxu1 %v3659_v41  ;;  %3668 = vtanh.bf16 %v2084_v40  ;;  %v5110_v27 = vpop.permute.xlu1 %1230 }
 0x34f   :  { %v2087_v46 = vpack.c.bf16 %v1658_v13, %v1654_v39  ;;  %v1500_v49 = vpop.f32.mrb[76].mxu0 }
 0x350   :  { %3670 = vtanh.bf16 %v2085_v44  ;;  %v1661_v50 = vpop.f32.mrb[76].mxu1  ;;  %v1502_v51 = vpop.f32.mrb[77].mxu0  ;;  %v1501_v56 = vadd.f32 %v1500_v49, %v5096_v45 }
 0x351   :  { %3672 = vtanh.bf16 %v2087_v46  ;;  %v1663_v52 = vpop.f32.mrb[77].mxu1  ;;  %v1504_v53 = vpop.f32.mrb[78].mxu0  ;;  %v1662_v22 = vadd.f32 %v1661_v50, %v5096_v45  ;;  %v1503_v0 = vadd.f32 %v1502_v51, %v5096_v45 }
 0x352   :  { %v3661_v54 = vpop.eup %3660  ;;  %3674 = vtanh.bf16 %v2086_v62  ;;  %v1505_v48 = vadd.f32 %v1504_v53, %v5098_v47  ;;  %v1665_v59 = vpop.f32.mrb[78].mxu1  ;;  %v1664_v5 = vadd.f32 %v1663_v52, %v5096_v45 }
 0x353   :  { %v1506_v60 = vpop.f32.mrb[79].mxu0  ;;  %v3663_v61 = vpop.eup %3662  ;;  %v1666_v20 = vadd.f32 %v1665_v59, %v5098_v47 }
 0x354   :  { %v1507_v1 = vadd.f32 %v1506_v60, %v5098_v47  ;;  %v1667_v2 = vpop.f32.mrb[79].mxu1  ;;  %v3665_v3 = vpop.eup %3664  ;;  %v2092_v11 = vpack.c.bf16 %v1505_v48, %v1501_v56  ;;  %2439 = vmatprep.subr.bf16.mxu0 %v3663_v61 }
 0x355   :  { %v1668_v17 = vadd.f32 %v1667_v2, %v5098_v47  ;;  %v3667_v18 = vpop.eup %3666  ;;  %v2094_v21 = vpack.c.bf16 %v1666_v20, %v1662_v22  ;;  %2540 = vmatprep.subr.bf16.mxu1 %v3665_v3  ;;  %2440 = vmatpush1.bf16.msra.mxu0 %v3661_v54  ;;  %v5120_v56 = vpop.permute.xlu0 %1235 }
 0x356   :  { %v2093_v55 = vpack.c.bf16 %v1507_v1, %v1503_v0  ;;  %2541 = vmatpush1.bf16.msra.mxu1 %v3667_v18  ;;  %3676 = vtanh.bf16 %v2092_v11  ;;  %v5122_v59 = vpop.permute.xlu1 %1240 }
 0x357   :  { %v2095_v26 = vpack.c.bf16 %v1668_v17, %v1664_v5  ;;  %v1510_v29 = vpop.f32.mrb[80].mxu0 }
 0x358   :  { %3678 = vtanh.bf16 %v2093_v55  ;;  %v1671_v31 = vpop.f32.mrb[80].mxu1  ;;  %v1512_v32 = vpop.f32.mrb[81].mxu0  ;;  %v1511_v36 = vadd.f32 %v1510_v29, %v5108_v25 }
 0x359   :  { %3680 = vtanh.bf16 %v2095_v26  ;;  %v1673_v33 = vpop.f32.mrb[81].mxu1  ;;  %v1514_v34 = vpop.f32.mrb[82].mxu0  ;;  %v1672_v40 = vadd.f32 %v1671_v31, %v5108_v25  ;;  %v1513_v13 = vadd.f32 %v1512_v32, %v5108_v25 }
 0x35a   :  { %v3669_v35 = vpop.eup %3668  ;;  %3682 = vtanh.bf16 %v2094_v21  ;;  %v1515_v37 = vadd.f32 %v1514_v34, %v5110_v27  ;;  %v1675_v24 = vpop.f32.mrb[82].mxu1  ;;  %v1674_v49 = vadd.f32 %v1673_v33, %v5108_v25 }
 0x35b   :  { %v1516_v38 = vpop.f32.mrb[83].mxu0  ;;  %v3671_v39 = vpop.eup %3670  ;;  %v1676_v41 = vadd.f32 %v1675_v24, %v5110_v27 }
 0x35c   :  { %v1517_v62 = vadd.f32 %v1516_v38, %v5110_v27  ;;  %v1677_v44 = vpop.f32.mrb[83].mxu1  ;;  %v3673_v46 = vpop.eup %3672  ;;  %v2100_v50 = vpack.c.bf16 %v1515_v37, %v1511_v36  ;;  %2441 = vmatprep.subr.bf16.mxu0 %v3671_v39 }
 0x35d   :  { %v1678_v51 = vadd.f32 %v1677_v44, %v5110_v27  ;;  %v3675_v52 = vpop.eup %3674  ;;  %v2102_v53 = vpack.c.bf16 %v1676_v41, %v1672_v40  ;;  %2542 = vmatprep.subr.bf16.mxu1 %v3673_v46  ;;  %2442 = vmatpush1.bf16.msra.mxu0 %v3669_v35  ;;  %v5132_v38 = vpop.permute.xlu0 %1245 }
 0x35e   :  { %v2101_v54 = vpack.c.bf16 %v1517_v62, %v1513_v13  ;;  %2543 = vmatpush1.bf16.msra.mxu1 %v3675_v52  ;;  %3684 = vtanh.bf16 %v2100_v50 }
 0x35f   :  { %v2103_v48 = vpack.c.bf16 %v1678_v51, %v1674_v49  ;;  %v1520_v60 = vpop.f32.mrb[84].mxu0 }
 0x360   :  { %3686 = vtanh.bf16 %v2101_v54  ;;  %v1681_v61 = vpop.f32.mrb[84].mxu1  ;;  %v1522_v22 = vpop.f32.mrb[85].mxu0  ;;  %v1521_v2 = vadd.f32 %v1520_v60, %v5120_v56 }
 0x361   :  { %3688 = vtanh.bf16 %v2103_v48  ;;  %v1683_v0 = vpop.f32.mrb[85].mxu1  ;;  %v1524_v20 = vpop.f32.mrb[86].mxu0  ;;  %v1682_v18 = vadd.f32 %v1681_v61, %v5120_v56  ;;  %v1523_v21 = vadd.f32 %v1522_v22, %v5120_v56 }
 0x362   :  { %v3677_v1 = vpop.eup %3676  ;;  %3690 = vtanh.bf16 %v2102_v53  ;;  %v1525_v3 = vadd.f32 %v1524_v20, %v5122_v59  ;;  %v1685_v5 = vpop.f32.mrb[86].mxu1  ;;  %v1684_v32 = vadd.f32 %v1683_v0, %v5120_v56 }
 0x363   :  { %v1526_v11 = vpop.f32.mrb[87].mxu0  ;;  %v3679_v17 = vpop.eup %3678  ;;  %v1686_v55 = vadd.f32 %v1685_v5, %v5122_v59 }
 0x364   :  { %v1527_v26 = vadd.f32 %v1526_v11, %v5122_v59  ;;  %v1687_v29 = vpop.f32.mrb[87].mxu1  ;;  %v3681_v31 = vpop.eup %3680  ;;  %v2108_v33 = vpack.c.bf16 %v1525_v3, %v1521_v2  ;;  %2443 = vmatprep.subr.bf16.mxu0 %v3679_v17 }
 0x365   :  { %v1688_v34 = vadd.f32 %v1687_v29, %v5122_v59  ;;  %v3683_v35 = vpop.eup %3682  ;;  %v2110_v36 = vpack.c.bf16 %v1686_v55, %v1682_v18  ;;  %2544 = vmatprep.subr.bf16.mxu1 %v3681_v31  ;;  %2444 = vmatpush1.bf16.msra.mxu0 %v3677_v1 }
 0x366   :  { %v2109_v37 = vpack.c.bf16 %v1527_v26, %v1523_v21  ;;  %2545 = vmatpush1.bf16.msra.mxu1 %v3683_v35  ;;  %3692 = vtanh.bf16 %v2108_v33 }
 0x367   :  { %v2111_v24 = vpack.c.bf16 %v1688_v34, %v1684_v32  ;;  %v1530_v39 = vpop.f32.mrb[88].mxu0 }
 0x368   :  { %3694 = vtanh.bf16 %v2109_v37  ;;  %v1531_v40 = vadd.f32 %v1530_v39, %v5132_v38  ;;  %v1691_v13 = vpop.f32.mrb[88].mxu1  ;;  %v1532_v41 = vpop.f32.mrb[89].mxu0 }
 0x369   :  { %3696 = vtanh.bf16 %v2111_v24  ;;  %v1692_v62 = vadd.f32 %v1691_v13, %v5132_v38  ;;  %v1533_v44 = vadd.f32 %v1532_v41, %v5132_v38  ;;  %v1693_v46 = vpop.f32.mrb[89].mxu1  ;;  %v1534_v49 = vpop.f32.mrb[90].mxu0 }
 0x36a   :  { %v3685_v50 = vpop.eup %3684  ;;  %3698 = vtanh.bf16 %v2110_v36  ;;  %v2116_v51 = vpack.c.bf16 %v1531_v40, %v1531_v40  ;;  %v1694_v52 = vadd.f32 %v1693_v46, %v5132_v38  ;;  %v1695_v53 = vpop.f32.mrb[90].mxu1 }
 0x36b   :  { %v1535_v54 = vpop.f32.mrb[91].mxu0  ;;  %v3687_v48 = vpop.eup %3686  ;;  %v2118_v60 = vpack.c.bf16 %v1692_v62, %v1692_v62  ;;  %v2117_v61 = vpack.c.bf16 %v1533_v44, %v1533_v44 }
 0x36c   :  { %v1696_v22 = vpop.f32.mrb[91].mxu1  ;;  %v3689_v0 = vpop.eup %3688  ;;  %3700 = vtanh.bf16 %v2116_v51  ;;  %v2119_v20 = vpack.c.bf16 %v1694_v52, %v1694_v52  ;;  %2445 = vmatprep.subr.bf16.mxu0 %v3687_v48 }
 0x36d   :  { %v3691_v1 = vpop.eup %3690  ;;  %3702 = vtanh.bf16 %v2118_v60  ;;  %2546 = vmatprep.subr.bf16.mxu1 %v3689_v0  ;;  %2446 = vmatpush1.bf16.msra.mxu0 %v3685_v50 }
 0x36e   :  { %3704 = vtanh.bf16 %v2117_v61  ;;  %2547 = vmatpush1.bf16.msra.mxu1 %v3691_v1 }
 0x36f   :  { %3706 = vtanh.bf16 %v2119_v20  ;;  %v1732_v2 = vpop.f32.mrb[92].mxu0 }
 0x370   :  { %v1893_v3 = vpop.f32.mrb[92].mxu1  ;;  %v1734_v5 = vpop.f32.mrb[93].mxu0  ;;  %v1733_v21 = vadd.f32 %v1732_v2, %v4988_v14  ;;  %v5155_v2 = vld [vmem:[%s5563_s7] ss:$8 sps:$4 sm:$0xff]  }
 0x371   :  { %v1895_v11 = vpop.f32.mrb[93].mxu1  ;;  %v1736_v17 = vpop.f32.mrb[94].mxu0  ;;  %v1894_v32 = vadd.f32 %v1893_v3, %v4988_v14  ;;  %v1735_v33 = vadd.f32 %v1734_v5, %v4988_v14 }
 0x372   :  { %v3693_v18 = vpop.eup %3692  ;;  %v1737_v55 = vadd.f32 %v1736_v17, %v4990_v15  ;;  %v1897_v26 = vpop.f32.mrb[94].mxu1  ;;  %v1896_v24 = vadd.f32 %v1895_v11, %v4988_v14 }
 0x373   :  { %v1738_v29 = vpop.f32.mrb[95].mxu0  ;;  %v3695_v31 = vpop.eup %3694  ;;  %v1898_v34 = vadd.f32 %v1897_v26, %v4990_v15 }
 0x374   :  { %v1739_v35 = vadd.f32 %v1738_v29, %v4990_v15  ;;  %v1899_v36 = vpop.f32.mrb[95].mxu1  ;;  %v3697_v37 = vpop.eup %3696  ;;  %v2024_v39 = vpack.c.bf16 %v1737_v55, %v1733_v21  ;;  %2447 = vmatprep.subr.bf16.mxu0 %v3695_v31 }
 0x375   :  { %v1900_v40 = vadd.f32 %v1899_v36, %v4990_v15  ;;  %v3699_v13 = vpop.eup %3698  ;;  %v2026_v41 = vpack.c.bf16 %v1898_v34, %v1894_v32  ;;  %2548 = vmatprep.subr.bf16.mxu1 %v3697_v37  ;;  %2448 = vmatpush1.bf16.msra.mxu0 %v3693_v18  ;;  %v5164_v18 = vld [vmem:[%s5563_s7 + $0x14] ss:$8 sps:$4 sm:$0xff]  }
 0x376   :  { %v2025_v62 = vpack.c.bf16 %v1739_v35, %v1735_v33  ;;  %2549 = vmatpush1.bf16.msra.mxu1 %v3699_v13  ;;  %3708 = vtanh.bf16 %v2024_v39  ;;  %v5179_v13 = vld [vmem:[%s5563_s7 + $0x10] ss:$8 sps:$4 sm:$0xff]  }
 0x377   :  { %v2027_v44 = vpack.c.bf16 %v1900_v40, %v1896_v24  ;;  %v3701_v46 = vpop.eup %3700  ;;  %v1742_v49 = vpop.f32.mrb[96].mxu0 }
 0x378   :  { %v3703_v50 = vpop.eup %3702  ;;  %3710 = vtanh.bf16 %v2025_v62  ;;  %v1903_v51 = vpop.f32.mrb[96].mxu1  ;;  %v2402_v14 = vsel %vm1351_vm3, %v3701_v46, 0  ;;  %v1743_v61 = vadd.f32 %v1742_v49, %v5000_v57 }
 0x379   :  { %v1744_v52 = vpop.f32.mrb[97].mxu0  ;;  %v3705_v53 = vpop.eup %3704  ;;  %3712 = vtanh.bf16 %v2027_v44  ;;  %v2408_v48 = vsel %vm1351_vm3, %v3703_v50, 0  ;;  %v1904_v22 = vadd.f32 %v1903_v51, %v5000_v57  ;;  %v5188_v51 = vld [vmem:[%s5563_s7 + $0x24] ss:$8 sps:$4 sm:$0xff]  }
 0x37a   :  { %v1905_v15 = vpop.f32.mrb[97].mxu1  ;;  %v1746_v54 = vpop.f32.mrb[98].mxu0  ;;  %3714 = vtanh.bf16 %v2026_v41  ;;  %3329 = vmatprep.subr.msk.bf16.mxu0 %vm1351_vm3, %v3705_v53  ;;  %v1745_v3 = vadd.f32 %v1744_v52, %v5000_v57 }
 0x37b   :  { %v3707_v60 = vpop.eup %3706  ;;  %v1747_v0 = vadd.f32 %v1746_v54, %v5002_v58  ;;  %v1907_v20 = vpop.f32.mrb[98].mxu1  ;;  %2450 = vmatpush1.bf16.msra.mxu0 %v2402_v14  ;;  %v1906_v21 = vadd.f32 %v1905_v15, %v5000_v57 }
 0x37c   :  { %v1748_v1 = vpop.f32.mrb[99].mxu0  ;;  %v1908_v5 = vadd.f32 %v1907_v20, %v5002_v58  ;;  %3337 = vmatprep.subr.msk.bf16.mxu1 %vm1351_vm3, %v3707_v60  ;;  %v1909_v17 = vpop.f32.mrb[99].mxu1 }
 0x37d   :  { %v1749_v11 = vadd.f32 %v1748_v1, %v5002_v58  ;;  %v2032_v55 = vpack.c.bf16 %v1747_v0, %v1743_v61  ;;  %v1910_v26 = vadd.f32 %v1909_v17, %v5002_v58  ;;  %2551 = vmatpush1.bf16.msra.mxu1 %v2408_v48 }
 0x37e   :  { %v2034_v29 = vpack.c.bf16 %v1908_v5, %v1904_v22  ;;  %2458 = vmatmul.mubr.bf16.vlgmr.msra.gmra.mrb[144].mxu0 %v5155_v2 }
 0x37f   :  { %v2033_v31 = vpack.c.bf16 %v1749_v11, %v1745_v3  ;;  %v2035_v32 = vpack.c.bf16 %v1910_v26, %v1906_v21  ;;  %3716 = vtanh.bf16 %v2032_v55  ;;  %v1752_v33 = vpop.f32.mrb[100].mxu0  ;;  %3331 = vmatprep.mubr.msk.bf16.mxu0 %vm2379_vm5, %v5164_v18  ;;  %v5203_v21 = vld [vmem:[%s5563_s7 + $0x20] ss:$8 sps:$4 sm:$0xff]  }
 0x380   :  { %2559 = vmatmul.mubr.bf16.vlgmr.msra.gmra.mrb[144].mxu1 %v5155_v2  ;;  %v1913_v34 = vpop.f32.mrb[100].mxu1  ;;  %v1754_v35 = vpop.f32.mrb[101].mxu0  ;;  %v1753_v37 = vadd.f32 %v1752_v33, %v5012_v19 }
 0x381   :  { %3718 = vtanh.bf16 %v2033_v31  ;;  %3339 = vmatprep.mubr.msk.bf16.mxu1 %vm2379_vm5, %v5164_v18  ;;  %v1915_v57 = vpop.f32.mrb[101].mxu1  ;;  %v1756_v58 = vpop.f32.mrb[102].mxu0  ;;  %v1914_v62 = vadd.f32 %v1913_v34, %v5012_v19  ;;  %v1755_v44 = vadd.f32 %v1754_v35, %v5012_v19  ;;  %v5212_v34 = vld [vmem:[%s5563_s7 + $0x34] ss:$8 sps:$4 sm:$0xff]  }
 0x382   :  { %3720 = vtanh.bf16 %v2035_v32  ;;  %v3709_v36 = vpop.eup %3708  ;;  %v1757_v24 = vadd.f32 %v1756_v58, %v5014_v23  ;;  %v1917_v39 = vpop.f32.mrb[102].mxu1  ;;  %v1916_v14 = vadd.f32 %v1915_v57, %v5012_v19 }
 0x383   :  { %3722 = vtanh.bf16 %v2034_v29  ;;  %v1758_v40 = vpop.f32.mrb[103].mxu0  ;;  %v3711_v41 = vpop.eup %3710  ;;  %v1918_v46 = vadd.f32 %v1917_v39, %v5014_v23 }
 0x384   :  { %v1759_v49 = vadd.f32 %v1758_v40, %v5014_v23  ;;  %v1919_v50 = vpop.f32.mrb[103].mxu1  ;;  %v3713_v52 = vpop.eup %3712  ;;  %v2040_v53 = vpack.c.bf16 %v1757_v24, %v1753_v37  ;;  %2627 = vmatprep.subr.bf16.mxu0 %v3711_v41 }
 0x385   :  { %v1920_v15 = vadd.f32 %v1919_v50, %v5014_v23  ;;  %v3715_v54 = vpop.eup %3714  ;;  %v2042_v48 = vpack.c.bf16 %v1918_v46, %v1914_v62  ;;  %2728 = vmatprep.subr.bf16.mxu1 %v3713_v52  ;;  %2628 = vmatpush1.bf16.msra.mxu0 %v3709_v36 }
 0x386   :  { %v2041_v60 = vpack.c.bf16 %v1759_v49, %v1755_v44  ;;  %2729 = vmatpush1.bf16.msra.mxu1 %v3715_v54  ;;  %2468 = vmatmul.mubr.bf16.gmra.mrb[148].mxu0 %v5179_v13  ;;  %3724 = vtanh.bf16 %v2040_v53  ;;  %v5227_v53 = vld [vmem:[%s5563_s7 + $0x30] ss:$8 sps:$4 sm:$0xff]  }
 0x387   :  { %v2043_v61 = vpack.c.bf16 %v1920_v15, %v1916_v14  ;;  %v1762_v22 = vpop.f32.mrb[104].mxu0  ;;  %3332 = vmatprep.mubr.msk.bf16.mxu0 %vm2379_vm5, %v5188_v51 }
 0x388   :  { %2569 = vmatmul.mubr.bf16.gmra.mrb[148].mxu1 %v5179_v13  ;;  %3726 = vtanh.bf16 %v2041_v60  ;;  %v1923_v19 = vpop.f32.mrb[104].mxu1  ;;  %v1764_v23 = vpop.f32.mrb[105].mxu0  ;;  %v1763_v3 = vadd.f32 %v1762_v22, %v5024_v63 }
 0x389   :  { %3340 = vmatprep.mubr.msk.bf16.mxu1 %vm2379_vm5, %v5188_v51  ;;  %3728 = vtanh.bf16 %v2043_v61  ;;  %v1925_v0 = vpop.f32.mrb[105].mxu1  ;;  %v1766_v20 = vpop.f32.mrb[106].mxu0  ;;  %v1924_v26 = vadd.f32 %v1923_v19, %v5024_v63  ;;  %v1765_v29 = vadd.f32 %v1764_v23, %v5024_v63  ;;  %v5236_v19 = vld [vmem:[%s5563_s7 + $0x44] ss:$8 sps:$4 sm:$0xff]  }
 0x38a   :  { %v3717_v1 = vpop.eup %3716  ;;  %3730 = vtanh.bf16 %v2042_v48  ;;  %v1767_v5 = vadd.f32 %v1766_v20, %v5026_v28  ;;  %v1927_v11 = vpop.f32.mrb[106].mxu1  ;;  %v1926_v57 = vadd.f32 %v1925_v0, %v5024_v63 }
 0x38b   :  { %v1768_v17 = vpop.f32.mrb[107].mxu0  ;;  %v1928_v31 = vadd.f32 %v1927_v11, %v5026_v28  ;;  %v1929_v33 = vpop.f32.mrb[107].mxu1 }
 0x38c   :  { %v3719_v55 = vpop.eup %3718  ;;  %v1769_v32 = vadd.f32 %v1768_v17, %v5026_v28  ;;  %v2048_v58 = vpack.c.bf16 %v1767_v5, %v1763_v3  ;;  %v1930_v36 = vadd.f32 %v1929_v33, %v5026_v28 }
 0x38d   :  { %v3721_v35 = vpop.eup %3720  ;;  %2629 = vmatprep.subr.bf16.mxu0 %v3719_v55  ;;  %v2050_v24 = vpack.c.bf16 %v1928_v31, %v1924_v26 }
 0x38e   :  { %v3723_v37 = vpop.eup %3722  ;;  %v2049_v39 = vpack.c.bf16 %v1769_v32, %v1765_v29  ;;  %2730 = vmatprep.subr.bf16.mxu1 %v3721_v35  ;;  %2630 = vmatpush1.bf16.msra.mxu0 %v3717_v1  ;;  %v2051_v40 = vpack.c.bf16 %v1930_v36, %v1926_v57  ;;  %3732 = vtanh.bf16 %v2048_v58  ;;  %v5251_v58 = vld [vmem:[%s5563_s7 + $0x40] ss:$8 sps:$4 sm:$0xff]  }
 0x38f   :  { %2731 = vmatpush1.bf16.msra.mxu1 %v3723_v37  ;;  %2478 = vmatmul.mubr.bf16.gmra.mrb[152].mxu0 %v5203_v21  ;;  %v1772_v41 = vpop.f32.mrb[108].mxu0 }
 0x390   :  { %2579 = vmatmul.mubr.bf16.gmra.mrb[152].mxu1 %v5203_v21  ;;  %3333 = vmatprep.mubr.msk.bf16.mxu0 %vm2379_vm5, %v5212_v34  ;;  %3734 = vtanh.bf16 %v2049_v39  ;;  %v1933_v63 = vpop.f32.mrb[108].mxu1  ;;  %v1774_v28 = vpop.f32.mrb[109].mxu0  ;;  %v1773_v49 = vadd.f32 %v1772_v41, %v5036_v7 }
 0x391   :  { %3341 = vmatprep.mubr.msk.bf16.mxu1 %vm2379_vm5, %v5212_v34  ;;  %3736 = vtanh.bf16 %v2051_v40  ;;  %v1935_v62 = vpop.f32.mrb[109].mxu1  ;;  %v1776_v44 = vpop.f32.mrb[110].mxu0  ;;  %v1934_v54 = vadd.f32 %v1933_v63, %v5036_v7  ;;  %v1775_v48 = vadd.f32 %v1774_v28, %v5036_v7  ;;  %v5260_v63 = vld [vmem:[%s5563_s7 + $0x54] ss:$8 sps:$4 sm:$0xff]  }
 0x392   :  { %v3725_v46 = vpop.eup %3724  ;;  %3738 = vtanh.bf16 %v2050_v24  ;;  %v1777_v50 = vadd.f32 %v1776_v44, %v5038_v10  ;;  %v1937_v52 = vpop.f32.mrb[110].mxu1  ;;  %v1936_v0 = vadd.f32 %v1935_v62, %v5036_v7 }
 0x393   :  { %v1778_v14 = vpop.f32.mrb[111].mxu0  ;;  %v3727_v15 = vpop.eup %3726  ;;  %v1938_v60 = vadd.f32 %v1937_v52, %v5038_v10 }
 0x394   :  { %v1779_v61 = vadd.f32 %v1778_v14, %v5038_v10  ;;  %v1939_v22 = vpop.f32.mrb[111].mxu1  ;;  %v3729_v23 = vpop.eup %3728  ;;  %v2056_v20 = vpack.c.bf16 %v1777_v50, %v1773_v49  ;;  %2631 = vmatprep.subr.bf16.mxu0 %v3727_v15 }
 0x395   :  { %v1940_v1 = vadd.f32 %v1939_v22, %v5038_v10  ;;  %v3731_v3 = vpop.eup %3730  ;;  %v2058_v5 = vpack.c.bf16 %v1938_v60, %v1934_v54  ;;  %2732 = vmatprep.subr.bf16.mxu1 %v3729_v23  ;;  %2632 = vmatpush1.bf16.msra.mxu0 %v3725_v46 }
 0x396   :  { %v2057_v11 = vpack.c.bf16 %v1779_v61, %v1775_v48  ;;  %2733 = vmatpush1.bf16.msra.mxu1 %v3731_v3  ;;  %3740 = vtanh.bf16 %v2056_v20 }
 0x397   :  { %v2059_v17 = vpack.c.bf16 %v1940_v1, %v1936_v0  ;;  %2488 = vmatmul.mubr.bf16.gmra.mrb[156].mxu0 %v5227_v53  ;;  %v1782_v55 = vpop.f32.mrb[112].mxu0  ;;  %v5278_v1 = vld [vmem:[%s5563_s7 + $0x50] ss:$8 sps:$4 sm:$0xff]  }
 0x398   :  { %2589 = vmatmul.mubr.bf16.gmra.mrb[156].mxu1 %v5227_v53  ;;  %3334 = vmatprep.mubr.msk.bf16.mxu0 %vm2379_vm5, %v5236_v19  ;;  %3742 = vtanh.bf16 %v2057_v11  ;;  %v1943_v7 = vpop.f32.mrb[112].mxu1  ;;  %v1784_v10 = vpop.f32.mrb[113].mxu0  ;;  %v1783_v32 = vadd.f32 %v1782_v55, %v5048_v30 }
 0x399   :  { %3342 = vmatprep.mubr.msk.bf16.mxu1 %vm2379_vm5, %v5236_v19  ;;  %3744 = vtanh.bf16 %v2059_v17  ;;  %v1945_v26 = vpop.f32.mrb[113].mxu1  ;;  %v1786_v29 = vpop.f32.mrb[114].mxu0  ;;  %v1944_v37 = vadd.f32 %v1943_v7, %v5048_v30  ;;  %v1785_v24 = vadd.f32 %v1784_v10, %v5048_v30 }
 0x39a   :  { %v3733_v31 = vpop.eup %3732  ;;  %3746 = vtanh.bf16 %v2058_v5  ;;  %v1787_v33 = vadd.f32 %v1786_v29, %v5050_v42  ;;  %v1947_v35 = vpop.f32.mrb[114].mxu1  ;;  %v1946_v62 = vadd.f32 %v1945_v26, %v5048_v30  ;;  %v2240_v30 = vld [vmem:[%s5563_s7 + $0x60] sm:$0x33] }
 0x39b   :  { %v1788_v57 = vpop.f32.mrb[115].mxu0  ;;  %v3735_v36 = vpop.eup %3734  ;;  %v1948_v39 = vadd.f32 %v1947_v35, %v5050_v42  ;;  %v5280_v3 = vcombine.high %v2240_v30, %v2240_v30 }
 0x39c   :  { %v1789_v40 = vadd.f32 %v1788_v57, %v5050_v42  ;;  %v1949_v41 = vpop.f32.mrb[115].mxu1  ;;  %v3737_v28 = vpop.eup %3736  ;;  %v2064_v44 = vpack.c.bf16 %v1787_v33, %v1783_v32  ;;  %2633 = vmatprep.subr.bf16.mxu0 %v3735_v36 }
 0x39d   :  { %v1950_v46 = vadd.f32 %v1949_v41, %v5050_v42  ;;  %v3739_v49 = vpop.eup %3738  ;;  %v2066_v50 = vpack.c.bf16 %v1948_v39, %v1944_v37  ;;  %2734 = vmatprep.subr.bf16.mxu1 %v3737_v28  ;;  %2634 = vmatpush1.bf16.msra.mxu0 %v3733_v31 }
 0x39e   :  { %v2065_v52 = vpack.c.bf16 %v1789_v40, %v1785_v24  ;;  %2735 = vmatpush1.bf16.msra.mxu1 %v3739_v49  ;;  %3748 = vtanh.bf16 %v2064_v44 }
 0x39f   :  { %v2067_v14 = vpack.c.bf16 %v1950_v46, %v1946_v62  ;;  %2498 = vmatmul.mubr.bf16.gmra.mrb[160].mxu0 %v5251_v58  ;;  %v1792_v15 = vpop.f32.mrb[116].mxu0  ;;  %v5296_v46 = vcombine.low %v2240_v30, %v2240_v30 }
 0x3a0   :  { %2599 = vmatmul.mubr.bf16.gmra.mrb[160].mxu1 %v5251_v58  ;;  %3335 = vmatprep.mubr.msk.bf16.mxu0 %vm2379_vm5, %v5260_v63  ;;  %3750 = vtanh.bf16 %v2065_v52  ;;  %v1953_v42 = vpop.f32.mrb[116].mxu1  ;;  %v1794_v54 = vpop.f32.mrb[117].mxu0  ;;  %v1793_v22 = vadd.f32 %v1792_v15, %v5060_v4 }
 0x3a1   :  { %3343 = vmatprep.mubr.msk.bf16.mxu1 %vm2379_vm5, %v5260_v63  ;;  %3752 = vtanh.bf16 %v2067_v14  ;;  %v1955_v48 = vpop.f32.mrb[117].mxu1  ;;  %v1796_v60 = vpop.f32.mrb[118].mxu0  ;;  %v1954_v11 = vadd.f32 %v1953_v42, %v5060_v4  ;;  %v1795_v17 = vadd.f32 %v1794_v54, %v5060_v4 }
 0x3a2   :  { %v3741_v61 = vpop.eup %3740  ;;  %3754 = vtanh.bf16 %v2066_v50  ;;  %v1797_v23 = vadd.f32 %v1796_v60, %v5062_v6  ;;  %v1957_v0 = vpop.f32.mrb[118].mxu1  ;;  %v1956_v29 = vadd.f32 %v1955_v48, %v5060_v4 }
 0x3a3   :  { %v1798_v20 = vpop.f32.mrb[119].mxu0  ;;  %v3743_v5 = vpop.eup %3742  ;;  %v1958_v55 = vadd.f32 %v1957_v0, %v5062_v6 }
 0x3a4   :  { %v1799_v7 = vadd.f32 %v1798_v20, %v5062_v6  ;;  %v1959_v10 = vpop.f32.mrb[119].mxu1  ;;  %v3745_v26 = vpop.eup %3744  ;;  %v2072_v31 = vpack.c.bf16 %v1797_v23, %v1793_v22  ;;  %2635 = vmatprep.subr.bf16.mxu0 %v3743_v5 }
 0x3a5   :  { %v1960_v32 = vadd.f32 %v1959_v10, %v5062_v6  ;;  %v3747_v33 = vpop.eup %3746  ;;  %v2074_v35 = vpack.c.bf16 %v1958_v55, %v1954_v11  ;;  %2736 = vmatprep.subr.bf16.mxu1 %v3745_v26  ;;  %2636 = vmatpush1.bf16.msra.mxu0 %v3741_v61 }
 0x3a6   :  { %v2073_v57 = vpack.c.bf16 %v1799_v7, %v1795_v17  ;;  %2737 = vmatpush1.bf16.msra.mxu1 %v3747_v33  ;;  %3756 = vtanh.bf16 %v2072_v31 }
 0x3a7   :  { %v2075_v36 = vpack.c.bf16 %v1960_v32, %v1956_v29  ;;  %2508 = vmatmul.mubr.bf16.gmra.mrb[164].mxu0 %v5278_v1  ;;  %v1802_v37 = vpop.f32.mrb[120].mxu0 }
 0x3a8   :  { %2609 = vmatmul.mubr.bf16.gmra.mrb[164].mxu1 %v5278_v1  ;;  %3336 = vmatprep.mubr.msk.bf16.mxu0 %vm2379_vm5, %v5280_v3  ;;  %3758 = vtanh.bf16 %v2073_v57  ;;  %v1963_v4 = vpop.f32.mrb[120].mxu1  ;;  %v1804_v6 = vpop.f32.mrb[121].mxu0  ;;  %v1803_v41 = vadd.f32 %v1802_v37, %v5072_v16 }
 0x3a9   :  { %3344 = vmatprep.mubr.msk.bf16.mxu1 %vm2379_vm5, %v5280_v3  ;;  %3760 = vtanh.bf16 %v2075_v36  ;;  %v1965_v24 = vpop.f32.mrb[121].mxu1  ;;  %v1806_v39 = vpop.f32.mrb[122].mxu0  ;;  %v1964_v50 = vadd.f32 %v1963_v4, %v5072_v16  ;;  %v1805_v52 = vadd.f32 %v1804_v6, %v5072_v16 }
 0x3aa   :  { %v3749_v40 = vpop.eup %3748  ;;  %3762 = vtanh.bf16 %v2074_v35  ;;  %v1807_v28 = vadd.f32 %v1806_v39, %v5074_v43  ;;  %v1967_v62 = vpop.f32.mrb[122].mxu1  ;;  %v1966_v48 = vadd.f32 %v1965_v24, %v5072_v16  ;;  %v3924_v16 = vld [vmem:[%s5563_s7 + $0x4] ss:$8 sps:$4 sm:$0xff]  }
 0x3ab   :  { %v1808_v44 = vpop.f32.mrb[123].mxu0  ;;  %v3751_v49 = vpop.eup %3750  ;;  %v1968_v14 = vadd.f32 %v1967_v62, %v5074_v43 }
 0x3ac   :  { %v1809_v15 = vadd.f32 %v1808_v44, %v5074_v43  ;;  %v1969_v42 = vpop.f32.mrb[123].mxu1  ;;  %v3753_v54 = vpop.eup %3752  ;;  %v2080_v60 = vpack.c.bf16 %v1807_v28, %v1803_v41  ;;  %2637 = vmatprep.subr.bf16.mxu0 %v3751_v49 }
 0x3ad   :  { %v1970_v61 = vadd.f32 %v1969_v42, %v5074_v43  ;;  %v3755_v22 = vpop.eup %3754  ;;  %v2082_v30 = vpack.c.bf16 %v1968_v14, %v1964_v50  ;;  %2738 = vmatprep.subr.bf16.mxu1 %v3753_v54  ;;  %2638 = vmatpush1.bf16.msra.mxu0 %v3749_v40 }
 0x3ae   :  { %v2081_v23 = vpack.c.bf16 %v1809_v15, %v1805_v52  ;;  %2739 = vmatpush1.bf16.msra.mxu1 %v3755_v22  ;;  %3764 = vtanh.bf16 %v2080_v60 }
 0x3af   :  { %v2083_v0 = vpack.c.bf16 %v1970_v61, %v1966_v48  ;;  %2518 = vmatmul.mubr.bf16.gmra.mrb[168].mxu0 %v5296_v46  ;;  %v1812_v20 = vpop.f32.mrb[124].mxu0 }
 0x3b0   :  { %2619 = vmatmul.mubr.bf16.gmra.mrb[168].mxu1 %v5296_v46  ;;  %3346 = vmatprep.mubr.msk.bf16.mxu0 %vm2379_vm5, %v3924_v16  ;;  %3766 = vtanh.bf16 %v2081_v23  ;;  %v1973_v43 = vpop.f32.mrb[124].mxu1  ;;  %v1814_v5 = vpop.f32.mrb[125].mxu0  ;;  %v1813_v7 = vadd.f32 %v1812_v20, %v5084_v9 }
 0x3b1   :  { %3354 = vmatprep.mubr.msk.bf16.mxu1 %vm2379_vm5, %v3924_v16  ;;  %3768 = vtanh.bf16 %v2083_v0  ;;  %v1975_v11 = vpop.f32.mrb[125].mxu1  ;;  %v1816_v17 = vpop.f32.mrb[126].mxu0  ;;  %v1974_v32 = vadd.f32 %v1973_v43, %v5084_v9  ;;  %v1815_v33 = vadd.f32 %v1814_v5, %v5084_v9 }
 0x3b2   :  { %v3757_v55 = vpop.eup %3756  ;;  %3770 = vtanh.bf16 %v2082_v30  ;;  %v1817_v10 = vadd.f32 %v1816_v17, %v5086_v12  ;;  %v1977_v26 = vpop.f32.mrb[126].mxu1  ;;  %v1976_v4 = vadd.f32 %v1975_v11, %v5084_v9 }
 0x3b3   :  { %v1818_v29 = vpop.f32.mrb[127].mxu0  ;;  %v3759_v31 = vpop.eup %3758  ;;  %v1978_v35 = vadd.f32 %v1977_v26, %v5086_v12 }
 0x3b4   :  { %v1819_v57 = vadd.f32 %v1818_v29, %v5086_v12  ;;  %v1979_v36 = vpop.f32.mrb[127].mxu1  ;;  %v3761_v37 = vpop.eup %3760  ;;  %v2088_v6 = vpack.c.bf16 %v1817_v10, %v1813_v7  ;;  %2639 = vmatprep.subr.bf16.mxu0 %v3759_v31 }
 0x3b5   :  { %v1980_v24 = vadd.f32 %v1979_v36, %v5086_v12  ;;  %v3763_v39 = vpop.eup %3762  ;;  %v2090_v40 = vpack.c.bf16 %v1978_v35, %v1974_v32  ;;  %2740 = vmatprep.subr.bf16.mxu1 %v3761_v37  ;;  %2640 = vmatpush1.bf16.msra.mxu0 %v3757_v55 }
 0x3b6   :  { %v2089_v41 = vpack.c.bf16 %v1819_v57, %v1815_v33  ;;  %2741 = vmatpush1.bf16.msra.mxu1 %v3763_v39  ;;  %3772 = vtanh.bf16 %v2088_v6 }
 0x3b7   :  { %v2091_v28 = vpack.c.bf16 %v1980_v24, %v1976_v4  ;;  %v1822_v62 = vpop.f32.mrb[128].mxu0 }
 0x3b8   :  { %3774 = vtanh.bf16 %v2089_v41  ;;  %v1983_v44 = vpop.f32.mrb[128].mxu1  ;;  %v1824_v49 = vpop.f32.mrb[129].mxu0  ;;  %v1823_v12 = vadd.f32 %v1822_v62, %v5096_v45 }
 0x3b9   :  { %3776 = vtanh.bf16 %v2091_v28  ;;  %v1985_v50 = vpop.f32.mrb[129].mxu1  ;;  %v1826_v52 = vpop.f32.mrb[130].mxu0  ;;  %v1984_v48 = vadd.f32 %v1983_v44, %v5096_v45  ;;  %v1825_v60 = vadd.f32 %v1824_v49, %v5096_v45 }
 0x3ba   :  { %v3765_v9 = vpop.eup %3764  ;;  %3778 = vtanh.bf16 %v2090_v40  ;;  %v1827_v14 = vadd.f32 %v1826_v52, %v5098_v47  ;;  %v1987_v15 = vpop.f32.mrb[130].mxu1  ;;  %v1986_v0 = vadd.f32 %v1985_v50, %v5096_v45 }
 0x3bb   :  { %v1828_v42 = vpop.f32.mrb[131].mxu0  ;;  %v3767_v54 = vpop.eup %3766  ;;  %v1988_v61 = vadd.f32 %v1987_v15, %v5098_v47 }
 0x3bc   :  { %v1829_v22 = vadd.f32 %v1828_v42, %v5098_v47  ;;  %v1989_v30 = vpop.f32.mrb[131].mxu1  ;;  %v3769_v23 = vpop.eup %3768  ;;  %v2096_v20 = vpack.c.bf16 %v1827_v14, %v1823_v12  ;;  %2641 = vmatprep.subr.bf16.mxu0 %v3767_v54 }
 0x3bd   :  { %v1990_v16 = vadd.f32 %v1989_v30, %v5098_v47  ;;  %v3771_v43 = vpop.eup %3770  ;;  %v2098_v5 = vpack.c.bf16 %v1988_v61, %v1984_v48  ;;  %2742 = vmatprep.subr.bf16.mxu1 %v3769_v23  ;;  %2642 = vmatpush1.bf16.msra.mxu0 %v3765_v9 }
 0x3be   :  { %v2097_v11 = vpack.c.bf16 %v1829_v22, %v1825_v60  ;;  %2743 = vmatpush1.bf16.msra.mxu1 %v3771_v43  ;;  %3780 = vtanh.bf16 %v2096_v20 }
 0x3bf   :  { %v2099_v17 = vpack.c.bf16 %v1990_v16, %v1986_v0  ;;  %v1832_v55 = vpop.f32.mrb[132].mxu0 }
 0x3c0   :  { %3782 = vtanh.bf16 %v2097_v11  ;;  %v1993_v7 = vpop.f32.mrb[132].mxu1  ;;  %v1834_v10 = vpop.f32.mrb[133].mxu0  ;;  %v1833_v47 = vadd.f32 %v1832_v55, %v5108_v25 }
 0x3c1   :  { %3784 = vtanh.bf16 %v2099_v17  ;;  %v1995_v26 = vpop.f32.mrb[133].mxu1  ;;  %v1836_v29 = vpop.f32.mrb[134].mxu0  ;;  %v1994_v57 = vadd.f32 %v1993_v7, %v5108_v25  ;;  %v1835_v36 = vadd.f32 %v1834_v10, %v5108_v25 }
 0x3c2   :  { %v3773_v45 = vpop.eup %3772  ;;  %3786 = vtanh.bf16 %v2098_v5  ;;  %v1837_v31 = vadd.f32 %v1836_v29, %v5110_v27  ;;  %v1997_v32 = vpop.f32.mrb[134].mxu1  ;;  %v1996_v39 = vadd.f32 %v1995_v26, %v5108_v25 }
 0x3c3   :  { %v1838_v33 = vpop.f32.mrb[135].mxu0  ;;  %v3775_v35 = vpop.eup %3774  ;;  %v1998_v37 = vadd.f32 %v1997_v32, %v5110_v27 }
 0x3c4   :  { %v1839_v4 = vadd.f32 %v1838_v33, %v5110_v27  ;;  %v1999_v6 = vpop.f32.mrb[135].mxu1  ;;  %v3777_v24 = vpop.eup %3776  ;;  %v2104_v40 = vpack.c.bf16 %v1837_v31, %v1833_v47  ;;  %2643 = vmatprep.subr.bf16.mxu0 %v3775_v35 }
 0x3c5   :  { %v2000_v41 = vadd.f32 %v1999_v6, %v5110_v27  ;;  %v3779_v28 = vpop.eup %3778  ;;  %v2106_v62 = vpack.c.bf16 %v1998_v37, %v1994_v57  ;;  %2744 = vmatprep.subr.bf16.mxu1 %v3777_v24  ;;  %2644 = vmatpush1.bf16.msra.mxu0 %v3773_v45 }
 0x3c6   :  { %v2105_v44 = vpack.c.bf16 %v1839_v4, %v1835_v36  ;;  %2745 = vmatpush1.bf16.msra.mxu1 %v3779_v28  ;;  %3788 = vtanh.bf16 %v2104_v40 }
 0x3c7   :  { %v2107_v49 = vpack.c.bf16 %v2000_v41, %v1996_v39  ;;  %v1842_v50 = vpop.f32.mrb[136].mxu0 }
 0x3c8   :  { %3790 = vtanh.bf16 %v2105_v44  ;;  %v2003_v52 = vpop.f32.mrb[136].mxu1  ;;  %v1844_v9 = vpop.f32.mrb[137].mxu0  ;;  %v1843_v27 = vadd.f32 %v1842_v50, %v5120_v56 }
 0x3c9   :  { %3792 = vtanh.bf16 %v2107_v49  ;;  %v2005_v12 = vpop.f32.mrb[137].mxu1  ;;  %v1846_v14 = vpop.f32.mrb[138].mxu0  ;;  %v2004_v60 = vadd.f32 %v2003_v52, %v5120_v56  ;;  %v1845_v61 = vadd.f32 %v1844_v9, %v5120_v56 }
 0x3ca   :  { %v3781_v25 = vpop.eup %3780  ;;  %3794 = vtanh.bf16 %v2106_v62  ;;  %v1847_v15 = vadd.f32 %v1846_v14, %v5122_v59  ;;  %v2007_v42 = vpop.f32.mrb[138].mxu1  ;;  %v2006_v20 = vadd.f32 %v2005_v12, %v5120_v56 }
 0x3cb   :  { %v1848_v54 = vpop.f32.mrb[139].mxu0  ;;  %v3783_v48 = vpop.eup %3782  ;;  %v2008_v22 = vadd.f32 %v2007_v42, %v5122_v59 }
 0x3cc   :  { %v1849_v30 = vadd.f32 %v1848_v54, %v5122_v59  ;;  %v2009_v23 = vpop.f32.mrb[139].mxu1  ;;  %v3785_v0 = vpop.eup %3784  ;;  %v2112_v16 = vpack.c.bf16 %v1847_v15, %v1843_v27  ;;  %2645 = vmatprep.subr.bf16.mxu0 %v3783_v48 }
 0x3cd   :  { %v2010_v43 = vadd.f32 %v2009_v23, %v5122_v59  ;;  %v3787_v5 = vpop.eup %3786  ;;  %v2114_v11 = vpack.c.bf16 %v2008_v22, %v2004_v60  ;;  %2746 = vmatprep.subr.bf16.mxu1 %v3785_v0  ;;  %2646 = vmatpush1.bf16.msra.mxu0 %v3781_v25 }
 0x3ce   :  { %v2113_v17 = vpack.c.bf16 %v1849_v30, %v1845_v61  ;;  %2747 = vmatpush1.bf16.msra.mxu1 %v3787_v5  ;;  %3796 = vtanh.bf16 %v2112_v16 }
 0x3cf   :  { %v2115_v55 = vpack.c.bf16 %v2010_v43, %v2006_v20  ;;  %v1852_v7 = vpop.f32.mrb[140].mxu0 }
 0x3d0   :  { %3798 = vtanh.bf16 %v2113_v17  ;;  %v1853_v10 = vadd.f32 %v1852_v7, %v5132_v38  ;;  %v2013_v26 = vpop.f32.mrb[140].mxu1  ;;  %v1854_v29 = vpop.f32.mrb[141].mxu0 }
 0x3d1   :  { %3800 = vtanh.bf16 %v2115_v55  ;;  %v2014_v56 = vadd.f32 %v2013_v26, %v5132_v38  ;;  %v1855_v59 = vadd.f32 %v1854_v29, %v5132_v38  ;;  %v2015_v45 = vpop.f32.mrb[141].mxu1  ;;  %v1856_v47 = vpop.f32.mrb[142].mxu0 }
 0x3d2   :  { %v3789_v31 = vpop.eup %3788  ;;  %3802 = vtanh.bf16 %v2114_v11  ;;  %v2120_v32 = vpack.c.bf16 %v1853_v10, %v1853_v10  ;;  %v2016_v33 = vadd.f32 %v2015_v45, %v5132_v38  ;;  %v2017_v35 = vpop.f32.mrb[142].mxu1 }
 0x3d3   :  { %v1857_v57 = vpop.f32.mrb[143].mxu0  ;;  %v3791_v36 = vpop.eup %3790  ;;  %v2122_v37 = vpack.c.bf16 %v2014_v56, %v2014_v56  ;;  %v2121_v4 = vpack.c.bf16 %v1855_v59, %v1855_v59 }
 0x3d4   :  { %v2018_v6 = vpop.f32.mrb[143].mxu1  ;;  %v3793_v24 = vpop.eup %3792  ;;  %3804 = vtanh.bf16 %v2120_v32  ;;  %v2123_v39 = vpack.c.bf16 %v2016_v33, %v2016_v33  ;;  %2647 = vmatprep.subr.bf16.mxu0 %v3791_v36 }
 0x3d5   :  { %v3795_v40 = vpop.eup %3794  ;;  %3806 = vtanh.bf16 %v2122_v37  ;;  %2748 = vmatprep.subr.bf16.mxu1 %v3793_v24  ;;  %2648 = vmatpush1.bf16.msra.mxu0 %v3789_v31 }
 0x3d6   :  { %3808 = vtanh.bf16 %v2121_v4  ;;  %2749 = vmatpush1.bf16.msra.mxu1 %v3795_v40 }
 0x3d7   :  { %3810 = vtanh.bf16 %v2123_v39 }
 0x3d9   :  { %v3797_v41 = vpop.eup %3796 }
 0x3db   :  { %v3799_v28 = vpop.eup %3798 }
 0x3dc   :  { %v3801_v38 = vpop.eup %3800  ;;  %2649 = vmatprep.subr.bf16.mxu0 %v3799_v28 }
 0x3dd   :  { %v3803_v62 = vpop.eup %3802  ;;  %2750 = vmatprep.subr.bf16.mxu1 %v3801_v38  ;;  %2650 = vmatpush1.bf16.msra.mxu0 %v3797_v41 }
 0x3de   :  { %2751 = vmatpush1.bf16.msra.mxu1 %v3803_v62 }
 0x3df   :  { %v3805_v44 = vpop.eup %3804 }
 0x3e0   :  { %v3807_v49 = vpop.eup %3806  ;;  %v2414_v50 = vsel %vm1351_vm3, %v3805_v44, 0 }
 0x3e1   :  { %v3809_v52 = vpop.eup %3808  ;;  %v2420_v9 = vsel %vm1351_vm3, %v3807_v49, 0 }
 0x3e2   :  { %v3811_v12 = vpop.eup %3810  ;;  %3345 = vmatprep.subr.msk.bf16.mxu0 %vm1351_vm3, %v3809_v52 }
 0x3e3   :  { %3353 = vmatprep.subr.msk.bf16.mxu1 %vm1351_vm3, %v3811_v12  ;;  %2652 = vmatpush1.bf16.msra.mxu0 %v2414_v50 }
 0x3e4   :  { %2753 = vmatpush1.bf16.msra.mxu1 %v2420_v9 }
 0x3e6   :  { %2660 = vmatmul.mubr.bf16.vlgmr.msra.gmra.mrb[172].mxu0 %v5155_v2 }
 0x3e7   :  { %2761 = vmatmul.mubr.bf16.vlgmr.msra.gmra.mrb[172].mxu1 %v5155_v2  ;;  %3347 = vmatprep.mubr.msk.bf16.mxu0 %vm2379_vm5, %v5164_v18  ;;  %v5391_v2 = vpop.permute.xlu0 %2261 }
 0x3e8   :  { %3355 = vmatprep.mubr.msk.bf16.mxu1 %vm2379_vm5, %v5164_v18  ;;  %v5393_v18 = vpop.permute.xlu1 %2256 }
 0x3eb   :  { %v5403_v61 = vpop.permute.xlu0 %2271 }
 0x3ec   :  { %v5405_v30 = vpop.permute.xlu1 %2266 }
 0x3ee   :  { %2670 = vmatmul.mubr.bf16.gmra.mrb[176].mxu0 %v5179_v13 }
 0x3ef   :  { %2771 = vmatmul.mubr.bf16.gmra.mrb[176].mxu1 %v5179_v13  ;;  %3348 = vmatprep.mubr.msk.bf16.mxu0 %vm2379_vm5, %v5188_v51  ;;  %v5415_v33 = vpop.permute.xlu0 %2281 }
 0x3f0   :  { %3356 = vmatprep.mubr.msk.bf16.mxu1 %vm2379_vm5, %v5188_v51  ;;  %v5417_v57 = vpop.permute.xlu1 %2276 }
 0x3f6   :  { %2680 = vmatmul.mubr.bf16.gmra.mrb[180].mxu0 %v5203_v21 }
 0x3f7   :  { %2781 = vmatmul.mubr.bf16.gmra.mrb[180].mxu1 %v5203_v21  ;;  %3349 = vmatprep.mubr.msk.bf16.mxu0 %vm2379_vm5, %v5212_v34 }
 0x3f8   :  { %3357 = vmatprep.mubr.msk.bf16.mxu1 %vm2379_vm5, %v5212_v34 }
 0x3fe   :  { %2690 = vmatmul.mubr.bf16.gmra.mrb[184].mxu0 %v5227_v53 }
 0x3ff   :  { %2791 = vmatmul.mubr.bf16.gmra.mrb[184].mxu1 %v5227_v53  ;;  %3350 = vmatprep.mubr.msk.bf16.mxu0 %vm2379_vm5, %v5236_v19 }
 0x400   :  { %3358 = vmatprep.mubr.msk.bf16.mxu1 %vm2379_vm5, %v5236_v19 }
 0x406   :  { %2700 = vmatmul.mubr.bf16.gmra.mrb[188].mxu0 %v5251_v58 }
 0x407   :  { %2801 = vmatmul.mubr.bf16.gmra.mrb[188].mxu1 %v5251_v58  ;;  %3351 = vmatprep.mubr.msk.bf16.mxu0 %vm2379_vm5, %v5260_v63 }
 0x408   :  { %3359 = vmatprep.mubr.msk.bf16.mxu1 %vm2379_vm5, %v5260_v63 }
 0x40e   :  { %2710 = vmatmul.mubr.bf16.gmra.mrb[192].mxu0 %v5278_v1 }
 0x40f   :  { %2811 = vmatmul.mubr.bf16.gmra.mrb[192].mxu1 %v5278_v1  ;;  %3352 = vmatprep.mubr.msk.bf16.mxu0 %vm2379_vm5, %v5280_v3 }
 0x410   :  { %3360 = vmatprep.mubr.msk.bf16.mxu1 %vm2379_vm5, %v5280_v3 }
 0x416   :  { %2720 = vmatmul.mubr.bf16.gmra.mrb[196].mxu0 %v5296_v46 }
 0x417   :  { %2821 = vmatmul.mubr.bf16.gmra.mrb[196].mxu1 %v5296_v46  ;;  %3012 = vmatprep.mubr.bf16.mxu0 %v3949_v8 }
 0x418   :  { %3053 = vmatprep.mubr.bf16.mxu1 %v3949_v8 }
 0x451   :  { %v2459_v13 = vpop.f32.mrb[144].mxu0 }
 0x452   :  { %v2461_v21 = vpop.f32.mrb[145].mxu0  ;;  %v2460_v19 = vadd.f32 %v2459_v13, %v5393_v18 }
 0x453   :  { %v2560_v51 = vpop.f32.mrb[144].mxu1  ;;  %v2463_v53 = vpop.f32.mrb[146].mxu0  ;;  %v2462_v46 = vadd.f32 %v2461_v21, %v5393_v18 }
 0x454   :  { %v2562_v34 = vpop.f32.mrb[145].mxu1  ;;  %v2464_v58 = vadd.f32 %v2463_v53, %v5391_v2  ;;  %v2465_v1 = vpop.f32.mrb[147].mxu0  ;;  %v2561_v3 = vadd.f32 %v2560_v51, %v5393_v18 }
 0x455   :  { %v2564_v63 = vpop.f32.mrb[146].mxu1  ;;  %v2466_v25 = vadd.f32 %v2465_v1, %v5391_v2  ;;  %v2563_v15 = vadd.f32 %v2562_v34, %v5393_v18  ;;  %v5429_v1 = vpop.permute.xlu1 %2286 }
 0x456   :  { %v2565_v14 = vadd.f32 %v2564_v63, %v5391_v2  ;;  %v2566_v27 = vpop.f32.mrb[147].mxu1  ;;  %v2829_v42 = vpack.c.bf16 %v2464_v58, %v2460_v19  ;;  %v5427_v58 = vpop.permute.xlu0 %2291 }
 0x457   :  { %v2567_v54 = vadd.f32 %v2566_v27, %v5391_v2  ;;  %v2830_v60 = vpack.c.bf16 %v2466_v25, %v2462_v46 }
 0x458   :  { %v2831_v48 = vpack.c.bf16 %v2565_v14, %v2561_v3  ;;  %3812 = vtanh.bf16 %v2829_v42 }
 0x459   :  { %v2832_v22 = vpack.c.bf16 %v2567_v54, %v2563_v15  ;;  %v2469_v23 = vpop.f32.mrb[148].mxu0  ;;  %3814 = vtanh.bf16 %v2830_v60 }
 0x45a   :  { %v2471_v20 = vpop.f32.mrb[149].mxu0  ;;  %v2470_v5 = vadd.f32 %v2469_v23, %v5405_v30 }
 0x45b   :  { %v2570_v0 = vpop.f32.mrb[148].mxu1  ;;  %3816 = vtanh.bf16 %v2832_v22  ;;  %v2473_v43 = vpop.f32.mrb[150].mxu0  ;;  %v2472_v10 = vadd.f32 %v2471_v20, %v5405_v30 }
 0x45c   :  { %v2572_v16 = vpop.f32.mrb[149].mxu1  ;;  %3818 = vtanh.bf16 %v2831_v48  ;;  %v2474_v11 = vadd.f32 %v2473_v43, %v5403_v61  ;;  %v2475_v55 = vpop.f32.mrb[151].mxu0  ;;  %v2571_v7 = vadd.f32 %v2570_v0, %v5405_v30 }
 0x45d   :  { %v2574_v17 = vpop.f32.mrb[150].mxu1  ;;  %v2476_v29 = vadd.f32 %v2475_v55, %v5403_v61  ;;  %v2573_v59 = vadd.f32 %v2572_v16, %v5405_v30 }
 0x45e   :  { %v2575_v26 = vadd.f32 %v2574_v17, %v5403_v61  ;;  %v2576_v56 = vpop.f32.mrb[151].mxu1  ;;  %v2837_v45 = vpack.c.bf16 %v2474_v11, %v2470_v5 }
 0x45f   :  { %v2577_v47 = vadd.f32 %v2576_v56, %v5403_v61  ;;  %v2838_v32 = vpack.c.bf16 %v2476_v29, %v2472_v10  ;;  %v5439_v29 = vpop.permute.xlu0 %2301 }
 0x460   :  { %v2839_v31 = vpack.c.bf16 %v2575_v26, %v2571_v7  ;;  %3820 = vtanh.bf16 %v2837_v45 }
 0x461   :  { %v2840_v35 = vpack.c.bf16 %v2577_v47, %v2573_v59  ;;  %3822 = vtanh.bf16 %v2838_v32  ;;  %v5441_v59 = vpop.permute.xlu1 %2296 }
 0x462   :  { %v2479_v36 = vpop.f32.mrb[152].mxu0 }
 0x463   :  { %v2580_v37 = vpop.f32.mrb[152].mxu1  ;;  %v2481_v4 = vpop.f32.mrb[153].mxu0  ;;  %3824 = vtanh.bf16 %v2840_v35  ;;  %v2480_v40 = vadd.f32 %v2479_v36, %v5417_v57 }
 0x464   :  { %v2582_v6 = vpop.f32.mrb[153].mxu1  ;;  %v2483_v24 = vpop.f32.mrb[154].mxu0  ;;  %3826 = vtanh.bf16 %v2839_v31  ;;  %v2581_v44 = vadd.f32 %v2580_v37, %v5417_v57  ;;  %v2482_v49 = vadd.f32 %v2481_v4, %v5417_v57 }
 0x465   :  { %v3813_v39 = vpop.eup %3812  ;;  %v2484_v41 = vadd.f32 %v2483_v24, %v5415_v33  ;;  %v2584_v28 = vpop.f32.mrb[154].mxu1  ;;  %v2583_v13 = vadd.f32 %v2582_v6, %v5417_v57 }
 0x466   :  { %v2485_v38 = vpop.f32.mrb[155].mxu0  ;;  %v3815_v62 = vpop.eup %3814  ;;  %v2585_v50 = vadd.f32 %v2584_v28, %v5415_v33 }
 0x467   :  { %v2486_v52 = vadd.f32 %v2485_v38, %v5415_v33  ;;  %v2586_v9 = vpop.f32.mrb[155].mxu1  ;;  %v3817_v12 = vpop.eup %3816  ;;  %v2845_v51 = vpack.c.bf16 %v2484_v41, %v2480_v40  ;;  %2980 = vmatprep.subr.bf16.mxu0 %v3815_v62 }
 0x468   :  { %v2587_v21 = vadd.f32 %v2586_v9, %v5415_v33  ;;  %v3819_v34 = vpop.eup %3818  ;;  %v2847_v53 = vpack.c.bf16 %v2585_v50, %v2581_v44  ;;  %3021 = vmatprep.subr.bf16.mxu1 %v3817_v12  ;;  %2981 = vmatpush1.bf16.msra.mxu0 %v3813_v39 }
 0x469   :  { %v2846_v19 = vpack.c.bf16 %v2486_v52, %v2482_v49  ;;  %3022 = vmatpush1.bf16.msra.mxu1 %v3819_v34  ;;  %3828 = vtanh.bf16 %v2845_v51  ;;  %v5451_v51 = vpop.permute.xlu0 %2311  ;;  %v5453_v34 = vpop.permute.xlu1 %2306 }
 0x46a   :  { %v2848_v63 = vpack.c.bf16 %v2587_v21, %v2583_v13  ;;  %v2489_v3 = vpop.f32.mrb[156].mxu0 }
 0x46b   :  { %3830 = vtanh.bf16 %v2846_v19  ;;  %v2590_v46 = vpop.f32.mrb[156].mxu1  ;;  %v2491_v14 = vpop.f32.mrb[157].mxu0  ;;  %v2490_v42 = vadd.f32 %v2489_v3, %v5429_v1 }
 0x46c   :  { %3832 = vtanh.bf16 %v2848_v63  ;;  %v2592_v25 = vpop.f32.mrb[157].mxu1  ;;  %v2493_v27 = vpop.f32.mrb[158].mxu0  ;;  %v2591_v23 = vadd.f32 %v2590_v46, %v5429_v1  ;;  %v2492_v0 = vadd.f32 %v2491_v14, %v5429_v1 }
 0x46d   :  { %v3821_v15 = vpop.eup %3820  ;;  %3834 = vtanh.bf16 %v2847_v53  ;;  %v2494_v54 = vadd.f32 %v2493_v27, %v5427_v58  ;;  %v2594_v48 = vpop.f32.mrb[158].mxu1  ;;  %v2593_v11 = vadd.f32 %v2592_v25, %v5429_v1 }
 0x46e   :  { %v2495_v60 = vpop.f32.mrb[159].mxu0  ;;  %v3823_v22 = vpop.eup %3822  ;;  %v2595_v20 = vadd.f32 %v2594_v48, %v5427_v58 }
 0x46f   :  { %v2496_v16 = vadd.f32 %v2495_v60, %v5427_v58  ;;  %v2596_v43 = vpop.f32.mrb[159].mxu1  ;;  %v3825_v5 = vpop.eup %3824  ;;  %v2853_v17 = vpack.c.bf16 %v2494_v54, %v2490_v42  ;;  %2982 = vmatprep.subr.bf16.mxu0 %v3823_v22 }
 0x470   :  { %v2597_v55 = vadd.f32 %v2596_v43, %v5427_v58  ;;  %v3827_v7 = vpop.eup %3826  ;;  %v2855_v10 = vpack.c.bf16 %v2595_v20, %v2591_v23  ;;  %3023 = vmatprep.subr.bf16.mxu1 %v3825_v5  ;;  %2983 = vmatpush1.bf16.msra.mxu0 %v3821_v15 }
 0x471   :  { %v2854_v26 = vpack.c.bf16 %v2496_v16, %v2492_v0  ;;  %3024 = vmatpush1.bf16.msra.mxu1 %v3827_v7  ;;  %3836 = vtanh.bf16 %v2853_v17 }
 0x472   :  { %v2856_v56 = vpack.c.bf16 %v2597_v55, %v2593_v11  ;;  %v2499_v45 = vpop.f32.mrb[160].mxu0 }
 0x473   :  { %3838 = vtanh.bf16 %v2854_v26  ;;  %v2600_v47 = vpop.f32.mrb[160].mxu1  ;;  %v2501_v31 = vpop.f32.mrb[161].mxu0  ;;  %v2500_v37 = vadd.f32 %v2499_v45, %v5441_v59 }
 0x474   :  { %3840 = vtanh.bf16 %v2856_v56  ;;  %v2602_v32 = vpop.f32.mrb[161].mxu1  ;;  %v2503_v35 = vpop.f32.mrb[162].mxu0  ;;  %v2601_v40 = vadd.f32 %v2600_v47, %v5441_v59  ;;  %v2502_v41 = vadd.f32 %v2501_v31, %v5441_v59 }
 0x475   :  { %v3829_v36 = vpop.eup %3828  ;;  %3842 = vtanh.bf16 %v2855_v10  ;;  %v2504_v4 = vadd.f32 %v2503_v35, %v5439_v29  ;;  %v2604_v6 = vpop.f32.mrb[162].mxu1  ;;  %v2603_v49 = vadd.f32 %v2602_v32, %v5441_v59 }
 0x476   :  { %v2505_v24 = vpop.f32.mrb[163].mxu0  ;;  %v3831_v39 = vpop.eup %3830  ;;  %v2605_v28 = vadd.f32 %v2604_v6, %v5439_v29 }
 0x477   :  { %v2506_v38 = vadd.f32 %v2505_v24, %v5439_v29  ;;  %v2606_v62 = vpop.f32.mrb[163].mxu1  ;;  %v3833_v44 = vpop.eup %3832  ;;  %v2861_v50 = vpack.c.bf16 %v2504_v4, %v2500_v37  ;;  %2984 = vmatprep.subr.bf16.mxu0 %v3831_v39 }
 0x478   :  { %v2607_v52 = vadd.f32 %v2606_v62, %v5439_v29  ;;  %v3835_v9 = vpop.eup %3834  ;;  %v2863_v12 = vpack.c.bf16 %v2605_v28, %v2601_v40  ;;  %3025 = vmatprep.subr.bf16.mxu1 %v3833_v44  ;;  %2985 = vmatpush1.bf16.msra.mxu0 %v3829_v36  ;;  %v5463_v10 = vpop.permute.xlu1 %2316 }
 0x479   :  { %v2862_v13 = vpack.c.bf16 %v2506_v38, %v2502_v41  ;;  %3026 = vmatpush1.bf16.msra.mxu1 %v3835_v9  ;;  %3844 = vtanh.bf16 %v2861_v50 }
 0x47a   :  { %v2864_v21 = vpack.c.bf16 %v2607_v52, %v2603_v49  ;;  %v2509_v53 = vpop.f32.mrb[164].mxu0 }
 0x47b   :  { %3846 = vtanh.bf16 %v2862_v13  ;;  %v2610_v19 = vpop.f32.mrb[164].mxu1  ;;  %v2511_v63 = vpop.f32.mrb[165].mxu0  ;;  %v2510_v25 = vadd.f32 %v2509_v53, %v5453_v34 }
 0x47c   :  { %3848 = vtanh.bf16 %v2864_v21  ;;  %v2612_v3 = vpop.f32.mrb[165].mxu1  ;;  %v2513_v46 = vpop.f32.mrb[166].mxu0  ;;  %v2611_v48 = vadd.f32 %v2610_v19, %v5453_v34  ;;  %v2512_v60 = vadd.f32 %v2511_v63, %v5453_v34 }
 0x47d   :  { %v3837_v14 = vpop.eup %3836  ;;  %3850 = vtanh.bf16 %v2863_v12  ;;  %v2514_v27 = vadd.f32 %v2513_v46, %v5451_v51  ;;  %v2614_v15 = vpop.f32.mrb[166].mxu1  ;;  %v2613_v16 = vadd.f32 %v2612_v3, %v5453_v34  ;;  %v5476_v46 = vld [vmem:[%s5565_s9] sm:$0x1]  ;;  %s3951_s9 = smov [#allocation3]  }
 0x47e   :  { %v2515_v42 = vpop.f32.mrb[167].mxu0  ;;  %v3839_v54 = vpop.eup %3838  ;;  %v2615_v22 = vadd.f32 %v2614_v15, %v5451_v51  ;;  %s3209_s25 = sshll.u32 %s3951_s9, 4  ;;  %s3210_s25 = int_to_ptr.vmem [resolvable:$true] %s3209_s25 }
 0x47f   :  { %v2516_v23 = vadd.f32 %v2515_v42, %v5451_v51  ;;  %v2616_v0 = vpop.f32.mrb[167].mxu1  ;;  %v3841_v20 = vpop.eup %3840  ;;  %v2869_v43 = vpack.c.bf16 %v2514_v27, %v2510_v25  ;;  %2986 = vmatprep.subr.bf16.mxu0 %v3839_v54  ;;  %s3925_s3 = scalar_lea.vmem %s3210_s25, 128  ;;  %p3930_p1 = scmp.lt.s32.totalorder %s3210_s25, %s3210_s25 }
 0x480   :  { %v2617_v5 = vadd.f32 %v2616_v0, %v5451_v51  ;;  %v3843_v11 = vpop.eup %3842  ;;  %v2871_v17 = vpack.c.bf16 %v2615_v22, %v2611_v48  ;;  %3027 = vmatprep.subr.bf16.mxu1 %v3841_v20  ;;  %2987 = vmatpush1.bf16.msra.mxu0 %v3837_v14  ;;  %p3926_p0 = scmp.ne.s32.totalorder %s3210_s25, %s3925_s3  ;;  %p3931_p2 = scmp.lt.s32.totalorder %s3925_s3, %s3925_s3 }
 0x481   :  { %v2870_v55 = vpack.c.bf16 %v2516_v23, %v2512_v60  ;;  %3028 = vmatpush1.bf16.msra.mxu1 %v3843_v11  ;;  %3852 = vtanh.bf16 %v2869_v43 }
 0x482   :  { %v2872_v7 = vpack.c.bf16 %v2617_v5, %v2613_v16  ;;  %v2519_v26 = vpop.f32.mrb[168].mxu0  ;;  %p3932_p3 = por %p3931_p2, %p3930_p1 }
 0x483   :  { %3854 = vtanh.bf16 %v2870_v55  ;;  %v2520_v56 = vadd.f32 %v2519_v26, %v5463_v10  ;;  %v2620_v45 = vpop.f32.mrb[168].mxu1  ;;  %v2521_v47 = vpop.f32.mrb[169].mxu0 }
 0x484   :  { %3856 = vtanh.bf16 %v2872_v7  ;;  %v2621_v31 = vadd.f32 %v2620_v45, %v5463_v10  ;;  %v2522_v32 = vadd.f32 %v2521_v47, %v5463_v10  ;;  %v2622_v35 = vpop.f32.mrb[169].mxu1  ;;  %v2523_v36 = vpop.f32.mrb[170].mxu0  ;;  %p3933_p4 = pnand %p3932_p3, %p3926_p0 }
 0x485   :  { %v3845_v37 = vpop.eup %3844  ;;  %3858 = vtanh.bf16 %v2871_v17  ;;  %v2877_v4 = vpack.c.bf16 %v2520_v56, %v2520_v56  ;;  %v2623_v6 = vadd.f32 %v2622_v35, %v5463_v10  ;;  %v2624_v24 = vpop.f32.mrb[170].mxu1 }
 0x486   :  { %v2524_v39 = vpop.f32.mrb[171].mxu0  ;;  %v3847_v40 = vpop.eup %3846  ;;  %v2879_v41 = vpack.c.bf16 %v2621_v31, %v2621_v31  ;;  %v2878_v28 = vpack.c.bf16 %v2522_v32, %v2522_v32 }
 0x487   :  { %v2625_v38 = vpop.f32.mrb[171].mxu1  ;;  %v3849_v62 = vpop.eup %3848  ;;  %3860 = vtanh.bf16 %v2877_v4  ;;  %v2880_v44 = vpack.c.bf16 %v2623_v6, %v2623_v6  ;;  %2988 = vmatprep.subr.bf16.mxu0 %v3847_v40 }
 0x488   :  { %v3851_v49 = vpop.eup %3850  ;;  %3862 = vtanh.bf16 %v2879_v41  ;;  %3029 = vmatprep.subr.bf16.mxu1 %v3849_v62  ;;  %2989 = vmatpush1.bf16.msra.mxu0 %v3845_v37 }
 0x489   :  { %3864 = vtanh.bf16 %v2878_v28  ;;  %3030 = vmatpush1.bf16.msra.mxu1 %v3851_v49 }
 0x48a   :  { %3866 = vtanh.bf16 %v2880_v44 }
 0x48c   :  { %v3853_v50 = vpop.eup %3852 }
 0x48e   :  { %v3855_v52 = vpop.eup %3854 }
 0x48f   :  { %v3857_v9 = vpop.eup %3856  ;;  %2990 = vmatprep.subr.bf16.mxu0 %v3855_v52 }
 0x490   :  { %v3859_v12 = vpop.eup %3858  ;;  %3031 = vmatprep.subr.bf16.mxu1 %v3857_v9  ;;  %2991 = vmatpush1.bf16.msra.mxu0 %v3853_v50 }
 0x491   :  { %3032 = vmatpush1.bf16.msra.mxu1 %v3859_v12 }
 0x492   :  { %v3861_v13 = vpop.eup %3860 }
 0x493   :  { %v3863_v21 = vpop.eup %3862  ;;  %v2957_v53 = vsel %vm756_vm1, %v3861_v13, 0 }
 0x494   :  { %v3865_v19 = vpop.eup %3864  ;;  %v2963_v63 = vsel %vm756_vm1, %v3863_v21, 0 }
 0x495   :  { %v3867_v3 = vpop.eup %3866  ;;  %3361 = vmatprep.subr.msk.bf16.mxu0 %vm756_vm1, %v3865_v19 }
 0x496   :  { %3363 = vmatprep.subr.msk.bf16.mxu1 %vm756_vm1, %v3867_v3  ;;  %2993 = vmatpush1.bf16.msra.mxu0 %v2957_v53 }
 0x497   :  { %3034 = vmatpush1.bf16.msra.mxu1 %v2963_v63 }
 0x499   :  { %3362 = vmatmul.mubr.msk.bf16.vlgmr.msra.gmra.mrb[200].mxu0 %vm2952_vm6, %v5476_v46 }
 0x49a   :  { %3364 = vmatmul.mubr.msk.bf16.vlgmr.msra.gmra.mrb[200].mxu1 %vm2952_vm6, %v5476_v46  ;;  %3094 = vmatprep.mubr.bf16.mxu0 %v3949_v8 }
 0x49b   :  { %3135 = vmatprep.mubr.bf16.mxu1 %v3949_v8 }
 0x4b9   :  { %v2661_v14 = vpop.f32.mrb[172].mxu0 }
 0x4ba   :  { %v2762_v25 = vpop.f32.mrb[172].mxu1  ;;  %v2663_v27 = vpop.f32.mrb[173].mxu0  ;;  %v2662_v54 = vadd.f32 %v2661_v14, %v5393_v18 }
 0x4bb   :  { %v2764_v15 = vpop.f32.mrb[173].mxu1  ;;  %v2665_v42 = vpop.f32.mrb[174].mxu0  ;;  %v2763_v23 = vadd.f32 %v2762_v25, %v5393_v18  ;;  %v2664_v0 = vadd.f32 %v2663_v27, %v5393_v18 }
 0x4bc   :  { %v2666_v48 = vadd.f32 %v2665_v42, %v5391_v2  ;;  %v2766_v60 = vpop.f32.mrb[174].mxu1  ;;  %v2667_v22 = vpop.f32.mrb[175].mxu0  ;;  %v2765_v43 = vadd.f32 %v2764_v15, %v5393_v18 }
 0x4bd   :  { %v2767_v20 = vadd.f32 %v2766_v60, %v5391_v2  ;;  %v2668_v16 = vadd.f32 %v2667_v22, %v5391_v2  ;;  %v2768_v8 = vpop.f32.mrb[175].mxu1 }
 0x4be   :  { %v2833_v5 = vpack.c.bf16 %v2666_v48, %v2662_v54  ;;  %v2769_v11 = vadd.f32 %v2768_v8, %v5391_v2 }
 0x4bf   :  { %v2835_v17 = vpack.c.bf16 %v2767_v20, %v2763_v23  ;;  %v2834_v55 = vpack.c.bf16 %v2668_v16, %v2664_v0 }
 0x4c0   :  { %v2836_v7 = vpack.c.bf16 %v2769_v11, %v2765_v43  ;;  %3868 = vtanh.bf16 %v2833_v5 }
 0x4c1   :  { %v2671_v26 = vpop.f32.mrb[176].mxu0  ;;  %3870 = vtanh.bf16 %v2834_v55 }
 0x4c2   :  { %v2772_v56 = vpop.f32.mrb[176].mxu1  ;;  %v2673_v45 = vpop.f32.mrb[177].mxu0  ;;  %3872 = vtanh.bf16 %v2836_v7  ;;  %v2672_v32 = vadd.f32 %v2671_v26, %v5405_v30 }
 0x4c3   :  { %v2774_v47 = vpop.f32.mrb[177].mxu1  ;;  %v2675_v31 = vpop.f32.mrb[178].mxu0  ;;  %3874 = vtanh.bf16 %v2835_v17  ;;  %v2773_v2 = vadd.f32 %v2772_v56, %v5405_v30  ;;  %v2674_v37 = vadd.f32 %v2673_v45, %v5405_v30 }
 0x4c4   :  { %v2676_v35 = vadd.f32 %v2675_v31, %v5403_v61  ;;  %v2776_v18 = vpop.f32.mrb[178].mxu1  ;;  %v2677_v36 = vpop.f32.mrb[179].mxu0  ;;  %v2775_v39 = vadd.f32 %v2774_v47, %v5405_v30 }
 0x4c5   :  { %v2777_v4 = vadd.f32 %v2776_v18, %v5403_v61  ;;  %v2678_v6 = vadd.f32 %v2677_v36, %v5403_v61  ;;  %v2778_v24 = vpop.f32.mrb[179].mxu1 }
 0x4c6   :  { %v2841_v40 = vpack.c.bf16 %v2676_v35, %v2672_v32  ;;  %v2779_v41 = vadd.f32 %v2778_v24, %v5403_v61 }
 0x4c7   :  { %v2843_v28 = vpack.c.bf16 %v2777_v4, %v2773_v2  ;;  %v2842_v38 = vpack.c.bf16 %v2678_v6, %v2674_v37 }
 0x4c8   :  { %v2844_v62 = vpack.c.bf16 %v2779_v41, %v2775_v39  ;;  %3876 = vtanh.bf16 %v2841_v40 }
 0x4c9   :  { %v2681_v44 = vpop.f32.mrb[180].mxu0  ;;  %3878 = vtanh.bf16 %v2842_v38 }
 0x4ca   :  { %v2782_v49 = vpop.f32.mrb[180].mxu1  ;;  %v2683_v50 = vpop.f32.mrb[181].mxu0  ;;  %3880 = vtanh.bf16 %v2844_v62  ;;  %v2682_v13 = vadd.f32 %v2681_v44, %v5417_v57 }
 0x4cb   :  { %v2784_v52 = vpop.f32.mrb[181].mxu1  ;;  %v2685_v9 = vpop.f32.mrb[182].mxu0  ;;  %3882 = vtanh.bf16 %v2843_v28  ;;  %v2783_v19 = vadd.f32 %v2782_v49, %v5417_v57  ;;  %v2684_v63 = vadd.f32 %v2683_v50, %v5417_v57 }
 0x4cc   :  { %v3869_v12 = vpop.eup %3868  ;;  %v2686_v30 = vadd.f32 %v2685_v9, %v5415_v33  ;;  %v2786_v21 = vpop.f32.mrb[182].mxu1  ;;  %v2785_v15 = vadd.f32 %v2784_v52, %v5417_v57 }
 0x4cd   :  { %v2687_v53 = vpop.f32.mrb[183].mxu0  ;;  %v3871_v61 = vpop.eup %3870  ;;  %v2787_v3 = vadd.f32 %v2786_v21, %v5415_v33 }
 0x4ce   :  { %v2688_v14 = vadd.f32 %v2687_v53, %v5415_v33  ;;  %v2788_v25 = vpop.f32.mrb[183].mxu1  ;;  %v3873_v27 = vpop.eup %3872  ;;  %v2849_v42 = vpack.c.bf16 %v2686_v30, %v2682_v13  ;;  %3062 = vmatprep.subr.bf16.mxu0 %v3871_v61 }
 0x4cf   :  { %v2789_v54 = vadd.f32 %v2788_v25, %v5415_v33  ;;  %v3875_v48 = vpop.eup %3874  ;;  %v2851_v60 = vpack.c.bf16 %v2787_v3, %v2783_v19  ;;  %3103 = vmatprep.subr.bf16.mxu1 %v3873_v27  ;;  %3063 = vmatpush1.bf16.msra.mxu0 %v3869_v12 }
 0x4d0   :  { %v2850_v22 = vpack.c.bf16 %v2688_v14, %v2684_v63  ;;  %3104 = vmatpush1.bf16.msra.mxu1 %v3875_v48  ;;  %3884 = vtanh.bf16 %v2849_v42 }
 0x4d1   :  { %v2852_v23 = vpack.c.bf16 %v2789_v54, %v2785_v15  ;;  %v2691_v0 = vpop.f32.mrb[184].mxu0 }
 0x4d2   :  { %3886 = vtanh.bf16 %v2850_v22  ;;  %v2792_v20 = vpop.f32.mrb[184].mxu1  ;;  %v2693_v16 = vpop.f32.mrb[185].mxu0  ;;  %v2692_v33 = vadd.f32 %v2691_v0, %v5429_v1 }
 0x4d3   :  { %3888 = vtanh.bf16 %v2852_v23  ;;  %v2794_v8 = vpop.f32.mrb[185].mxu1  ;;  %v2695_v43 = vpop.f32.mrb[186].mxu0  ;;  %v2793_v7 = vadd.f32 %v2792_v20, %v5429_v1  ;;  %v2694_v26 = vadd.f32 %v2693_v16, %v5429_v1 }
 0x4d4   :  { %v3877_v57 = vpop.eup %3876  ;;  %3890 = vtanh.bf16 %v2851_v60  ;;  %v2696_v5 = vadd.f32 %v2695_v43, %v5427_v58  ;;  %v2796_v11 = vpop.f32.mrb[186].mxu1  ;;  %v2795_v32 = vadd.f32 %v2794_v8, %v5429_v1 }
 0x4d5   :  { %v2697_v17 = vpop.f32.mrb[187].mxu0  ;;  %v3879_v55 = vpop.eup %3878  ;;  %v2797_v56 = vadd.f32 %v2796_v11, %v5427_v58 }
 0x4d6   :  { %v2698_v45 = vadd.f32 %v2697_v17, %v5427_v58  ;;  %v2798_v47 = vpop.f32.mrb[187].mxu1  ;;  %v3881_v31 = vpop.eup %3880  ;;  %v2857_v35 = vpack.c.bf16 %v2696_v5, %v2692_v33  ;;  %3064 = vmatprep.subr.bf16.mxu0 %v3879_v55 }
 0x4d7   :  { %v2799_v18 = vadd.f32 %v2798_v47, %v5427_v58  ;;  %v3883_v36 = vpop.eup %3882  ;;  %v2859_v2 = vpack.c.bf16 %v2797_v56, %v2793_v7  ;;  %3105 = vmatprep.subr.bf16.mxu1 %v3881_v31  ;;  %3065 = vmatpush1.bf16.msra.mxu0 %v3877_v57 }
 0x4d8   :  { %v2858_v37 = vpack.c.bf16 %v2698_v45, %v2694_v26  ;;  %3106 = vmatpush1.bf16.msra.mxu1 %v3883_v36  ;;  %3892 = vtanh.bf16 %v2857_v35 }
 0x4d9   :  { %v2860_v4 = vpack.c.bf16 %v2799_v18, %v2795_v32  ;;  %v2701_v6 = vpop.f32.mrb[188].mxu0 }
 0x4da   :  { %3894 = vtanh.bf16 %v2858_v37  ;;  %v2802_v24 = vpop.f32.mrb[188].mxu1  ;;  %v2703_v39 = vpop.f32.mrb[189].mxu0  ;;  %v2702_v58 = vadd.f32 %v2701_v6, %v5441_v59 }
 0x4db   :  { %3896 = vtanh.bf16 %v2860_v4  ;;  %v2804_v40 = vpop.f32.mrb[189].mxu1  ;;  %v2705_v41 = vpop.f32.mrb[190].mxu0  ;;  %v2803_v49 = vadd.f32 %v2802_v24, %v5441_v59  ;;  %v2704_v50 = vadd.f32 %v2703_v39, %v5441_v59 }
 0x4dc   :  { %v3885_v1 = vpop.eup %3884  ;;  %3898 = vtanh.bf16 %v2859_v2  ;;  %v2706_v28 = vadd.f32 %v2705_v41, %v5439_v29  ;;  %v2806_v38 = vpop.f32.mrb[190].mxu1  ;;  %v2805_v30 = vadd.f32 %v2804_v40, %v5441_v59 }
 0x4dd   :  { %v2707_v62 = vpop.f32.mrb[191].mxu0  ;;  %v3887_v44 = vpop.eup %3886  ;;  %v2807_v52 = vadd.f32 %v2806_v38, %v5439_v29 }
 0x4de   :  { %v2708_v9 = vadd.f32 %v2707_v62, %v5439_v29  ;;  %v2808_v12 = vpop.f32.mrb[191].mxu1  ;;  %v3889_v13 = vpop.eup %3888  ;;  %v2865_v21 = vpack.c.bf16 %v2706_v28, %v2702_v58  ;;  %3066 = vmatprep.subr.bf16.mxu0 %v3887_v44 }
 0x4df   :  { %v2809_v53 = vadd.f32 %v2808_v12, %v5439_v29  ;;  %v3891_v61 = vpop.eup %3890  ;;  %v2867_v19 = vpack.c.bf16 %v2807_v52, %v2803_v49  ;;  %3107 = vmatprep.subr.bf16.mxu1 %v3889_v13  ;;  %3067 = vmatpush1.bf16.msra.mxu0 %v3885_v1  ;;  %v2948_v12 = vlaneseq }
 0x4e0   :  { %v2866_v63 = vpack.c.bf16 %v2708_v9, %v2704_v50  ;;  %3108 = vmatpush1.bf16.msra.mxu1 %v3891_v61  ;;  %3900 = vtanh.bf16 %v2865_v21  ;;  %v2946_v61 = vpop.permute.xlu0 %2945 }
 0x4e1   :  { %v2868_v3 = vpack.c.bf16 %v2809_v53, %v2805_v30  ;;  %v2711_v14 = vpop.f32.mrb[192].mxu0  ;;  %v2949_v13 = vshrl.u32 %v2948_v12, 7  ;;  %v3950_v30 = vmov 1966171168  }
 0x4e2   :  { %3902 = vtanh.bf16 %v2866_v63  ;;  %v2812_v25 = vpop.f32.mrb[192].mxu1  ;;  %v2713_v27 = vpop.f32.mrb[193].mxu0  ;;  %v2712_v29 = vadd.f32 %v2711_v14, %v5453_v34  ;;  %v3157_v21 = vunpack.c.l.s4 %v3950_v30 }
 0x4e3   :  { %3904 = vtanh.bf16 %v2868_v3  ;;  %v2814_v15 = vpop.f32.mrb[193].mxu1  ;;  %v2715_v42 = vpop.f32.mrb[194].mxu0  ;;  %v2813_v23 = vadd.f32 %v2812_v25, %v5453_v34  ;;  %v2714_v0 = vadd.f32 %v2713_v27, %v5453_v34  ;;  %v2950_v53 = vsub.s32 0, %v2949_v13 }
 0x4e4   :  { %v3893_v59 = vpop.eup %3892  ;;  %3906 = vtanh.bf16 %v2867_v19  ;;  %v2716_v54 = vadd.f32 %v2715_v42, %v5451_v51  ;;  %v2816_v48 = vpop.f32.mrb[194].mxu1  ;;  %v2815_v57 = vadd.f32 %v2814_v15, %v5453_v34  ;;  %v3158_v19 = vunpack.c.0.s8 %v3157_v21 }
 0x4e5   :  { %v2717_v60 = vpop.f32.mrb[195].mxu0  ;;  %v3895_v22 = vpop.eup %3894  ;;  %v2817_v20 = vadd.f32 %v2816_v48, %v5451_v51  ;;  %v2951_v63 = vrot.slane %v2946_v61, %v2950_v53 }
 0x4e6   :  { %v2718_v16 = vadd.f32 %v2717_v60, %v5451_v51  ;;  %v2818_v8 = vpop.f32.mrb[195].mxu1  ;;  %v3897_v43 = vpop.eup %3896  ;;  %v2873_v33 = vpack.c.bf16 %v2716_v54, %v2712_v29  ;;  %3068 = vmatprep.subr.bf16.mxu0 %v3895_v22  ;;  %v3161_v15 = vsub.s32 %v3158_v19, %v2949_v13 }
 0x4e7   :  { %v2819_v5 = vadd.f32 %v2818_v8, %v5451_v51  ;;  %v3899_v11 = vpop.eup %3898  ;;  %v2875_v17 = vpack.c.bf16 %v2817_v20, %v2813_v23  ;;  %3109 = vmatprep.subr.bf16.mxu1 %v3897_v43  ;;  %3069 = vmatpush1.bf16.msra.mxu0 %v3893_v59 }
 0x4e8   :  { %v2874_v55 = vpack.c.bf16 %v2718_v16, %v2714_v0  ;;  %3110 = vmatpush1.bf16.msra.mxu1 %v3899_v11  ;;  %3908 = vtanh.bf16 %v2873_v33 }
 0x4e9   :  { %v2876_v7 = vpack.c.bf16 %v2819_v5, %v2815_v57  ;;  %v2721_v26 = vpop.f32.mrb[196].mxu0 }
 0x4ea   :  { %3910 = vtanh.bf16 %v2874_v55  ;;  %v2722_v56 = vadd.f32 %v2721_v26, %v5463_v10  ;;  %v2822_v45 = vpop.f32.mrb[196].mxu1  ;;  %v2723_v47 = vpop.f32.mrb[197].mxu0 }
 0x4eb   :  { %3912 = vtanh.bf16 %v2876_v7  ;;  %v2823_v34 = vadd.f32 %v2822_v45, %v5463_v10  ;;  %v2724_v51 = vadd.f32 %v2723_v47, %v5463_v10  ;;  %v2824_v31 = vpop.f32.mrb[197].mxu1  ;;  %v2725_v32 = vpop.f32.mrb[198].mxu0 }
 0x4ec   :  { %v3901_v35 = vpop.eup %3900  ;;  %3914 = vtanh.bf16 %v2875_v17  ;;  %v2881_v18 = vpack.c.bf16 %v2722_v56, %v2722_v56  ;;  %v2825_v36 = vadd.f32 %v2824_v31, %v5463_v10  ;;  %v2826_v2 = vpop.f32.mrb[198].mxu1 }
 0x4ed   :  { %v2726_v37 = vpop.f32.mrb[199].mxu0  ;;  %v3903_v4 = vpop.eup %3902  ;;  %v2883_v6 = vpack.c.bf16 %v2823_v34, %v2823_v34  ;;  %v2882_v24 = vpack.c.bf16 %v2724_v51, %v2724_v51 }
 0x4ee   :  { %v2827_v39 = vpop.f32.mrb[199].mxu1  ;;  %v3905_v40 = vpop.eup %3904  ;;  %3916 = vtanh.bf16 %v2881_v18  ;;  %v2884_v41 = vpack.c.bf16 %v2825_v36, %v2825_v36  ;;  %3070 = vmatprep.subr.bf16.mxu0 %v3903_v4 }
 0x4ef   :  { %v3907_v1 = vpop.eup %3906  ;;  %3918 = vtanh.bf16 %v2883_v6  ;;  %3111 = vmatprep.subr.bf16.mxu1 %v3905_v40  ;;  %3071 = vmatpush1.bf16.msra.mxu0 %v3901_v35 }
 0x4f0   :  { %3920 = vtanh.bf16 %v2882_v24  ;;  %3112 = vmatpush1.bf16.msra.mxu1 %v3907_v1 }
 0x4f1   :  { %3922 = vtanh.bf16 %v2884_v41 }
 0x4f3   :  { %v3909_v58 = vpop.eup %3908 }
 0x4f5   :  { %v3911_v28 = vpop.eup %3910 }
 0x4f6   :  { %v3913_v10 = vpop.eup %3912  ;;  %3072 = vmatprep.subr.bf16.mxu0 %v3911_v28 }
 0x4f7   :  { %v3915_v38 = vpop.eup %3914  ;;  %3113 = vmatprep.subr.bf16.mxu1 %v3913_v10  ;;  %3073 = vmatpush1.bf16.msra.mxu0 %v3909_v58 }
 0x4f8   :  { %3114 = vmatpush1.bf16.msra.mxu1 %v3915_v38 }
 0x4f9   :  { %v3917_v62 = vpop.eup %3916 }
 0x4fa   :  { %v3919_v44 = vpop.eup %3918  ;;  %v2969_v49 = vsel %vm756_vm1, %v3917_v62, 0 }
 0x4fb   :  { %v3921_v50 = vpop.eup %3920  ;;  %v2975_v52 = vsel %vm756_vm1, %v3919_v44, 0 }
 0x4fc   :  { %v3923_v9 = vpop.eup %3922  ;;  %3365 = vmatprep.subr.msk.bf16.mxu0 %vm756_vm1, %v3921_v50 }
 0x4fd   :  { %3367 = vmatprep.subr.msk.bf16.mxu1 %vm756_vm1, %v3923_v9  ;;  %3075 = vmatpush1.bf16.msra.mxu0 %v2969_v49 }
 0x4fe   :  { %3116 = vmatpush1.bf16.msra.mxu1 %v2975_v52 }
 0x500   :  { %3366 = vmatmul.mubr.msk.bf16.vlgmr.msra.gmra.mrb[204].mxu0 %vm2952_vm6, %v5476_v46 }
 0x501   :  { %3368 = vmatmul.mubr.msk.bf16.vlgmr.msra.gmra.mrb[204].mxu1 %vm2952_vm6, %v5476_v46 }
 0x56c   :  { %v3014_v3 = vpop.f32.mrb[200].mxu0 }
 0x56d   :  { %v3015_v14 = vadd.f32 %v3014_v3, %v2951_v63  ;;  %v3055_v25 = vpop.f32.mrb[200].mxu1  ;;  %v3016_v27 = vpop.f32.mrb[201].mxu0 }
 0x56e   :  { %v3056_v42 = vadd.f32 %v3055_v25, %v2951_v63  ;;  %v3017_v59 = vadd.f32 %v3016_v27, %v2951_v63  ;;  %v3057_v29 = vpop.f32.mrb[201].mxu1  ;;  %v3018_v54 = vpop.f32.mrb[202].mxu0 }
 0x56f   :  { %v3058_v48 = vadd.f32 %v3057_v29, %v2951_v63  ;;  %v3059_v60 = vpop.f32.mrb[202].mxu1  ;;  %v3019_v46 = vpop.f32.mrb[203].mxu0 }
 0x570   :  { %v3152_v22 = vcombine.low %v3015_v14, %v3017_v59  ;;  %v3060_v23 = vpop.f32.mrb[203].mxu1 }
 0x571   :  { %v3153_v0 = vcombine.low %v3056_v42, %v3058_v48 }
 0x572   :  { %v3162_v20 = vrot.slane %v3152_v22, %v3161_v15 }
 0x573   :  { %v3169_v16 = vrot.slane %v3153_v0, %v3161_v15 }
 0x575   :  { %v3184_v8 = vcombine.low %v3162_v20, %v3169_v16 }
 0x577   :  { %v3192_v18 = vrot.slane %v3184_v8, %v3161_v15 }
 0x5d3   :  { %v3096_v43 = vpop.f32.mrb[204].mxu0 }
 0x5d4   :  { %v3097_v57 = vadd.f32 %v3096_v43, %v2951_v63  ;;  %v3137_v33 = vpop.f32.mrb[204].mxu1  ;;  %v3098_v5 = vpop.f32.mrb[205].mxu0 }
 0x5d5   :  { %v3138_v11 = vadd.f32 %v3137_v33, %v2951_v63  ;;  %v3099_v17 = vadd.f32 %v3098_v5, %v2951_v63  ;;  %v3139_v55 = vpop.f32.mrb[205].mxu1  ;;  %v3100_v7 = vpop.f32.mrb[206].mxu0 }
 0x5d6   :  { %v3140_v26 = vadd.f32 %v3139_v55, %v2951_v63  ;;  %v3141_v56 = vpop.f32.mrb[206].mxu1  ;;  %v3101_v45 = vpop.f32.mrb[207].mxu0 }
 0x5d7   :  { %v3154_v47 = vcombine.low %v3097_v57, %v3099_v17  ;;  %v3142_v34 = vpop.f32.mrb[207].mxu1 }
 0x5d8   :  { %v3155_v51 = vcombine.low %v3138_v11, %v3140_v26 }
 0x5d9   :  { %v3176_v31 = vrot.slane %v3154_v47, %v3161_v15 }
 0x5da   :  { %v3183_v32 = vrot.slane %v3155_v51, %v3161_v15 }
 0x5dc   :  { %v3185_v35 = vcombine.low %v3176_v31, %v3183_v32 }
 0x5de   :  { %v3199_v36 = vrot.slane %v3185_v35, %v3161_v15 }
 0x5e0   :  { %v3200_v2 = vcombine.low %v3192_v18, %v3199_v36 }
 0x5e2   :  { %3202 = vst [vmem:[#allocation3] sm:$0xff] %v3200_v2 }
 0x5e3   :  { %3936 = shalt.err (!%p3933_p4)
}
 0x5e4   :  { %s3937_s27 = scalar_lea.hbm %s5567_s11, 128 }
 0x5e5   :  { %p3938_p5 = scmp.ne.s32.totalorder %s5567_s11, %s3937_s27  ;;  %p3941_p6 = scmp.lt.u32.totalorder %s3937_s27, %s5567_s11 }
 0x5e7   :  { %p3943_p7 = pnand %p3941_p6, %p3938_p5 }
 0x5e9   :  { %3946 = shalt.err (!%p3943_p7)
}
 0x5ea   :  { %3212 = dma.vmem_to_hbm [thread:$0]  %s3210_s25, 128, %s5567_s11, [#allocation4]  }
 0x5eb   :  { %3947 = dma.done.wait [#allocation4], 128  }
 0x5ec   :  { %3948 = vsyncadd [#allocation4], 4294967168 }
 0x5ed   :  { %3216 = vsyncpa [#allocation4], 1 }

</bundles_post_ra>
